<compile_context>
chip_gen: v5e
topology: v5e:2x2
jax: 0.10.0
libtpu: 0.0.40
codegen_flags: <defaults>
</compile_context>

<pallas_src>
import jax
import jax.numpy as jnp
from jax import lax
from jax.experimental import pallas as pl
from jax.experimental.pallas import tpu as pltpu

EPS = 1e-5
LANES = 128
LEFT = 16  # left halo width of the apad scratch -> interior store is sublane-aligned


def _round_up(x, m):
    return (x + m - 1) // m * m


def _pick_row_tile(hw):
    for t in (2048, 1024, 512, 256, 128, 64, 32, 16, 8):
        if hw % t == 0:
            return t
    return hw


def _vmem_limit_bytes():
    # ~half of physical VMEM: ~64 MiB on v5e/v6e (128 MiB), ~32 MiB on v7x (64 MiB).
    try:
        cap = int(pltpu.get_tpu_info().vmem_capacity_bytes)
    except Exception:
        return 32 * 1024 * 1024  # conservative, safe on all generations
    return min(max(cap // 2, 32 * 1024 * 1024), 96 * 1024 * 1024)


def _compiler_params(n_grid_axes):
    return pltpu.CompilerParams(
        dimension_semantics=("parallel",) * n_grid_axes,
        vmem_limit_bytes=_vmem_limit_bytes(),
    )


# ----------------------------------------------------------------------------
# Kernel A: conv1 as a single K=9*Cin matmul (+bias) on host-built im2col
# channels, plus per-sample BN partial statistics (sum, centered sum-of-sq).
# ----------------------------------------------------------------------------
def _conv1_stats_kernel(xc_ref, w_ref, b_ref, h_ref, s_ref):
    # xc_ref: (1, HW, Kp) bf16     w_ref: (Kp, Cp) bf16     b_ref: (1, Cp) f32
    # h_ref:  (1, HW, Cp) bf16 (pre-BN)   s_ref: (1, 2, Cp) f32 [sum, ctr-sumsq]
    hw = xc_ref.shape[1]
    acc = jnp.dot(xc_ref[0], w_ref[...],
                  preferred_element_type=jnp.float32) + b_ref[...]
    h_ref[0] = acc.astype(h_ref.dtype)
    s = jnp.sum(acc, axis=0, keepdims=True)
    c = acc - s * (1.0 / hw)                      # per-sample centering (f32)
    s_ref[0] = jnp.concatenate(
        [s, jnp.sum(c * c, axis=0, keepdims=True)], axis=0)


def _conv1_stats(x_col, w1, b1, compute_dtype):
    N, HW, Kp = x_col.shape
    Cp = w1.shape[-1]
    return pl.pallas_call(
        _conv1_stats_kernel,
        grid=(N,),
        in_specs=[
            pl.BlockSpec((1, HW, Kp), lambda n: (n, 0, 0)),
            pl.BlockSpec((Kp, Cp), lambda n: (0, 0)),
            pl.BlockSpec((1, Cp), lambda n: (0, 0)),
        ],
        out_shape=(
            jax.ShapeDtypeStruct((N, HW, Cp), compute_dtype),
            jax.ShapeDtypeStruct((N, 2, Cp), jnp.float32),
        ),
        out_specs=(
            pl.BlockSpec((1, HW, Cp), lambda n: (n, 0, 0)),
            pl.BlockSpec((1, 2, Cp), lambda n: (n, 0, 0)),
        ),
        compiler_params=_compiler_params(1),
    )(x_col, w1, b1)


# ----------------------------------------------------------------------------
# Kernel B: BN1-apply (fused scale/shift incl. time proj) + ReLU, then conv2
# (+bias, 3 dots of depth 3*Cp) and BN2 partial statistics.  The normalized
# activation never leaves the chip (sublane-aligned VMEM scratch with halo).
# ----------------------------------------------------------------------------
def _bn_relu_conv_stats_kernel(h1_ref, ss_ref, w_ref, b_ref,
                               h2_ref, s_ref, apad_ref):
    # h1_ref: (1, HW, Cp) bf16           ss_ref: (1, 2, Cp) f32 [scale, shift+t]
    # w_ref:  (3, 3*Cp, Cp) bf16         b_ref:  (1, Cp) f32
    # h2_ref: (1, HW, Cp) bf16           s_ref:  (1, 2, Cp) f32
    # apad_ref: VMEM scratch (H+2, LEFT+W+1, Cp) bf16
    Hp, Wsc, Cp = apad_ref.shape
    H = Hp - 2
    W = Wsc - LEFT - 1
    HW = H * W

    ss = ss_ref[0]
    a = jnp.maximum(h1_ref[0].astype(jnp.float32) * ss[0:1, :] + ss[1:2, :], 0.0)

    # Zero only the thin halo ring each step (interior is fully rewritten
    # below).  A one-time program_id==0 init would be unsafe when the batch
    # axis is sharded across TensorCores (each core has its own scratch).
    zrow = jnp.zeros((1, W + 2, Cp), apad_ref.dtype)
    apad_ref[0:1, LEFT - 1:LEFT + W + 1, :] = zrow
    apad_ref[H + 1:H + 2, LEFT - 1:LEFT + W + 1, :] = zrow
    zcol = jnp.zeros((H, 1, Cp), apad_ref.dtype)
    apad_ref[1:H + 1, LEFT - 1:LEFT, :] = zcol
    apad_ref[1:H + 1, LEFT + W:LEFT + W + 1, :] = zcol

    # Sublane-aligned interior store (column LEFT is a multiple of the bf16
    # 16-sublane tile) -> unmasked vst.
    apad_ref[1:H + 1, LEFT:LEFT + W, :] = a.reshape(H, W, Cp).astype(apad_ref.dtype)

    # Build the three W-shifted views once, concatenated along channels, and
    # reuse them for every dy: conv2 = 3 MXU dots of depth 3*Cp.
    apad = apad_ref[...]
    a3 = jnp.concatenate(
        [apad[:, LEFT - 1:LEFT - 1 + W, :],
         apad[:, LEFT:LEFT + W, :],
         apad[:, LEFT + 1:LEFT + 1 + W, :]], axis=-1)        # (H+2, W, 3*Cp)

    acc = jnp.broadcast_to(b_ref[...], (HW, Cp))
    for dy in range(3):                                       # static 3-row loop
        slab = a3[dy:dy + H].reshape(HW, 3 * Cp)
        acc = acc + jnp.dot(slab, w_ref[dy], preferred_element_type=jnp.float32)

    h2_ref[0] = acc.astype(h2_ref.dtype)
    s = jnp.sum(acc, axis=0, keepdims=True)
    c = acc - s * (1.0 / HW)
    s_ref[0] = jnp.concatenate(
        [s, jnp.sum(c * c, axis=0, keepdims=True)], axis=0)


def _bn_time_relu_conv_stats(h1, ss1, w2, b2, *, H, W, compute_dtype):
    N, HW, Cp = h1.shape
    return pl.pallas_call(
        _bn_relu_conv_stats_kernel,
        grid=(N,),
        in_specs=[
            pl.BlockSpec((1, HW, Cp), lambda n: (n, 0, 0)),
            pl.BlockSpec((1, 2, Cp), lambda n: (n, 0, 0)),
            pl.BlockSpec((3, 3 * Cp, Cp), lambda n: (0, 0, 0)),
            pl.BlockSpec((1, Cp), lambda n: (0, 0)),
        ],
        out_shape=(
            jax.ShapeDtypeStruct((N, HW, Cp), compute_dtype),
            jax.ShapeDtypeStruct((N, 2, Cp), jnp.float32),
        ),
        out_specs=(
            pl.BlockSpec((1, HW, Cp), lambda n: (n, 0, 0)),
            pl.BlockSpec((1, 2, Cp), lambda n: (n, 0, 0)),
        ),
        scratch_shapes=[pltpu.VMEM((H + 2, LEFT + W + 1, Cp), compute_dtype)],
        compiler_params=_compiler_params(1),
    )(h1, ss1, w2, b2)


# ----------------------------------------------------------------------------
# Kernel C: BN2-apply + ReLU (pure elementwise), row-tiled, final f32 output.
# ----------------------------------------------------------------------------
def _bn_relu_kernel(h_ref, ss_ref, y_ref):
    ss = ss_ref[0]
    y_ref[0] = jnp.maximum(
        h_ref[0].astype(jnp.float32) * ss[0:1, :] + ss[1:2, :], 0.0)


def _bn_relu_apply(h, ss):
    N, HW, Cp = h.shape
    tr = _pick_row_tile(HW)
    return pl.pallas_call(
        _bn_relu_kernel,
        grid=(N, HW // tr),
        in_specs=[
            pl.BlockSpec((1, tr, Cp), lambda n, r: (n, r, 0)),
            pl.BlockSpec((1, 2, Cp), lambda n, r: (0, 0, 0)),
        ],
        out_shape=jax.ShapeDtypeStruct((N, HW, Cp), jnp.float32),
        out_specs=pl.BlockSpec((1, tr, Cp), lambda n, r: (n, r, 0)),
        compiler_params=_compiler_params(2),
    )(h, ss)


# ----------------------------------------------------------------------------
# Host-side glue (tiny O(C) / O(N*C) math + layout prep)
# ----------------------------------------------------------------------------
def _fused_scale_shift(stats, hw, gamma_p, beta_p):
    # stats: (N, 2, Cp) with per-sample [sum, centered sum-of-squares].
    # Combine per-sample partials Welford-style (no E[x^2]-mean^2 cancellation).
    n = stats.shape[0]
    count = n * hw
    sums = stats[:, 0, :]
    sscs = stats[:, 1, :]
    mean = jnp.sum(sums, axis=0) / count
    m_n = sums / hw
    var = (jnp.sum(sscs, axis=0)
           + hw * jnp.sum((m_n - mean[None, :]) ** 2, axis=0)) / count
    var = jnp.maximum(var, 0.0)
    inv = lax.rsqrt(var + EPS)
    scale = gamma_p * inv
    shift = beta_p - mean * scale
    return scale, shift


def _prep_conv1_weight(w_oihw, kp, cp, dtype):
    cout, cin = w_oihw.shape[:2]
    w = jnp.transpose(w_oihw, (2, 3, 1, 0)).reshape(9 * cin, cout)  # [t*Cin+ci, co]
    w = jnp.pad(w, ((0, kp - 9 * cin), (0, cp - cout)))
    return w.astype(dtype)


def _prep_conv2_weight(w_oihw, cp, dtype):
    cout, cin = w_oihw.shape[:2]
    w = jnp.transpose(w_oihw, (2, 3, 1, 0))                   # (3, 3, Cin, Cout)
    w = jnp.pad(w, ((0, 0), (0, 0), (0, cp - cin), (0, cp - cout)))
    return w.reshape(3, 3 * cp, cp).astype(dtype)             # [dy, dx*Cp+ci, co]


def _pad_c(v, cpad):
    return jnp.pad(v.astype(jnp.float32), (0, cpad - v.shape[0]))


def time_double_conv(x_nchw, t_emb, params, compute_dtype=jnp.bfloat16):
    """Forward pass of TimeDoubleConv. x: (N,Cin,H,W), t_emb: (N,Dt) -> (N,Cout,H,W)."""
    N, Cin, H, W = x_nchw.shape
    Cout = params["conv1_w"].shape[0]
    Cp = _round_up(Cout, LANES)
    HW = H * W

    # NCHW -> NHWC, SAME zero pad, then host-side im2col for conv1 so the
    # kernel does a single K=9*Cin contraction (negligible extra HBM traffic
    # relative to the Cp=128-wide h1 write when Cin is small).
    x_nhwc = jnp.transpose(x_nchw, (0, 2, 3, 1)).astype(jnp.float32)
    xpad = jnp.pad(x_nhwc, ((0, 0), (1, 1), (1, 1), (0, 0)))
    cols = [xpad[:, dy:dy + H, dx:dx + W, :] for dy in range(3) for dx in range(3)]
    K = 9 * Cin
    Kp = _round_up(K, 8)
    x_col = jnp.concatenate(cols, axis=-1).reshape(N, HW, K)
    x_col = jnp.pad(x_col, ((0, 0), (0, 0), (0, Kp - K))).astype(compute_dtype)

    w1 = _prep_conv1_weight(params["conv1_w"], Kp, Cp, compute_dtype)
    b1 = _pad_c(params["conv1_b"], Cp).reshape(1, Cp)
    w2 = _prep_conv2_weight(params["conv2_w"], Cp, compute_dtype)
    b2 = _pad_c(params["conv2_b"], Cp).reshape(1, Cp)

    # Pass 1: conv1 + per-sample BN1 partial stats (h1 kept bf16 in HBM).
    h1, st1 = _conv1_stats(x_col, w1, b1, compute_dtype)

    # Tiny host math: fused BN1 scale/shift; fold the time projection into the
    # per-sample shift so the kernels never see the time MLP.
    scale1, shift1 = _fused_scale_shift(
        st1, HW, _pad_c(params["bn1_g"], Cp), _pad_c(params["bn1_b"], Cp))
    tproj = (t_emb.astype(jnp.float32) @ params["time_w"].astype(jnp.float32).T
             + params["time_b"].astype(jnp.float32))              # (N, Cout)
    tproj = jnp.pad(tproj, ((0, 0), (0, Cp - Cout)))
    ss1 = jnp.stack(
        [jnp.broadcast_to(scale1, (N, Cp)), shift1[None, :] + tproj], axis=1)

    # Pass 2: BN1+time+ReLU fused with conv2 + per-sample BN2 partial stats.
    h2, st2 = _bn_time_relu_conv_stats(h1, ss1, w2, b2, H=H, W=W,
                                       compute_dtype=compute_dtype)

    scale2, shift2 = _fused_scale_shift(
        st2, HW, _pad_c(params["bn2_g"], Cp), _pad_c(params["bn2_b"], Cp))
    ss2 = jnp.stack([scale2, shift2], axis=0)[None]               # (1, 2, Cp)

    # Pass 3: BN2 + ReLU (lane-dense padded output; real channels sliced below).
    y = _bn_relu_apply(h2, ss2)                                   # (N, HW, Cp) f32

    # TODO(synk): BatchNorm running_mean/var buffer updates (training-mode side
    # effect) are not modeled; they do not affect the forward output.
    y = y.reshape(N, H, W, Cp)[..., :Cout]
    return jnp.transpose(y, (0, 3, 1, 2))                         # NCHW


# ----------------------------------------------------------------------------
# Pure-JAX reference (conv inputs rounded to the same MXU compute dtype)
# ----------------------------------------------------------------------------
def _bn_train(h, gamma, beta):
    mean = h.mean(axis=(0, 2, 3), keepdims=True)
    var = ((h - mean) ** 2).mean(axis=(0, 2, 3), keepdims=True)
    return ((h - mean) * lax.rsqrt(var + EPS) * gamma[None, :, None, None]
            + beta[None, :, None, None])


def time_double_conv_ref(x, t_emb, p, compute_dtype=jnp.bfloat16):
    dn = ("NCHW", "OIHW", "NCHW")

    def conv(inp, w):
        return lax.conv_general_dilated(
            inp.astype(compute_dtype).astype(jnp.float32),
            w.astype(compute_dtype).astype(jnp.float32),
            (1, 1), "SAME", dimension_numbers=dn,
            precision=lax.Precision.HIGHEST)

    h = conv(x, p["conv1_w"]) + p["conv1_b"][None, :, None, None]
    h = _bn_train(h, p["bn1_g"], p["bn1_b"])
    tproj = t_emb @ p["time_w"].T + p["time_b"]
    h = jnp.maximum(h + tproj[:, :, None, None], 0.0)
    h = conv(h, p["conv2_w"]) + p["conv2_b"][None, :, None, None]
    h = _bn_train(h, p["bn2_g"], p["bn2_b"])
    return jnp.maximum(h, 0.0)


# ----------------------------------------------------------------------------
if __name__ == "__main__":
    N, Cin, Cout, H, W, Dt = 2, 4, 8, 16, 16, 32

    key = jax.random.PRNGKey(0)
    ks = jax.random.split(key, 12)
    params = {
        "conv1_w": jax.random.normal(ks[0], (Cout, Cin, 3, 3), jnp.float32) * 0.2,
        "conv1_b": jax.random.normal(ks[1], (Cout,), jnp.float32) * 0.1,
        "bn1_g":   jnp.ones((Cout,), jnp.float32)
                   + 0.1 * jax.random.normal(ks[2], (Cout,), jnp.float32),
        "bn1_b":   0.1 * jax.random.normal(ks[3], (Cout,), jnp.float32),
        "time_w":  jax.random.normal(ks[4], (Cout, Dt), jnp.float32) * 0.2,
        "time_b":  jax.random.normal(ks[5], (Cout,), jnp.float32) * 0.1,
        "conv2_w": jax.random.normal(ks[6], (Cout, Cout, 3, 3), jnp.float32) * 0.2,
        "conv2_b": jax.random.normal(ks[7], (Cout,), jnp.float32) * 0.1,
        "bn2_g":   jnp.ones((Cout,), jnp.float32)
                   + 0.1 * jax.random.normal(ks[8], (Cout,), jnp.float32),
        "bn2_b":   0.1 * jax.random.normal(ks[9], (Cout,), jnp.float32),
    }
    x = jax.random.normal(ks[10], (N, Cin, H, W), jnp.float32)
    t_emb = jax.random.normal(ks[11], (N, Dt), jnp.float32)

    fwd = jax.jit(time_double_conv)
    out = jax.block_until_ready(fwd(x, t_emb, params))
    ref = jax.block_until_ready(time_double_conv_ref(x, t_emb, params))

    assert out.shape == (N, Cout, H, W), out.shape
    max_err = float(jnp.max(jnp.abs(out - ref)))
    if not jnp.allclose(out, ref, atol=2e-2, rtol=2e-2):
        raise SystemExit(f"mismatch vs reference: max abs err = {max_err}")
    print("KERNEL_OK")
</pallas_src>

<mosaic_0001>
module attributes {stable_mosaic.version = 11 : i64} {
  func.func @_conv1_stats_kernel(%arg0: i32, %arg1: memref<1x256x40xbf16, #tpu.memory_space<vmem>>, %arg2: memref<40x128xbf16, #tpu.memory_space<vmem>>, %arg3: memref<1x128xf32, #tpu.memory_space<vmem>>, %arg4: memref<1x256x128xbf16, #tpu.memory_space<vmem>>, %arg5: memref<1x2x128xf32, #tpu.memory_space<vmem>>) attributes {dimension_semantics = [#tpu.dimension_semantics<parallel>], iteration_bounds = array<i64: 2>, scalar_prefetch = 0 : i64, scratch_operands = 0 : i64, tpu.core_type = #tpu.core_type<tc>, window_params = [{transform_indices = @transform_0, window_bounds = array<i64: 1, 256, 40>}, {pipeline_mode = #tpu.pipeline_mode<synchronous>, transform_indices = @transform_1, window_bounds = array<i64: 40, 128>}, {pipeline_mode = #tpu.pipeline_mode<synchronous>, transform_indices = @transform_2, window_bounds = array<i64: 1, 128>}, {transform_indices = @transform_3, window_bounds = array<i64: 1, 256, 128>}, {transform_indices = @transform_4, window_bounds = array<i64: 1, 2, 128>}]} {
    %c0 = arith.constant 0 : index
    %c0_0 = arith.constant 0 : index
    %c0_1 = arith.constant 0 : index
    %0 = vector.load %arg1[%c0, %c0_0, %c0_1] : memref<1x256x40xbf16, #tpu.memory_space<vmem>>, vector<1x256x40xbf16>
    %1 = vector.shape_cast %0 : vector<1x256x40xbf16> to vector<256x40xbf16>
    %c0_2 = arith.constant 0 : index
    %c0_3 = arith.constant 0 : index
    %2 = vector.load %arg2[%c0_2, %c0_3] : memref<40x128xbf16, #tpu.memory_space<vmem>>, vector<40x128xbf16>
    %cst = arith.constant dense<0.000000e+00> : vector<256x128xf32>
    %3 = tpu.matmul %1, %2, %cst {dimension_numbers = #tpu.dot_dimension_numbers<[1], [0], [0], [1], [0, 0, 1, 1], [], []>} : vector<256x40xbf16>, vector<40x128xbf16>, vector<256x128xf32> -> vector<256x128xf32>
    %c0_4 = arith.constant 0 : index
    %c0_5 = arith.constant 0 : index
    %4 = vector.load %arg3[%c0_4, %c0_5] : memref<1x128xf32, #tpu.memory_space<vmem>>, vector<1x128xf32>
    %5 = vector.broadcast %4 : vector<1x128xf32> to vector<256x128xf32>
    %6 = arith.addf %3, %5 : vector<256x128xf32>
    %7 = arith.truncf %6 : vector<256x128xf32> to vector<256x128xbf16>
    %c0_6 = arith.constant 0 : index
    %c0_7 = arith.constant 0 : index
    %c0_8 = arith.constant 0 : index
    %8 = vector.load %arg4[%c0_6, %c0_7, %c0_8] : memref<1x256x128xbf16, #tpu.memory_space<vmem>>, vector<1x256x128xbf16>
    %9 = vector.shape_cast %8 : vector<1x256x128xbf16> to vector<256x128xbf16>
    %10 = vector.shape_cast %7 : vector<256x128xbf16> to vector<1x256x128xbf16>
    tpu.vector_store %arg4[%c0_6, %c0_7, %c0_8], %10 {strides = array<i32>} : memref<1x256x128xbf16, #tpu.memory_space<vmem>>, vector<1x256x128xbf16>,
    %cst_9 = arith.constant dense<0.000000e+00> : vector<128xf32>
    %11 = vector.multi_reduction <add>, %6, %cst_9 [0] : vector<256x128xf32> to vector<128xf32>
    %12 = vector.shape_cast %11 : vector<128xf32> to vector<1x128xf32>
    %cst_10 = arith.constant 3.906250e-03 : f32
    %13 = vector.broadcast %cst_10 : f32 to vector<1x128xf32>
    %14 = arith.mulf %12, %13 : vector<1x128xf32>
    %15 = vector.broadcast %14 : vector<1x128xf32> to vector<256x128xf32>
    %16 = arith.subf %6, %15 : vector<256x128xf32>
    %17 = arith.mulf %16, %16 : vector<256x128xf32>
    %cst_11 = arith.constant dense<0.000000e+00> : vector<128xf32>
    %18 = vector.multi_reduction <add>, %17, %cst_11 [0] : vector<256x128xf32> to vector<128xf32>
    %19 = vector.shape_cast %18 : vector<128xf32> to vector<1x128xf32>
    %20 = tpu.concatenate %12, %19 in 0 : vector<1x128xf32>, vector<1x128xf32> -> vector<2x128xf32>
    %c0_12 = arith.constant 0 : index
    %c0_13 = arith.constant 0 : index
    %c0_14 = arith.constant 0 : index
    %21 = vector.load %arg5[%c0_12, %c0_13, %c0_14] : memref<1x2x128xf32, #tpu.memory_space<vmem>>, vector<1x2x128xf32>
    %22 = vector.shape_cast %21 : vector<1x2x128xf32> to vector<2x128xf32>
    %23 = vector.shape_cast %20 : vector<2x128xf32> to vector<1x2x128xf32>
    tpu.vector_store %arg5[%c0_12, %c0_13, %c0_14], %23 {strides = array<i32>} : memref<1x2x128xf32, #tpu.memory_space<vmem>>, vector<1x2x128xf32>,
    return
  }
  func.func @transform_0(%arg0: i32) -> (i32, i32, i32) {
    %c0_i32 = arith.constant 0 : i32
    %c0_i32_0 = arith.constant 0 : i32
    %c0_i32_1 = arith.constant 0 : i32
    return %arg0, %c0_i32, %c0_i32_0 : i32, i32, i32
  }
  func.func @transform_1(%arg0: i32) -> (i32, i32) {
    %c0_i32 = arith.constant 0 : i32
    %c0_i32_0 = arith.constant 0 : i32
    %c0_i32_1 = arith.constant 0 : i32
    return %c0_i32, %c0_i32_0 : i32, i32
  }
  func.func @transform_2(%arg0: i32) -> (i32, i32) {
    %c0_i32 = arith.constant 0 : i32
    %c0_i32_0 = arith.constant 0 : i32
    %c0_i32_1 = arith.constant 0 : i32
    return %c0_i32, %c0_i32_0 : i32, i32
  }
  func.func @transform_3(%arg0: i32) -> (i32, i32, i32) {
    %c0_i32 = arith.constant 0 : i32
    %c0_i32_0 = arith.constant 0 : i32
    %c0_i32_1 = arith.constant 0 : i32
    return %arg0, %c0_i32, %c0_i32_0 : i32, i32, i32
  }
  func.func @transform_4(%arg0: i32) -> (i32, i32, i32) {
    %c0_i32 = arith.constant 0 : i32
    %c0_i32_0 = arith.constant 0 : i32
    %c0_i32_1 = arith.constant 0 : i32
    return %arg0, %c0_i32, %c0_i32_0 : i32, i32, i32
  }
}

module attributes {stable_mosaic.version = 11 : i64} {
  func.func @_bn_relu_conv_stats_kernel(%arg0: i32, %arg1: memref<1x256x128xbf16, #tpu.memory_space<vmem>>, %arg2: memref<1x2x128xf32, #tpu.memory_space<vmem>>, %arg3: memref<3x384x128xbf16, #tpu.memory_space<vmem>>, %arg4: memref<1x128xf32, #tpu.memory_space<vmem>>, %arg5: memref<1x256x128xbf16, #tpu.memory_space<vmem>>, %arg6: memref<1x2x128xf32, #tpu.memory_space<vmem>>, %arg7: memref<18x33x128xbf16, #tpu.memory_space<vmem>>) attributes {dimension_semantics = [#tpu.dimension_semantics<parallel>], iteration_bounds = array<i64: 2>, scalar_prefetch = 0 : i64, scratch_operands = 1 : i64, tpu.core_type = #tpu.core_type<tc>, window_params = [{transform_indices = @transform_0, window_bounds = array<i64: 1, 256, 128>}, {transform_indices = @transform_1, window_bounds = array<i64: 1, 2, 128>}, {pipeline_mode = #tpu.pipeline_mode<synchronous>, transform_indices = @transform_2, window_bounds = array<i64: 3, 384, 128>}, {pipeline_mode = #tpu.pipeline_mode<synchronous>, transform_indices = @transform_3, window_bounds = array<i64: 1, 128>}, {transform_indices = @transform_4, window_bounds = array<i64: 1, 256, 128>}, {transform_indices = @transform_5, window_bounds = array<i64: 1, 2, 128>}]} {
    %c0 = arith.constant 0 : index
    %c0_0 = arith.constant 0 : index
    %c0_1 = arith.constant 0 : index
    %0 = vector.load %arg2[%c0, %c0_0, %c0_1] : memref<1x2x128xf32, #tpu.memory_space<vmem>>, vector<1x2x128xf32>
    %1 = vector.shape_cast %0 : vector<1x2x128xf32> to vector<2x128xf32>
    %c0_2 = arith.constant 0 : index
    %c0_3 = arith.constant 0 : index
    %c0_4 = arith.constant 0 : index
    %2 = vector.load %arg1[%c0_2, %c0_3, %c0_4] : memref<1x256x128xbf16, #tpu.memory_space<vmem>>, vector<1x256x128xbf16>
    %3 = vector.shape_cast %2 : vector<1x256x128xbf16> to vector<256x128xbf16>
    %4 = arith.extf %3 : vector<256x128xbf16> to vector<256x128xf32>
    %5 = vector.extract_strided_slice %1 {offsets = [0, 0], sizes = [1, 128], strides = [1, 1]} : vector<2x128xf32> to vector<1x128xf32>
    %6 = vector.broadcast %5 : vector<1x128xf32> to vector<256x128xf32>
    %7 = arith.mulf %4, %6 : vector<256x128xf32>
    %8 = vector.extract_strided_slice %1 {offsets = [1, 0], sizes = [1, 128], strides = [1, 1]} : vector<2x128xf32> to vector<1x128xf32>
    %9 = vector.broadcast %8 : vector<1x128xf32> to vector<256x128xf32>
    %10 = arith.addf %7, %9 : vector<256x128xf32>
    %cst = arith.constant 0.000000e+00 : f32
    %11 = vector.broadcast %cst : f32 to vector<256x128xf32>
    %12 = arith.maximumf %10, %11 : vector<256x128xf32>
    %cst_5 = arith.constant 0.000000e+00 : bf16
    %13 = vector.broadcast %cst_5 : bf16 to vector<1x18x128xbf16>
    %c0_6 = arith.constant 0 : index
    %c15 = arith.constant 15 : index
    %c0_7 = arith.constant 0 : index
    %14 = vector.load %arg7[%c0_6, %c15, %c0_7] : memref<18x33x128xbf16, #tpu.memory_space<vmem>>, vector<1x18x128xbf16>
    tpu.vector_store %arg7[%c0_6, %c15, %c0_7], %13 {strides = array<i32>} : memref<18x33x128xbf16, #tpu.memory_space<vmem>>, vector<1x18x128xbf16>,
    %c17 = arith.constant 17 : index
    %c15_8 = arith.constant 15 : index
    %c0_9 = arith.constant 0 : index
    %15 = vector.load %arg7[%c17, %c15_8, %c0_9] : memref<18x33x128xbf16, #tpu.memory_space<vmem>>, vector<1x18x128xbf16>
    tpu.vector_store %arg7[%c17, %c15_8, %c0_9], %13 {strides = array<i32>} : memref<18x33x128xbf16, #tpu.memory_space<vmem>>, vector<1x18x128xbf16>,
    %cst_10 = arith.constant 0.000000e+00 : bf16
    %16 = vector.broadcast %cst_10 : bf16 to vector<16x1x128xbf16>
    %c1 = arith.constant 1 : index
    %c15_11 = arith.constant 15 : index
    %c0_12 = arith.constant 0 : index
    %17 = vector.load %arg7[%c1, %c15_11, %c0_12] : memref<18x33x128xbf16, #tpu.memory_space<vmem>>, vector<16x1x128xbf16>
    tpu.vector_store %arg7[%c1, %c15_11, %c0_12], %16 {strides = array<i32>} : memref<18x33x128xbf16, #tpu.memory_space<vmem>>, vector<16x1x128xbf16>,
    %c1_13 = arith.constant 1 : index
    %c32 = arith.constant 32 : index
    %c0_14 = arith.constant 0 : index
    %18 = vector.load %arg7[%c1_13, %c32, %c0_14] : memref<18x33x128xbf16, #tpu.memory_space<vmem>>, vector<16x1x128xbf16>
    tpu.vector_store %arg7[%c1_13, %c32, %c0_14], %16 {strides = array<i32>} : memref<18x33x128xbf16, #tpu.memory_space<vmem>>, vector<16x1x128xbf16>,
    %19 = vector.shape_cast %12 : vector<256x128xf32> to vector<16x16x128xf32>
    %20 = arith.truncf %19 : vector<16x16x128xf32> to vector<16x16x128xbf16>
    %c1_15 = arith.constant 1 : index
    %c16 = arith.constant 16 : index
    %c0_16 = arith.constant 0 : index
    %21 = vector.load %arg7[%c1_15, %c16, %c0_16] : memref<18x33x128xbf16, #tpu.memory_space<vmem>>, vector<16x16x128xbf16>
    tpu.vector_store %arg7[%c1_15, %c16, %c0_16], %20 {strides = array<i32>} : memref<18x33x128xbf16, #tpu.memory_space<vmem>>, vector<16x16x128xbf16>,
    %c0_17 = arith.constant 0 : index
    %c0_18 = arith.constant 0 : index
    %c0_19 = arith.constant 0 : index
    %22 = vector.load %arg7[%c0_17, %c0_18, %c0_19] : memref<18x33x128xbf16, #tpu.memory_space<vmem>>, vector<18x33x128xbf16>
    %23 = vector.extract_strided_slice %22 {offsets = [0, 15, 0], sizes = [18, 16, 128], strides = [1, 1, 1]} : vector<18x33x128xbf16> to vector<18x16x128xbf16>
    %24 = vector.extract_strided_slice %22 {offsets = [0, 16, 0], sizes = [18, 16, 128], strides = [1, 1, 1]} : vector<18x33x128xbf16> to vector<18x16x128xbf16>
    %25 = vector.extract_strided_slice %22 {offsets = [0, 17, 0], sizes = [18, 16, 128], strides = [1, 1, 1]} : vector<18x33x128xbf16> to vector<18x16x128xbf16>
    %26 = tpu.concatenate %23, %24, %25 in 2 : vector<18x16x128xbf16>, vector<18x16x128xbf16>, vector<18x16x128xbf16> -> vector<18x16x384xbf16>
    %c0_20 = arith.constant 0 : index
    %c0_21 = arith.constant 0 : index
    %27 = vector.load %arg4[%c0_20, %c0_21] : memref<1x128xf32, #tpu.memory_space<vmem>>, vector<1x128xf32>
    %28 = vector.shape_cast %27 : vector<1x128xf32> to vector<1x128xf32>
    %29 = vector.broadcast %28 : vector<1x128xf32> to vector<256x128xf32>
    %30 = vector.extract_strided_slice %26 {offsets = [0, 0, 0], sizes = [16, 16, 384], strides = [1, 1, 1]} : vector<18x16x384xbf16> to vector<16x16x384xbf16>
    %31 = vector.shape_cast %30 : vector<16x16x384xbf16> to vector<256x384xbf16>
    %c0_22 = arith.constant 0 : index
    %c0_23 = arith.constant 0 : index
    %c0_24 = arith.constant 0 : index
    %32 = vector.load %arg3[%c0_22, %c0_23, %c0_24] : memref<3x384x128xbf16, #tpu.memory_space<vmem>>, vector<1x384x128xbf16>
    %33 = vector.shape_cast %32 : vector<1x384x128xbf16> to vector<384x128xbf16>
    %cst_25 = arith.constant dense<0.000000e+00> : vector<256x128xf32>
    %34 = tpu.matmul %31, %33, %cst_25 {dimension_numbers = #tpu.dot_dimension_numbers<[1], [0], [0], [1], [0, 0, 1, 1], [], []>} : vector<256x384xbf16>, vector<384x128xbf16>, vector<256x128xf32> -> vector<256x128xf32>
    %35 = arith.addf %29, %34 : vector<256x128xf32>
    %36 = vector.extract_strided_slice %26 {offsets = [1, 0, 0], sizes = [16, 16, 384], strides = [1, 1, 1]} : vector<18x16x384xbf16> to vector<16x16x384xbf16>
    %37 = vector.shape_cast %36 : vector<16x16x384xbf16> to vector<256x384xbf16>
    %c1_26 = arith.constant 1 : index
    %c0_27 = arith.constant 0 : index
    %c0_28 = arith.constant 0 : index
    %38 = vector.load %arg3[%c1_26, %c0_27, %c0_28] : memref<3x384x128xbf16, #tpu.memory_space<vmem>>, vector<1x384x128xbf16>
    %39 = vector.shape_cast %38 : vector<1x384x128xbf16> to vector<384x128xbf16>
    %cst_29 = arith.constant dense<0.000000e+00> : vector<256x128xf32>
    %40 = tpu.matmul %37, %39, %cst_29 {dimension_numbers = #tpu.dot_dimension_numbers<[1], [0], [0], [1], [0, 0, 1, 1], [], []>} : vector<256x384xbf16>, vector<384x128xbf16>, vector<256x128xf32> -> vector<256x128xf32>
    %41 = arith.addf %35, %40 : vector<256x128xf32>
    %42 = vector.extract_strided_slice %26 {offsets = [2, 0, 0], sizes = [16, 16, 384], strides = [1, 1, 1]} : vector<18x16x384xbf16> to vector<16x16x384xbf16>
    %43 = vector.shape_cast %42 : vector<16x16x384xbf16> to vector<256x384xbf16>
    %c2 = arith.constant 2 : index
    %c0_30 = arith.constant 0 : index
    %c0_31 = arith.constant 0 : index
    %44 = vector.load %arg3[%c2, %c0_30, %c0_31] : memref<3x384x128xbf16, #tpu.memory_space<vmem>>, vector<1x384x128xbf16>
    %45 = vector.shape_cast %44 : vector<1x384x128xbf16> to vector<384x128xbf16>
    %cst_32 = arith.constant dense<0.000000e+00> : vector<256x128xf32>
    %46 = tpu.matmul %43, %45, %cst_32 {dimension_numbers = #tpu.dot_dimension_numbers<[1], [0], [0], [1], [0, 0, 1, 1], [], []>} : vector<256x384xbf16>, vector<384x128xbf16>, vector<256x128xf32> -> vector<256x128xf32>
    %47 = arith.addf %41, %46 : vector<256x128xf32>
    %48 = arith.truncf %47 : vector<256x128xf32> to vector<256x128xbf16>
    %c0_33 = arith.constant 0 : index
    %c0_34 = arith.constant 0 : index
    %c0_35 = arith.constant 0 : index
    %49 = vector.load %arg5[%c0_33, %c0_34, %c0_35] : memref<1x256x128xbf16, #tpu.memory_space<vmem>>, vector<1x256x128xbf16>
    %50 = vector.shape_cast %49 : vector<1x256x128xbf16> to vector<256x128xbf16>
    %51 = vector.shape_cast %48 : vector<256x128xbf16> to vector<1x256x128xbf16>
    tpu.vector_store %arg5[%c0_33, %c0_34, %c0_35], %51 {strides = array<i32>} : memref<1x256x128xbf16, #tpu.memory_space<vmem>>, vector<1x256x128xbf16>,
    %cst_36 = arith.constant dense<0.000000e+00> : vector<128xf32>
    %52 = vector.multi_reduction <add>, %47, %cst_36 [0] : vector<256x128xf32> to vector<128xf32>
    %53 = vector.shape_cast %52 : vector<128xf32> to vector<1x128xf32>
    %cst_37 = arith.constant 3.906250e-03 : f32
    %54 = vector.broadcast %cst_37 : f32 to vector<1x128xf32>
    %55 = arith.mulf %53, %54 : vector<1x128xf32>
    %56 = vector.broadcast %55 : vector<1x128xf32> to vector<256x128xf32>
    %57 = arith.subf %47, %56 : vector<256x128xf32>
    %58 = arith.mulf %57, %57 : vector<256x128xf32>
    %cst_38 = arith.constant dense<0.000000e+00> : vector<128xf32>
    %59 = vector.multi_reduction <add>, %58, %cst_38 [0] : vector<256x128xf32> to vector<128xf32>
    %60 = vector.shape_cast %59 : vector<128xf32> to vector<1x128xf32>
    %61 = tpu.concatenate %53, %60 in 0 : vector<1x128xf32>, vector<1x128xf32> -> vector<2x128xf32>
    %c0_39 = arith.constant 0 : index
    %c0_40 = arith.constant 0 : index
    %c0_41 = arith.constant 0 : index
    %62 = vector.load %arg6[%c0_39, %c0_40, %c0_41] : memref<1x2x128xf32, #tpu.memory_space<vmem>>, vector<1x2x128xf32>
    %63 = vector.shape_cast %62 : vector<1x2x128xf32> to vector<2x128xf32>
    %64 = vector.shape_cast %61 : vector<2x128xf32> to vector<1x2x128xf32>
    tpu.vector_store %arg6[%c0_39, %c0_40, %c0_41], %64 {strides = array<i32>} : memref<1x2x128xf32, #tpu.memory_space<vmem>>, vector<1x2x128xf32>,
    return
  }
  func.func @transform_0(%arg0: i32) -> (i32, i32, i32) {
    %c0_i32 = arith.constant 0 : i32
    %c0_i32_0 = arith.constant 0 : i32
    %c0_i32_1 = arith.constant 0 : i32
    return %arg0, %c0_i32, %c0_i32_0 : i32, i32, i32
  }
  func.func @transform_1(%arg0: i32) -> (i32, i32, i32) {
    %c0_i32 = arith.constant 0 : i32
    %c0_i32_0 = arith.constant 0 : i32
    %c0_i32_1 = arith.constant 0 : i32
    return %arg0, %c0_i32, %c0_i32_0 : i32, i32, i32
  }
  func.func @transform_2(%arg0: i32) -> (i32, i32, i32) {
    %c0_i32 = arith.constant 0 : i32
    %c0_i32_0 = arith.constant 0 : i32
    %c0_i32_1 = arith.constant 0 : i32
    %c0_i32_2 = arith.constant 0 : i32
    return %c0_i32, %c0_i32_0, %c0_i32_1 : i32, i32, i32
  }
  func.func @transform_3(%arg0: i32) -> (i32, i32) {
    %c0_i32 = arith.constant 0 : i32
    %c0_i32_0 = arith.constant 0 : i32
    %c0_i32_1 = arith.constant 0 : i32
    return %c0_i32, %c0_i32_0 : i32, i32
  }
  func.func @transform_4(%arg0: i32) -> (i32, i32, i32) {
    %c0_i32 = arith.constant 0 : i32
    %c0_i32_0 = arith.constant 0 : i32
    %c0_i32_1 = arith.constant 0 : i32
    return %arg0, %c0_i32, %c0_i32_0 : i32, i32, i32
  }
  func.func @transform_5(%arg0: i32) -> (i32, i32, i32) {
    %c0_i32 = arith.constant 0 : i32
    %c0_i32_0 = arith.constant 0 : i32
    %c0_i32_1 = arith.constant 0 : i32
    return %arg0, %c0_i32, %c0_i32_0 : i32, i32, i32
  }
}

module attributes {stable_mosaic.version = 11 : i64} {
  func.func @_bn_relu_kernel(%arg0: i32, %arg1: i32, %arg2: memref<1x256x128xbf16, #tpu.memory_space<vmem>>, %arg3: memref<1x2x128xf32, #tpu.memory_space<vmem>>, %arg4: memref<1x256x128xf32, #tpu.memory_space<vmem>>) attributes {dimension_semantics = [#tpu.dimension_semantics<parallel>, #tpu.dimension_semantics<parallel>], iteration_bounds = array<i64: 2, 1>, scalar_prefetch = 0 : i64, scratch_operands = 0 : i64, tpu.core_type = #tpu.core_type<tc>, window_params = [{transform_indices = @transform_0, window_bounds = array<i64: 1, 256, 128>}, {pipeline_mode = #tpu.pipeline_mode<synchronous>, transform_indices = @transform_1, window_bounds = array<i64: 1, 2, 128>}, {transform_indices = @transform_2, window_bounds = array<i64: 1, 256, 128>}]} {
    %c0 = arith.constant 0 : index
    %c0_0 = arith.constant 0 : index
    %c0_1 = arith.constant 0 : index
    %0 = vector.load %arg3[%c0, %c0_0, %c0_1] : memref<1x2x128xf32, #tpu.memory_space<vmem>>, vector<1x2x128xf32>
    %1 = vector.shape_cast %0 : vector<1x2x128xf32> to vector<2x128xf32>
    %c0_2 = arith.constant 0 : index
    %c0_3 = arith.constant 0 : index
    %c0_4 = arith.constant 0 : index
    %2 = vector.load %arg2[%c0_2, %c0_3, %c0_4] : memref<1x256x128xbf16, #tpu.memory_space<vmem>>, vector<1x256x128xbf16>
    %3 = vector.shape_cast %2 : vector<1x256x128xbf16> to vector<256x128xbf16>
    %4 = arith.extf %3 : vector<256x128xbf16> to vector<256x128xf32>
    %5 = vector.extract_strided_slice %1 {offsets = [0, 0], sizes = [1, 128], strides = [1, 1]} : vector<2x128xf32> to vector<1x128xf32>
    %6 = vector.broadcast %5 : vector<1x128xf32> to vector<256x128xf32>
    %7 = arith.mulf %4, %6 : vector<256x128xf32>
    %8 = vector.extract_strided_slice %1 {offsets = [1, 0], sizes = [1, 128], strides = [1, 1]} : vector<2x128xf32> to vector<1x128xf32>
    %9 = vector.broadcast %8 : vector<1x128xf32> to vector<256x128xf32>
    %10 = arith.addf %7, %9 : vector<256x128xf32>
    %cst = arith.constant 0.000000e+00 : f32
    %11 = vector.broadcast %cst : f32 to vector<256x128xf32>
    %12 = arith.maximumf %10, %11 : vector<256x128xf32>
    %c0_5 = arith.constant 0 : index
    %c0_6 = arith.constant 0 : index
    %c0_7 = arith.constant 0 : index
    %13 = vector.load %arg4[%c0_5, %c0_6, %c0_7] : memref<1x256x128xf32, #tpu.memory_space<vmem>>, vector<1x256x128xf32>
    %14 = vector.shape_cast %13 : vector<1x256x128xf32> to vector<256x128xf32>
    %15 = vector.shape_cast %12 : vector<256x128xf32> to vector<1x256x128xf32>
    tpu.vector_store %arg4[%c0_5, %c0_6, %c0_7], %15 {strides = array<i32>} : memref<1x256x128xf32, #tpu.memory_space<vmem>>, vector<1x256x128xf32>,
    return
  }
  func.func @transform_0(%arg0: i32, %arg1: i32) -> (i32, i32, i32) {
    %c0_i32 = arith.constant 0 : i32
    %c0_i32_0 = arith.constant 0 : i32
    return %arg0, %arg1, %c0_i32 : i32, i32, i32
  }
  func.func @transform_1(%arg0: i32, %arg1: i32) -> (i32, i32, i32) {
    %c0_i32 = arith.constant 0 : i32
    %c0_i32_0 = arith.constant 0 : i32
    %c0_i32_1 = arith.constant 0 : i32
    %c0_i32_2 = arith.constant 0 : i32
    return %c0_i32, %c0_i32_0, %c0_i32_1 : i32, i32, i32
  }
  func.func @transform_2(%arg0: i32, %arg1: i32) -> (i32, i32, i32) {
    %c0_i32 = arith.constant 0 : i32
    %c0_i32_0 = arith.constant 0 : i32
    return %arg0, %arg1, %c0_i32 : i32, i32, i32
  }
}

</mosaic_0001>

<bundles_post_ra>
// kernel: time_double_conv.3
= control target key start
LH: loop header
LB: loop body
LE: loop exit
PB: predicated region body
PF: predicated region fallthrough
CT: control target
= control target key end

     0   :  { %s1046_s15 = smov 0   ;;  %s1370_s0 = inlined_call_operand.vmem [shape: bf16[2,256,40], index: 0, kind: input, shape index: {}]   ;;  %s1371_s1 = inlined_call_operand.vmem [shape: bf16[40,128], index: 1, kind: input, shape index: {}]   ;;  %s1372_s2 = inlined_call_operand.vmem [shape: f32[1,128], index: 2, kind: input, shape index: {}]   ;;  %s1373_s3 = inlined_call_operand.vmem [shape: bf16[2,256,128], index: 3, kind: output, shape index: {0}]   ;;  %s1374_s4 = inlined_call_operand.vmem [shape: f32[2,2,128], index: 4, kind: output, shape index: {1}]  }
   0x1 LB: > { %s780_s16 = sadd.s32 4294967295, %s1019_s15   ;;  %p784_p0 = scmp.ge.s32.totalorder %s1019_s15, 1  ;;  %s1019_s15 = sphi %s1046_s15, %s15_s15  }
   0x2   : > { %p165_p1 = scmp.lt.s32.totalorder %s1019_s15, 3 }
   0x4   : > { %p166_p2 = pnand %p784_p0, %p165_p1 }
   0x5   : > { %p195_p3 = scmp.lt.s32.totalorder (!%p166_p2), %s780_s16, 1 }
   0x6   : > { %169 = sbr.rel (%p166_p2) target bundleno = 356 (0x164), region = 32 }
   0xb   : > { %v246_v0 = vld [vmem:[%s1371_s1 + $0x10] sm:$0xf]  ;;  %vm395_vm0 = vcmask 1043456   ;;  %s1376_s16 = smov (!%p195_p3, %s780_s16), 1  ;;  %v899_v4 = vld [vmem:[%s1371_s1 + $0x8] sm:$0xff]  ;;  %v898_v5 = vld [vmem:[%s1371_s1] sm:$0xff] }
   0xc   : > { %v340_v1 = vunpack.c.l.b16 %v246_v0  ;;  %s880_s21 = sshll.u32 %s1376_s16, 7  ;;  %vm346_vm1 = vcmask 326656   ;;  %v1108_v24 = vld [vmem:[%s1372_s2] ss:$0 sm:$0xff]  ;;  %s789_s6 = sshll.u32 %s1376_s16, 1  ;;  %vm691_vm2 = vcmask 1040384  }
   0xd   : > { %s1071_s26 = scalar_lea.vmem %s1370_s0, %s880_s21  ;;  %s1127_s5 = scalar_lea.vmem %s1373_s3, %s880_s21 }
   0xe   : > { %v343_v2 = vpack.c.b16 %v340_v1, %v340_v1  ;;  %v882_v6 = vld [vmem:[%s1071_s26] sm:$0xff]  ;;  %v883_v10 = vld [vmem:[%s1071_s26 + $0x8] sm:$0xff]  ;;  %v884_v14 = vld [vmem:[%s1071_s26 + $0x10] sm:$0xff]  ;;  %s208_s9 = scalar_lea.vmem %s1374_s4, %s789_s6 }
   0xf   : > { %v886_v7 = vld [vmem:[%s1071_s26 + $0x20] sm:$0xff]  ;;  %v887_v11 = vld [vmem:[%s1071_s26 + $0x28] sm:$0xff]  ;;  %v888_v15 = vld [vmem:[%s1071_s26 + $0x30] sm:$0xff] }
  0x10   : > { %v397_v3 = vsel %vm395_vm0, %v343_v2, 0  ;;  %v890_v8 = vld [vmem:[%s1071_s26 + $0x40] sm:$0xff]  ;;  %v891_v12 = vld [vmem:[%s1071_s26 + $0x48] sm:$0xff]  ;;  %v892_v16 = vld [vmem:[%s1071_s26 + $0x50] sm:$0xff] }
  0x11   : > { %404 = vmatpush.bf16.msra.mxu0 %v397_v3  ;;  %995 = vmatpush.bf16.msra.mxu1 %v397_v3  ;;  %v894_v9 = vld [vmem:[%s1071_s26 + $0x60] sm:$0xff]  ;;  %v895_v13 = vld [vmem:[%s1071_s26 + $0x68] sm:$0xff]  ;;  %v896_v17 = vld [vmem:[%s1071_s26 + $0x70] sm:$0xff] }
  0x12   : > { %996 = vmatpush.bf16.msra.mxu2 %v397_v3  ;;  %997 = vmatpush.bf16.msra.mxu3 %v397_v3  ;;  %v885_v18 = vld [vmem:[%s1071_s26 + $0x18] sm:$0xff] }
  0x13   : > { %v889_v19 = vld [vmem:[%s1071_s26 + $0x38] sm:$0xff] }
  0x14   : > { %v893_v20 = vld [vmem:[%s1071_s26 + $0x58] sm:$0xff] }
  0x15   : > { %405 = vmatpush.bf16.msra.mxu0 %v899_v4  ;;  %998 = vmatpush.bf16.msra.mxu1 %v899_v4  ;;  %v897_v21 = vld [vmem:[%s1071_s26 + $0x78] sm:$0xff] }
  0x16   : > { %999 = vmatpush.bf16.msra.mxu2 %v899_v4  ;;  %1000 = vmatpush.bf16.msra.mxu3 %v899_v4 }
  0x19   : > { %406 = vmatpush.bf16.msra.mxu0 %v898_v5  ;;  %1001 = vmatpush.bf16.msra.mxu1 %v898_v5 }
  0x1a   : > { %1002 = vmatpush.bf16.msra.mxu2 %v898_v5  ;;  %1003 = vmatpush.bf16.msra.mxu3 %v898_v5 }
  0x1c   : > { %862 = vmatmul.msk.bf16.vlgmr.msra.gmra.mxu0 %vm346_vm1, %v882_v6  ;;  %866 = vmatmul.msk.bf16.vlgmr.msra.gmra.mxu1 %vm346_vm1, %v886_v7 }
  0x1d   : > { %870 = vmatmul.msk.bf16.vlgmr.msra.gmra.mxu2 %vm346_vm1, %v890_v8  ;;  %874 = vmatmul.msk.bf16.vlgmr.msra.gmra.mxu3 %vm346_vm1, %v894_v9 }
  0x2c   : > { %863 = vmatmul.msk.bf16.gmra.mxu0 %vm346_vm1, %v883_v10  ;;  %867 = vmatmul.msk.bf16.gmra.mxu1 %vm346_vm1, %v887_v11 }
  0x2d   : > { %871 = vmatmul.msk.bf16.gmra.mxu2 %vm346_vm1, %v891_v12  ;;  %875 = vmatmul.msk.bf16.gmra.mxu3 %vm346_vm1, %v895_v13 }
  0x3c   : > { %864 = vmatmul.msk.bf16.gmra.mxu0 %vm346_vm1, %v884_v14  ;;  %868 = vmatmul.msk.bf16.gmra.mxu1 %vm346_vm1, %v888_v15 }
  0x3d   : > { %872 = vmatmul.msk.bf16.gmra.mxu2 %vm346_vm1, %v892_v16  ;;  %876 = vmatmul.msk.bf16.gmra.mxu3 %vm346_vm1, %v896_v17 }
  0x4c   : > { %865 = vmatmul.msk.bf16.gmra.mxu0 %vm346_vm1, %v885_v18  ;;  %869 = vmatmul.msk.bf16.gmra.mxu1 %vm346_vm1, %v889_v19 }
  0x4d   : > { %873 = vmatmul.msk.bf16.gmra.mxu2 %vm346_vm1, %v893_v20  ;;  %877 = vmatmul.msk.bf16.gmra.mxu3 %vm346_vm1, %v897_v21 }
  0x99   : > { %v408_v22 = vpop.f32.mrf.mxu0  ;;  %v428_v23 = vpop.f32.mrf.mxu1 }
  0x9a   : > { %v1111_v25 = vadd.f32 %v1108_v24, %v428_v23  ;;  %v1114_v29 = vadd.f32 %v1108_v24, %v408_v22 }
  0xa0   : > { %v448_v26 = vpop.f32.mrf.mxu2  ;;  %v468_v32 = vpop.f32.mrf.mxu3 }
  0xa1   : > { %v410_v27 = vpop.f32.mrf.mxu0  ;;  %v430_v28 = vpop.f32.mrf.mxu1  ;;  %v1136_v35 = vadd.f32 %v1108_v24, %v448_v26  ;;  %v1142_v40 = vadd.f32 %v1108_v24, %v468_v32 }
  0xa2   : > { %v1117_v30 = vadd.f32 %v1108_v24, %v410_v27  ;;  %v1120_v31 = vadd.f32 %v1108_v24, %v430_v28 }
  0xa4   : > { %v903_v33 = vpack.c.bf16 %v1117_v30, %v1114_v29  ;;  %v923_v34 = vpack.c.bf16 %v1120_v31, %v1111_v25  ;;  %v552_v12 = vadd.f32 %v1117_v30, %v1114_v29 }
  0xa6   : > { %904 = vst [vmem:[%s1127_s5] sm:$0xff] %v903_v33  }
  0xa7   : > { %983 = vst [vmem:[%s1127_s5 + $0x20] sm:$0xff] %v923_v34  }
  0xa8   : > { %v450_v36 = vpop.f32.mrf.mxu2  ;;  %v470_v41 = vpop.f32.mrf.mxu3 }
  0xa9   : > { %v413_v37 = vpop.f32.mrf.mxu0  ;;  %v433_v38 = vpop.f32.mrf.mxu1  ;;  %v1139_v39 = vadd.f32 %v1108_v24, %v450_v36  ;;  %v1147_v43 = vadd.f32 %v1108_v24, %v470_v41 }
  0xaa   : > { %v1154_v45 = vadd.f32 %v1108_v24, %v433_v38  ;;  %v1157_v49 = vadd.f32 %v1108_v24, %v413_v37 }
  0xab   : > { %v943_v42 = vpack.c.bf16 %v1139_v39, %v1136_v35  ;;  %v963_v44 = vpack.c.bf16 %v1147_v43, %v1142_v40 }
  0xac   : > { %v553_v17 = vadd.f32 %v552_v12, %v1157_v49 }
  0xad   : > { %987 = vst [vmem:[%s1127_s5 + $0x40] sm:$0xff] %v943_v42  }
  0xae   : > { %991 = vst [vmem:[%s1127_s5 + $0x60] sm:$0xff] %v963_v44  }
  0xb0   : > { %v453_v46 = vpop.f32.mrf.mxu2  ;;  %v473_v52 = vpop.f32.mrf.mxu3 }
  0xb1   : > { %v415_v47 = vpop.f32.mrf.mxu0  ;;  %v435_v48 = vpop.f32.mrf.mxu1  ;;  %v1172_v55 = vadd.f32 %v1108_v24, %v453_v46  ;;  %v1178_v60 = vadd.f32 %v1108_v24, %v473_v52 }
  0xb2   : > { %v1160_v50 = vadd.f32 %v1108_v24, %v415_v47  ;;  %v1163_v51 = vadd.f32 %v1108_v24, %v435_v48 }
  0xb4   : > { %v908_v53 = vpack.c.bf16 %v1160_v50, %v1157_v49  ;;  %v928_v54 = vpack.c.bf16 %v1163_v51, %v1154_v45  ;;  %v554_v22 = vadd.f32 %v553_v17, %v1160_v50 }
  0xb6   : > { %980 = vst [vmem:[%s1127_s5 + $0x8] sm:$0xff] %v908_v53  }
  0xb7   : > { %984 = vst [vmem:[%s1127_s5 + $0x28] sm:$0xff] %v928_v54  }
  0xb8   : > { %v455_v56 = vpop.f32.mrf.mxu2  ;;  %v475_v61 = vpop.f32.mrf.mxu3 }
  0xb9   : > { %v418_v57 = vpop.f32.mrf.mxu0  ;;  %v438_v58 = vpop.f32.mrf.mxu1  ;;  %v1175_v59 = vadd.f32 %v1108_v24, %v455_v56  ;;  %v1183_v63 = vadd.f32 %v1108_v24, %v475_v61 }
  0xba   : > { %v1190_v1 = vadd.f32 %v1108_v24, %v438_v58  ;;  %v1193_v5 = vadd.f32 %v1108_v24, %v418_v57 }
  0xbb   : > { %v948_v62 = vpack.c.bf16 %v1175_v59, %v1172_v55  ;;  %v968_v0 = vpack.c.bf16 %v1183_v63, %v1178_v60 }
  0xbc   : > { %v555_v26 = vadd.f32 %v554_v22, %v1193_v5 }
  0xbd   : > { %988 = vst [vmem:[%s1127_s5 + $0x48] sm:$0xff] %v948_v62  }
  0xbe   : > { %992 = vst [vmem:[%s1127_s5 + $0x68] sm:$0xff] %v968_v0  }
  0xc0   : > { %v458_v2 = vpop.f32.mrf.mxu2  ;;  %v478_v8 = vpop.f32.mrf.mxu3 }
  0xc1   : > { %v420_v3 = vpop.f32.mrf.mxu0  ;;  %v440_v4 = vpop.f32.mrf.mxu1  ;;  %v1208_v11 = vadd.f32 %v1108_v24, %v458_v2  ;;  %v1217_v18 = vadd.f32 %v1108_v24, %v478_v8 }
  0xc2   : > { %v1196_v6 = vadd.f32 %v1108_v24, %v420_v3  ;;  %v1199_v7 = vadd.f32 %v1108_v24, %v440_v4 }
  0xc4   : > { %v913_v9 = vpack.c.bf16 %v1196_v6, %v1193_v5  ;;  %v933_v10 = vpack.c.bf16 %v1199_v7, %v1190_v1  ;;  %v556_v28 = vadd.f32 %v555_v26, %v1196_v6 }
  0xc6   : > { %981 = vst [vmem:[%s1127_s5 + $0x10] sm:$0xff] %v913_v9  }
  0xc7   : > { %985 = vst [vmem:[%s1127_s5 + $0x30] sm:$0xff] %v933_v10  }
  0xc8   : > { %v460_v13 = vpop.f32.mrf.mxu2  ;;  %v480_v19 = vpop.f32.mrf.mxu3 }
  0xc9   : > { %v423_v14 = vpop.f32.mrf.mxu0  ;;  %v443_v15 = vpop.f32.mrf.mxu1  ;;  %v1213_v16 = vadd.f32 %v1108_v24, %v460_v13  ;;  %v1222_v21 = vadd.f32 %v1108_v24, %v480_v19 }
  0xca   : > { %v1230_v27 = vadd.f32 %v1108_v24, %v423_v14  ;;  %v1235_v32 = vadd.f32 %v1108_v24, %v443_v15 }
  0xcb   : > { %v953_v20 = vpack.c.bf16 %v1213_v16, %v1208_v11  ;;  %v973_v23 = vpack.c.bf16 %v1222_v21, %v1217_v18 }
  0xcc   : > { %v557_v37 = vadd.f32 %v556_v28, %v1230_v27 }
  0xcd   : > { %989 = vst [vmem:[%s1127_s5 + $0x50] sm:$0xff] %v953_v20  }
  0xce   : > { %993 = vst [vmem:[%s1127_s5 + $0x70] sm:$0xff] %v973_v23  }
  0xd0   : > { %v463_v33 = vpop.f32.mrf.mxu2  ;;  %v483_v42 = vpop.f32.mrf.mxu3 }
  0xd1   : > { %v425_v34 = vpop.f32.mrf.mxu0  ;;  %v445_v36 = vpop.f32.mrf.mxu1  ;;  %v1253_v52 = vadd.f32 %v1108_v24, %v463_v33  ;;  %v1261_v58 = vadd.f32 %v1108_v24, %v483_v42 }
  0xd2   : > { %v1239_v38 = vadd.f32 %v1108_v24, %v425_v34  ;;  %v1242_v41 = vadd.f32 %v1108_v24, %v445_v36 }
  0xd4   : > { %v918_v44 = vpack.c.bf16 %v1239_v38, %v1230_v27  ;;  %v558_v46 = vadd.f32 %v557_v37, %v1239_v38  ;;  %v938_v47 = vpack.c.bf16 %v1242_v41, %v1235_v32 }
  0xd6   : > { %982 = vst [vmem:[%s1127_s5 + $0x18] sm:$0xff] %v918_v44   ;;  %v559_v48 = vadd.f32 %v558_v46, %v1111_v25 }
  0xd7   : > { %986 = vst [vmem:[%s1127_s5 + $0x38] sm:$0xff] %v938_v47  }
  0xd8   : > { %v560_v53 = vadd.f32 %v559_v48, %v1120_v31  ;;  %v465_v54 = vpop.f32.mrf.mxu2  ;;  %v485_v61 = vpop.f32.mrf.mxu3 }
  0xd9   : > { %v1257_v56 = vadd.f32 %v1108_v24, %v465_v54  ;;  %v1266_v0 = vadd.f32 %v1108_v24, %v485_v61 }
  0xda   : > { %v561_v57 = vadd.f32 %v560_v53, %v1154_v45 }
  0xdb   : > { %v958_v62 = vpack.c.bf16 %v1257_v56, %v1253_v52  ;;  %v978_v3 = vpack.c.bf16 %v1266_v0, %v1261_v58 }
  0xdc   : > { %v562_v2 = vadd.f32 %v561_v57, %v1163_v51 }
  0xdd   : > { %990 = vst [vmem:[%s1127_s5 + $0x58] sm:$0xff] %v958_v62  }
  0xde   : > { %v563_v4 = vadd.f32 %v562_v2, %v1190_v1  ;;  %994 = vst [vmem:[%s1127_s5 + $0x78] sm:$0xff] %v978_v3  }
  0xe0   : > { %v564_v8 = vadd.f32 %v563_v4, %v1199_v7 }
  0xe2   : > { %v565_v9 = vadd.f32 %v564_v8, %v1235_v32 }
  0xe4   : > { %v566_v10 = vadd.f32 %v565_v9, %v1242_v41 }
  0xe6   : > { %v567_v12 = vadd.f32 %v566_v10, %v1136_v35 }
  0xe8   : > { %v568_v24 = vadd.f32 %v567_v12, %v1139_v39 }
  0xea   : > { %v569_v13 = vadd.f32 %v568_v24, %v1172_v55 }
  0xec   : > { %v570_v14 = vadd.f32 %v569_v13, %v1175_v59 }
  0xee   : > { %v571_v15 = vadd.f32 %v570_v14, %v1208_v11 }
  0xf0   : > { %v572_v17 = vadd.f32 %v571_v15, %v1213_v16 }
  0xf2   : > { %v573_v19 = vadd.f32 %v572_v17, %v1253_v52 }
  0xf4   : > { %v574_v20 = vadd.f32 %v573_v19, %v1257_v56 }
  0xf6   : > { %v575_v22 = vadd.f32 %v574_v20, %v1142_v40 }
  0xf8   : > { %v576_v23 = vadd.f32 %v575_v22, %v1147_v43 }
  0xfa   : > { %v577_v26 = vadd.f32 %v576_v23, %v1178_v60 }
  0xfc   : > { %v578_v28 = vadd.f32 %v577_v26, %v1183_v63 }
  0xfe   : > { %v579_v33 = vadd.f32 %v578_v28, %v1217_v18 }
 0x100   : > { %v580_v34 = vadd.f32 %v579_v33, %v1222_v21 }
 0x102   : > { %v581_v36 = vadd.f32 %v580_v34, %v1261_v58 }
 0x104   : > { %v582_v37 = vadd.f32 %v581_v36, %v1266_v0 }
 0x106   : > { %v583_v42 = vrot.slane %v582_v37, 4 }
 0x108   : > { %v584_v44 = vadd.f32 %v583_v42, %v582_v37 }
 0x10a   : > { %v585_v46 = vrot.slane %v584_v44, 2 }
 0x10c   : > { %v586_v47 = vadd.f32 %v585_v46, %v584_v44 }
 0x10e   : > { %v587_v48 = vrot.slane %v586_v47, 1 }
 0x110   : > { %v1293_v53 = vadd.f32 %v587_v48, %v586_v47 }
 0x112   : > { %v1296_v54 = vmul.f32 0.00390625, %v1293_v53 }
 0x114   : > { %v590_v57 = vsub.f32 %v1114_v29, %v1296_v54  ;;  %v591_v61 = vsub.f32 %v1117_v30, %v1296_v54  ;;  %v592_v62 = vsub.f32 %v1157_v49, %v1296_v54  ;;  %v593_v4 = vsub.f32 %v1160_v50, %v1296_v54 }
 0x115   : > { %v594_v8 = vsub.f32 %v1193_v5, %v1296_v54  ;;  %v595_v12 = vsub.f32 %v1196_v6, %v1296_v54  ;;  %v596_v30 = vsub.f32 %v1230_v27, %v1296_v54  ;;  %v597_v14 = vsub.f32 %v1239_v38, %v1296_v54 }
 0x116   : > { %v622_v2 = vmul.f32 %v590_v57, %v590_v57  ;;  %v623_v3 = vmul.f32 %v591_v61, %v591_v61  ;;  %v624_v9 = vmul.f32 %v592_v62, %v592_v62  ;;  %v625_v29 = vmul.f32 %v593_v4, %v593_v4 }
 0x117   : > { %v626_v13 = vmul.f32 %v594_v8, %v594_v8  ;;  %v627_v15 = vmul.f32 %v595_v12, %v595_v12  ;;  %v598_v5 = vsub.f32 %v1111_v25, %v1296_v54  ;;  %v628_v17 = vmul.f32 %v596_v30, %v596_v30 }
 0x118   : > { %v654_v10 = vadd.f32 %v623_v3, %v622_v2  ;;  %v599_v6 = vsub.f32 %v1120_v31, %v1296_v54  ;;  %v629_v20 = vmul.f32 %v597_v14, %v597_v14  ;;  %v600_v27 = vsub.f32 %v1154_v45, %v1296_v54 }
 0x119   : > { %v630_v23 = vmul.f32 %v598_v5, %v598_v5  ;;  %v601_v38 = vsub.f32 %v1163_v51, %v1296_v54  ;;  %v602_v25 = vsub.f32 %v1190_v1, %v1296_v54  ;;  %v603_v31 = vsub.f32 %v1199_v7, %v1296_v54 }
 0x11a   : > { %v655_v24 = vadd.f32 %v654_v10, %v624_v9  ;;  %v631_v28 = vmul.f32 %v599_v6, %v599_v6  ;;  %v632_v34 = vmul.f32 %v600_v27, %v600_v27  ;;  %v604_v45 = vsub.f32 %v1235_v32, %v1296_v54 }
 0x11b   : > { %v633_v37 = vmul.f32 %v601_v38, %v601_v38  ;;  %v634_v44 = vmul.f32 %v602_v25, %v602_v25  ;;  %v605_v51 = vsub.f32 %v1242_v41, %v1296_v54  ;;  %v635_v47 = vmul.f32 %v603_v31, %v603_v31 }
 0x11c   : > { %v656_v49 = vadd.f32 %v655_v24, %v625_v29  ;;  %v606_v1 = vsub.f32 %v1136_v35, %v1296_v54  ;;  %v636_v57 = vmul.f32 %v604_v45, %v604_v45  ;;  %v607_v7 = vsub.f32 %v1139_v39, %v1296_v54 }
 0x11d   : > { %v637_v62 = vmul.f32 %v605_v51, %v605_v51  ;;  %v608_v32 = vsub.f32 %v1172_v55, %v1296_v54  ;;  %v609_v41 = vsub.f32 %v1175_v59, %v1296_v54  ;;  %v610_v35 = vsub.f32 %v1208_v11, %v1296_v54 }
 0x11e   : > { %v657_v50 = vadd.f32 %v656_v49, %v626_v13  ;;  %v638_v3 = vmul.f32 %v606_v1, %v606_v1  ;;  %v639_v8 = vmul.f32 %v607_v7, %v607_v7  ;;  %v611_v39 = vsub.f32 %v1213_v16, %v1296_v54 }
 0x11f   : > { %v640_v10 = vmul.f32 %v608_v32, %v608_v32  ;;  %v641_v29 = vmul.f32 %v609_v41, %v609_v41  ;;  %v612_v55 = vsub.f32 %v1253_v52, %v1296_v54  ;;  %v642_v30 = vmul.f32 %v610_v35, %v610_v35 }
 0x120   : > { %v658_v19 = vadd.f32 %v657_v50, %v627_v15  ;;  %v613_v59 = vsub.f32 %v1257_v56, %v1296_v54  ;;  %v643_v49 = vmul.f32 %v611_v39, %v611_v39  ;;  %v614_v11 = vsub.f32 %v1142_v40, %v1296_v54 }
 0x121   : > { %v644_v15 = vmul.f32 %v612_v55, %v612_v55  ;;  %v615_v16 = vsub.f32 %v1147_v43, %v1296_v54  ;;  %v616_v52 = vsub.f32 %v1178_v60, %v1296_v54  ;;  %v617_v56 = vsub.f32 %v1183_v63, %v1296_v54 }
 0x122   : > { %v659_v22 = vadd.f32 %v658_v19, %v628_v17  ;;  %v645_v5 = vmul.f32 %v613_v59, %v613_v59  ;;  %v646_v19 = vmul.f32 %v614_v11, %v614_v11  ;;  %v618_v40 = vsub.f32 %v1217_v18, %v1296_v54 }
 0x123   : > { %v648_v27 = vmul.f32 %v616_v52, %v616_v52  ;;  %v619_v43 = vsub.f32 %v1222_v21, %v1296_v54  ;;  %v620_v60 = vsub.f32 %v1261_v58, %v1296_v54  ;;  %v621_v63 = vsub.f32 %v1266_v0, %v1296_v54 }
 0x124   : > { %v660_v26 = vadd.f32 %v659_v22, %v629_v20  ;;  %v647_v20 = vmul.f32 %v615_v16, %v615_v16 }
 0x125   : > { %v651_v25 = vmul.f32 %v619_v43, %v619_v43  ;;  %v653_v31 = vmul.f32 %v621_v63, %v621_v63 }
 0x126   : > { %v661_v33 = vadd.f32 %v660_v26, %v630_v23  ;;  %v649_v26 = vmul.f32 %v617_v56, %v617_v56 }
 0x128   : > { %v662_v36 = vadd.f32 %v661_v33, %v631_v28  ;;  %v650_v28 = vmul.f32 %v618_v40, %v618_v40 }
 0x12a   : > { %v663_v42 = vadd.f32 %v662_v36, %v632_v34  ;;  %v652_v36 = vmul.f32 %v620_v60, %v620_v60 }
 0x12c   : > { %v664_v46 = vadd.f32 %v663_v42, %v633_v37 }
 0x12e   : > { %v665_v48 = vadd.f32 %v664_v46, %v634_v44 }
 0x130   : > { %v666_v61 = vadd.f32 %v665_v48, %v635_v47 }
 0x132   : > { %v667_v2 = vadd.f32 %v666_v61, %v636_v57 }
 0x134   : > { %v668_v4 = vadd.f32 %v667_v2, %v637_v62 }
 0x136   : > { %v669_v9 = vadd.f32 %v668_v4, %v638_v3 }
 0x138   : > { %v670_v12 = vadd.f32 %v669_v9, %v639_v8 }
 0x13a   : > { %v671_v24 = vadd.f32 %v670_v12, %v640_v10 }
 0x13c   : > { %v672_v13 = vadd.f32 %v671_v24, %v641_v29 }
 0x13e   : > { %v673_v14 = vadd.f32 %v672_v13, %v642_v30 }
 0x140   : > { %v674_v50 = vadd.f32 %v673_v14, %v643_v49 }
 0x142   : > { %v675_v17 = vadd.f32 %v674_v50, %v644_v15 }
 0x144   : > { %v676_v6 = vadd.f32 %v675_v17, %v645_v5 }
 0x146   : > { %v677_v22 = vadd.f32 %v676_v6, %v646_v19 }
 0x148   : > { %v678_v23 = vadd.f32 %v677_v22, %v647_v20 }
 0x14a   : > { %v679_v38 = vadd.f32 %v678_v23, %v648_v27 }
 0x14c   : > { %v680_v33 = vadd.f32 %v679_v38, %v649_v26 }
 0x14e   : > { %v681_v34 = vadd.f32 %v680_v33, %v650_v28 }
 0x150   : > { %v682_v18 = vadd.f32 %v681_v34, %v651_v25 }
 0x152   : > { %v683_v37 = vadd.f32 %v682_v18, %v652_v36 }
 0x154   : > { %v684_v42 = vadd.f32 %v683_v37, %v653_v31 }
 0x156   : > { %v685_v45 = vrot.slane %v684_v42, 4 }
 0x158   : > { %v686_v21 = vadd.f32 %v685_v45, %v684_v42 }
 0x15a   : > { %v687_v44 = vrot.slane %v686_v21, 2 }
 0x15c   : > { %v688_v46 = vadd.f32 %v687_v44, %v686_v21 }
 0x15e   : > { %v689_v51 = vrot.slane %v688_v46, 1 }
 0x160   : > { %v690_v58 = vadd.f32 %v689_v51, %v688_v46 }
 0x162   : > { %v692_v0 = vsel %vm691_vm2, %v1293_v53, %v690_v58 }
 0x163   : > { %693 = vst [vmem:[%s208_s9] sm:$0x3] %v692_v0 }
 0x164 PF: > { %s15_s15 = sadd.s32 1, %s1019_s15  }
 0x165   : > { %p12_p4 = scmp.ge.s32.totalorder %s15_s15, 4  }
 0x167   :  { %14 = sbr.rel (!%p12_p4) target bundleno = 1 (0x1), region = 74 }

// kernel: time_double_conv.5
= control target key start
LH: loop header
LB: loop body
LE: loop exit
PB: predicated region body
PF: predicated region fallthrough
CT: control target
= control target key end

     0   :  { %s620_s9 = smov 0   ;;  %s622_s10 = smov 0   ;;  %s780_s0 = inlined_call_operand.vmem [shape: bf16[2,256,128], index: 0, kind: input, shape index: {}]   ;;  %s781_s1 = inlined_call_operand.vmem [shape: f32[1,2,128], index: 1, kind: input, shape index: {}]   ;;  %s782_s2 = inlined_call_operand.vmem [shape: f32[2,256,128], index: 2, kind: output, shape index: {}]  }
   0x1   :  { %s624_s11 = smov 0  }
   0x2 LB: > { %s24_s12 = sadd.s32 1, %s599_s10  ;;  %p469_p0 = scmp.ge.s32.totalorder %s603_s11, 1  ;;  %s603_s11 = sphi %s624_s11, %s12_s11   ;;  %s599_s10 = sphi %s622_s10, %s784_s10   ;;  %s595_s9 = sphi %s620_s9, %s783_s9  }
   0x3   : > { %p26_p1 = scmp.ge.s32.totalorder %s24_s12, 2  ;;  %p133_p2 = scmp.lt.s32.totalorder %s603_s11, 3 }
   0x5   : > { %s786_s12 = smov (%p26_p1, %s24_s12), 0  ;;  %p134_p3 = pnand %p469_p0, %p133_p2 }
   0x6   : > { %p164_p4 = scmp.lt.s32.totalorder (!%p134_p3), %s595_s9, 1 }
   0x7   : > { %137 = sbr.rel (%p134_p3) target bundleno = 56 (0x38), region = 28 }
   0xc   : > { %s788_s9 = smov (!%p164_p4, %s595_s9), 1  ;;  %v183_v0 = vld [vmem:[%s781_s1] sm:$0x3] }
   0xd   : > { %s476_s15 = sshll.u32 %s788_s9, 7  ;;  %v649_v1 = vperm.slane %v183_v0, 0  ;;  %v652_v3 = vperm.slane %v183_v0, 1  ;;  %s477_s19 = sshll.u32 %s788_s9, 8 }
   0xe   : > { %s647_s18 = scalar_lea.vmem %s780_s0, %s476_s15  ;;  %s673_s22 = scalar_lea.vmem %s782_s2, %s477_s19 }
   0xf   : > { %v479_v2 = vld [vmem:[%s647_s18] sm:$0xff]   ;;  %v542_v4 = vld [vmem:[%s647_s18 + $0x8] sm:$0xff]   ;;  %v543_v5 = vld [vmem:[%s647_s18 + $0x10] sm:$0xff]  }
  0x10   : > { %v480_v6 = vunpack.c.l.bf16 %v479_v2  ;;  %v481_v7 = vunpack.c.h.bf16 %v479_v2  ;;  %v484_v8 = vunpack.c.l.bf16 %v542_v4  ;;  %v485_v9 = vunpack.c.h.bf16 %v542_v4  ;;  %v544_v10 = vld [vmem:[%s647_s18 + $0x18] sm:$0xff]   ;;  %v545_v31 = vld [vmem:[%s647_s18 + $0x20] sm:$0xff]   ;;  %v546_v32 = vld [vmem:[%s647_s18 + $0x28] sm:$0xff]  }
  0x11   : > { %v488_v11 = vunpack.c.l.bf16 %v543_v5  ;;  %v489_v12 = vunpack.c.h.bf16 %v543_v5  ;;  %v492_v13 = vunpack.c.l.bf16 %v544_v10  ;;  %v493_v14 = vunpack.c.h.bf16 %v544_v10  ;;  %v547_v37 = vld [vmem:[%s647_s18 + $0x30] sm:$0xff]   ;;  %v548_v38 = vld [vmem:[%s647_s18 + $0x38] sm:$0xff]   ;;  %v549_v5 = vld [vmem:[%s647_s18 + $0x40] sm:$0xff]  }
  0x12   : > { %v249_v15 = vmul.f32 %v480_v6, %v649_v1  ;;  %v250_v16 = vmul.f32 %v481_v7, %v649_v1  ;;  %v251_v17 = vmul.f32 %v484_v8, %v649_v1  ;;  %v252_v18 = vmul.f32 %v485_v9, %v649_v1  ;;  %v550_v6 = vld [vmem:[%s647_s18 + $0x48] sm:$0xff]   ;;  %v551_v7 = vld [vmem:[%s647_s18 + $0x50] sm:$0xff]  }
  0x13   : > { %v253_v19 = vmul.f32 %v488_v11, %v649_v1  ;;  %v254_v20 = vmul.f32 %v489_v12, %v649_v1  ;;  %v255_v21 = vmul.f32 %v492_v13, %v649_v1  ;;  %v256_v22 = vmul.f32 %v493_v14, %v649_v1  ;;  %v552_v12 = vld [vmem:[%s647_s18 + $0x58] sm:$0xff]  }
  0x14   : > { %v282_v23 = vadd.f32 %v652_v3, %v249_v15  ;;  %v283_v24 = vadd.f32 %v652_v3, %v250_v16  ;;  %v284_v25 = vadd.f32 %v652_v3, %v251_v17  ;;  %v285_v26 = vadd.f32 %v652_v3, %v252_v18 }
  0x15   : > { %v286_v27 = vadd.f32 %v652_v3, %v253_v19  ;;  %v287_v28 = vadd.f32 %v652_v3, %v254_v20  ;;  %v288_v29 = vadd.f32 %v652_v3, %v255_v21  ;;  %v289_v30 = vadd.f32 %v652_v3, %v256_v22 }
  0x16   : > { %v314_v33 = vmax.f32 %v282_v23, 0.0  ;;  %v315_v34 = vmax.f32 %v283_v24, 0.0  ;;  %v316_v35 = vmax.f32 %v284_v25, 0.0  ;;  %v317_v36 = vmax.f32 %v285_v26, 0.0 }
  0x17   : > { %v318_v39 = vmax.f32 %v286_v27, 0.0  ;;  %v319_v40 = vmax.f32 %v287_v28, 0.0  ;;  %v320_v41 = vmax.f32 %v288_v29, 0.0  ;;  %v321_v42 = vmax.f32 %v289_v30, 0.0 }
  0x18   : > { %346 = vst [vmem:[%s673_s22] sm:$0xff] %v314_v33  ;;  %v496_v43 = vunpack.c.l.bf16 %v545_v31  ;;  %v497_v44 = vunpack.c.h.bf16 %v545_v31  ;;  %v500_v45 = vunpack.c.l.bf16 %v546_v32  ;;  %v501_v46 = vunpack.c.h.bf16 %v546_v32 }
  0x19   : > { %347 = vst [vmem:[%s673_s22 + $0x8] sm:$0xff] %v315_v34  ;;  %v504_v47 = vunpack.c.l.bf16 %v547_v37  ;;  %v505_v48 = vunpack.c.h.bf16 %v547_v37  ;;  %v508_v49 = vunpack.c.l.bf16 %v548_v38  ;;  %v509_v50 = vunpack.c.h.bf16 %v548_v38 }
  0x1a   : > { %348 = vst [vmem:[%s673_s22 + $0x10] sm:$0xff] %v316_v35  ;;  %v257_v51 = vmul.f32 %v496_v43, %v649_v1  ;;  %v258_v52 = vmul.f32 %v497_v44, %v649_v1  ;;  %v259_v53 = vmul.f32 %v500_v45, %v649_v1  ;;  %v260_v54 = vmul.f32 %v501_v46, %v649_v1  ;;  %v555_v43 = vld [vmem:[%s647_s18 + $0x70] sm:$0xff]  }
  0x1b   : > { %349 = vst [vmem:[%s673_s22 + $0x18] sm:$0xff] %v317_v36  ;;  %v261_v55 = vmul.f32 %v504_v47, %v649_v1  ;;  %v262_v56 = vmul.f32 %v505_v48, %v649_v1  ;;  %v263_v57 = vmul.f32 %v508_v49, %v649_v1  ;;  %v264_v58 = vmul.f32 %v509_v50, %v649_v1  ;;  %v556_v48 = vld [vmem:[%s647_s18 + $0x78] sm:$0xff]  }
  0x1c   : > { %350 = vst [vmem:[%s673_s22 + $0x20] sm:$0xff] %v318_v39  ;;  %v290_v59 = vadd.f32 %v652_v3, %v257_v51  ;;  %v291_v60 = vadd.f32 %v652_v3, %v258_v52  ;;  %v292_v61 = vadd.f32 %v652_v3, %v259_v53  ;;  %v293_v62 = vadd.f32 %v652_v3, %v260_v54 }
  0x1d   : > { %351 = vst [vmem:[%s673_s22 + $0x28] sm:$0xff] %v319_v40  ;;  %v294_v63 = vadd.f32 %v652_v3, %v261_v55  ;;  %v295_v0 = vadd.f32 %v652_v3, %v262_v56  ;;  %v296_v2 = vadd.f32 %v652_v3, %v263_v57  ;;  %v297_v4 = vadd.f32 %v652_v3, %v264_v58 }
  0x1e   : > { %352 = vst [vmem:[%s673_s22 + $0x30] sm:$0xff] %v320_v41  ;;  %v322_v8 = vmax.f32 %v290_v59, 0.0  ;;  %v323_v9 = vmax.f32 %v291_v60, 0.0  ;;  %v324_v10 = vmax.f32 %v292_v61, 0.0  ;;  %v325_v11 = vmax.f32 %v293_v62, 0.0  ;;  %v553_v41 = vld [vmem:[%s647_s18 + $0x60] sm:$0xff]  }
  0x1f   : > { %353 = vst [vmem:[%s673_s22 + $0x38] sm:$0xff] %v321_v42  ;;  %v326_v13 = vmax.f32 %v294_v63, 0.0  ;;  %v327_v14 = vmax.f32 %v295_v0, 0.0  ;;  %v328_v15 = vmax.f32 %v296_v2, 0.0  ;;  %v329_v16 = vmax.f32 %v297_v4, 0.0  ;;  %v554_v42 = vld [vmem:[%s647_s18 + $0x68] sm:$0xff]  }
  0x20   : > { %354 = vst [vmem:[%s673_s22 + $0x40] sm:$0xff] %v322_v8  ;;  %v512_v17 = vunpack.c.l.bf16 %v549_v5  ;;  %v513_v18 = vunpack.c.h.bf16 %v549_v5  ;;  %v516_v19 = vunpack.c.l.bf16 %v550_v6  ;;  %v517_v20 = vunpack.c.h.bf16 %v550_v6 }
  0x21   : > { %355 = vst [vmem:[%s673_s22 + $0x48] sm:$0xff] %v323_v9  ;;  %v520_v21 = vunpack.c.l.bf16 %v551_v7  ;;  %v521_v22 = vunpack.c.h.bf16 %v551_v7  ;;  %v524_v23 = vunpack.c.l.bf16 %v552_v12  ;;  %v525_v24 = vunpack.c.h.bf16 %v552_v12 }
  0x22   : > { %356 = vst [vmem:[%s673_s22 + $0x50] sm:$0xff] %v324_v10  ;;  %v265_v25 = vmul.f32 %v512_v17, %v649_v1  ;;  %v266_v26 = vmul.f32 %v513_v18, %v649_v1  ;;  %v267_v27 = vmul.f32 %v516_v19, %v649_v1  ;;  %v268_v28 = vmul.f32 %v517_v20, %v649_v1 }
  0x23   : > { %357 = vst [vmem:[%s673_s22 + $0x58] sm:$0xff] %v325_v11  ;;  %v269_v29 = vmul.f32 %v520_v21, %v649_v1  ;;  %v270_v30 = vmul.f32 %v521_v22, %v649_v1  ;;  %v271_v31 = vmul.f32 %v524_v23, %v649_v1  ;;  %v272_v32 = vmul.f32 %v525_v24, %v649_v1 }
  0x24   : > { %358 = vst [vmem:[%s673_s22 + $0x60] sm:$0xff] %v326_v13  ;;  %v298_v33 = vadd.f32 %v652_v3, %v265_v25  ;;  %v299_v34 = vadd.f32 %v652_v3, %v266_v26  ;;  %v300_v35 = vadd.f32 %v652_v3, %v267_v27  ;;  %v301_v36 = vadd.f32 %v652_v3, %v268_v28 }
  0x25   : > { %359 = vst [vmem:[%s673_s22 + $0x68] sm:$0xff] %v327_v14  ;;  %v302_v37 = vadd.f32 %v652_v3, %v269_v29  ;;  %v303_v38 = vadd.f32 %v652_v3, %v270_v30  ;;  %v304_v39 = vadd.f32 %v652_v3, %v271_v31  ;;  %v305_v40 = vadd.f32 %v652_v3, %v272_v32 }
  0x26   : > { %360 = vst [vmem:[%s673_s22 + $0x70] sm:$0xff] %v328_v15  ;;  %v330_v44 = vmax.f32 %v298_v33, 0.0  ;;  %v331_v45 = vmax.f32 %v299_v34, 0.0  ;;  %v332_v46 = vmax.f32 %v300_v35, 0.0  ;;  %v333_v47 = vmax.f32 %v301_v36, 0.0 }
  0x27   : > { %361 = vst [vmem:[%s673_s22 + $0x78] sm:$0xff] %v329_v16  ;;  %v334_v49 = vmax.f32 %v302_v37, 0.0  ;;  %v335_v50 = vmax.f32 %v303_v38, 0.0  ;;  %v336_v51 = vmax.f32 %v304_v39, 0.0  ;;  %v337_v52 = vmax.f32 %v305_v40, 0.0 }
  0x28   : > { %362 = vst [vmem:[%s673_s22 + $0x80] sm:$0xff] %v330_v44  ;;  %v528_v53 = vunpack.c.l.bf16 %v553_v41  ;;  %v529_v54 = vunpack.c.h.bf16 %v553_v41  ;;  %v532_v55 = vunpack.c.l.bf16 %v554_v42  ;;  %v533_v56 = vunpack.c.h.bf16 %v554_v42 }
  0x29   : > { %363 = vst [vmem:[%s673_s22 + $0x88] sm:$0xff] %v331_v45  ;;  %v536_v57 = vunpack.c.l.bf16 %v555_v43  ;;  %v537_v58 = vunpack.c.h.bf16 %v555_v43  ;;  %v540_v59 = vunpack.c.l.bf16 %v556_v48  ;;  %v541_v60 = vunpack.c.h.bf16 %v556_v48 }
  0x2a   : > { %364 = vst [vmem:[%s673_s22 + $0x90] sm:$0xff] %v332_v46  ;;  %v273_v61 = vmul.f32 %v528_v53, %v649_v1  ;;  %v274_v62 = vmul.f32 %v529_v54, %v649_v1  ;;  %v275_v63 = vmul.f32 %v532_v55, %v649_v1  ;;  %v276_v0 = vmul.f32 %v533_v56, %v649_v1 }
  0x2b   : > { %365 = vst [vmem:[%s673_s22 + $0x98] sm:$0xff] %v333_v47  ;;  %v277_v2 = vmul.f32 %v536_v57, %v649_v1  ;;  %v278_v4 = vmul.f32 %v537_v58, %v649_v1  ;;  %v279_v5 = vmul.f32 %v540_v59, %v649_v1  ;;  %v280_v6 = vmul.f32 %v541_v60, %v649_v1 }
  0x2c   : > { %366 = vst [vmem:[%s673_s22 + $0xa0] sm:$0xff] %v334_v49  ;;  %v306_v7 = vadd.f32 %v652_v3, %v273_v61  ;;  %v307_v8 = vadd.f32 %v652_v3, %v274_v62  ;;  %v308_v9 = vadd.f32 %v652_v3, %v275_v63  ;;  %v309_v10 = vadd.f32 %v652_v3, %v276_v0 }
  0x2d   : > { %367 = vst [vmem:[%s673_s22 + $0xa8] sm:$0xff] %v335_v50  ;;  %v310_v11 = vadd.f32 %v652_v3, %v277_v2  ;;  %v311_v12 = vadd.f32 %v652_v3, %v278_v4  ;;  %v312_v15 = vadd.f32 %v652_v3, %v279_v5  ;;  %v313_v17 = vadd.f32 %v652_v3, %v280_v6 }
  0x2e   : > { %368 = vst [vmem:[%s673_s22 + $0xb0] sm:$0xff] %v336_v51  ;;  %v338_v1 = vmax.f32 %v306_v7, 0.0  ;;  %v339_v13 = vmax.f32 %v307_v8, 0.0  ;;  %v340_v14 = vmax.f32 %v308_v9, 0.0  ;;  %v341_v16 = vmax.f32 %v309_v10, 0.0 }
  0x2f   : > { %369 = vst [vmem:[%s673_s22 + $0xb8] sm:$0xff] %v337_v52  ;;  %v342_v18 = vmax.f32 %v310_v11, 0.0  ;;  %v343_v19 = vmax.f32 %v311_v12, 0.0  ;;  %v344_v20 = vmax.f32 %v312_v15, 0.0  ;;  %v345_v21 = vmax.f32 %v313_v17, 0.0 }
  0x30   : > { %370 = vst [vmem:[%s673_s22 + $0xc0] sm:$0xff] %v338_v1 }
  0x31   : > { %371 = vst [vmem:[%s673_s22 + $0xc8] sm:$0xff] %v339_v13 }
  0x32   : > { %372 = vst [vmem:[%s673_s22 + $0xd0] sm:$0xff] %v340_v14 }
  0x33   : > { %373 = vst [vmem:[%s673_s22 + $0xd8] sm:$0xff] %v341_v16 }
  0x34   : > { %374 = vst [vmem:[%s673_s22 + $0xe0] sm:$0xff] %v342_v18 }
  0x35   : > { %375 = vst [vmem:[%s673_s22 + $0xe8] sm:$0xff] %v343_v19 }
  0x36   : > { %376 = vst [vmem:[%s673_s22 + $0xf0] sm:$0xff] %v344_v20 }
  0x37   : > { %377 = vst [vmem:[%s673_s22 + $0xf8] sm:$0xff] %v345_v21 }
  0x38 PF: > { %s12_s11 = sadd.s32 1, %s603_s11   ;;  %s783_s9 = smov %s599_s10 }
  0x39   : > { %p9_p5 = scmp.ge.s32.totalorder %s12_s11, 4   ;;  %s784_s10 = smov %s786_s12 }
  0x3b   :  { %11 = sbr.rel (!%p9_p5) target bundleno = 2 (0x2), region = 58 }

// kernel: time_double_conv.4
= control target key start
LH: loop header
LB: loop body
LE: loop exit
PB: predicated region body
PF: predicated region fallthrough
CT: control target
= control target key end

     0   :  { %s4608_s18 = smov 0   ;;  %s6023_s0 = inlined_call_operand.vmem [shape: bf16[2,256,128], index: 0, kind: input, shape index: {}]   ;;  %s6024_s1 = inlined_call_operand.vmem [shape: f32[2,2,128], index: 1, kind: input, shape index: {}]   ;;  %s6025_s2 = inlined_call_operand.vmem [shape: bf16[3,384,128], index: 2, kind: input, shape index: {}]   ;;  %s6026_s3 = inlined_call_operand.vmem [shape: f32[1,128], index: 3, kind: input, shape index: {}]   ;;  %s6027_s4 = inlined_call_operand.vmem [shape: bf16[2,256,128], index: 4, kind: output, shape index: {0}]   ;;  %s6028_s5 = inlined_call_operand.vmem [shape: f32[2,2,128], index: 5, kind: output, shape index: {1}]  }
   0x1 LB: > { %s3700_s19 = sadd.s32 4294967295, %s4575_s18   ;;  %p3704_p0 = scmp.ge.s32.totalorder %s4575_s18, 1  ;;  %s4575_s18 = sphi %s4608_s18, %s16_s18  }
   0x2   : > { %p199_p1 = scmp.lt.s32.totalorder %s4575_s18, 3 }
   0x4   : > { %p200_p2 = pnand %p3704_p0, %p199_p1 }
   0x6   : > { %203 = sbr.rel (%p200_p2) target bundleno = 877 (0x36d), region = 36 }
   0xb   : > { %v4106_v0 = vld [vmem:[%s6025_s2 + $0x38] sm:$0xff]  ;;  %vm417_vm0 = vcmask 1043459   ;;  %vm418_vm1 = vsmask.f32 7950  ;;  %v4105_v1 = vld [vmem:[%s6025_s2 + $0x30] sm:$0xff]  ;;  %v4577_v3 = vmov 0  }
   0xc   : > { %2021 = vmatpush.bf16.msra.mxu0 %v4106_v0  ;;  %4519 = vmatpush.bf16.msra.mxu1 %v4106_v0  ;;  %vm4622_vm2 = vmand %vm417_vm0, %vm418_vm1  ;;  %423 = vst [vmem:[#allocation2 + $0x8] sm:$0xf] %v4577_v3  ;;  %p235_p3 = scmp.lt.s32.totalorder %s3700_s19, 1  ;;  %v420_v4 = vld [vmem:[#allocation2 + $0x4] sm:$0x8]  ;;  %v4104_v6 = vld [vmem:[%s6025_s2 + $0x28] sm:$0xff] }
   0xd   : > { %4520 = vmatpush.bf16.msra.mxu2 %v4106_v0  ;;  %4521 = vmatpush.bf16.msra.mxu3 %v4106_v0  ;;  %424 = vst [vmem:[#allocation2 + $0xc] sm:$0xf] %v4577_v3  ;;  %v450_v5 = vld [vmem:[#allocation2 + $0x54] sm:$0x8]  ;;  %v421_v7 = vsel %vm4622_vm2, 0, %v420_v4  ;;  %v4103_v22 = vld [vmem:[%s6025_s2 + $0x20] sm:$0xff] }
   0xe   : > { %435 = vst [vmem:[#allocation2 + $0x15c] sm:$0xf] %v4577_v3  ;;  %s6222_s19 = smov (!%p235_p3, %s3700_s19), 1  ;;  %v451_v8 = vsel %vm4622_vm2, 0, %v450_v5  ;;  %v462_v9 = vld [vmem:[#allocation2 + $0xa4] sm:$0x8] }
   0xf   : > { %422 = vst [vmem:[#allocation2 + $0x4] sm:$0x8] %v421_v7  ;;  %v474_v10 = vld [vmem:[#allocation2 + $0xf4] sm:$0x8]  ;;  %s4097_s26 = sshll.u32 %s6222_s19, 7  ;;  %s3707_s27 = sshll.u32 %s6222_s19, 1 }
  0x10   : > { %2022 = vmatpush.bf16.msra.mxu0 %v4105_v1  ;;  %4522 = vmatpush.bf16.msra.mxu1 %v4105_v1  ;;  %436 = vst [vmem:[#allocation2 + $0x160] sm:$0xf] %v4577_v3  ;;  %v463_v11 = vsel %vm4622_vm2, 0, %v462_v9  ;;  %v475_v12 = vsel %vm4622_vm2, 0, %v474_v10  ;;  %s4646_s30 = scalar_lea.vmem %s6023_s0, %s4097_s26  ;;  %s243_s8 = scalar_lea.vmem %s6024_s1, %s3707_s27  ;;  %v441_v13 = vld [vmem:[#allocation2 + $0x18] sm:$0x8] }
  0x11   : > { %4523 = vmatpush.bf16.msra.mxu2 %v4105_v1  ;;  %4524 = vmatpush.bf16.msra.mxu3 %v4105_v1  ;;  %452 = vst [vmem:[#allocation2 + $0x54] sm:$0x8] %v451_v8  ;;  %v254_v14 = vld [vmem:[%s243_s8] sm:$0x3]  ;;  %v4429_v15 = vld [vmem:[%s4646_s30 + $0x18] sm:$0xff]   ;;  %v442_v31 = vsel %vm4622_vm2, 0, %v441_v13  ;;  %s5657_s10 = scalar_lea.vmem %s6027_s4, %s4097_s26  ;;  %s252_s12 = scalar_lea.vmem %s6028_s5, %s3707_s27 }
  0x12   : > { %v4433_v16 = vld [vmem:[%s4646_s30 + $0x38] sm:$0xff]   ;;  %464 = vst [vmem:[#allocation2 + $0xa4] sm:$0x8] %v463_v11  ;;  %v4185_v17 = vunpack.c.l.bf16 %v4429_v15  ;;  %v4186_v18 = vunpack.c.h.bf16 %v4429_v15  ;;  %v4655_v19 = vperm.slane %v254_v14, 0  ;;  %v4657_v20 = vperm.slane %v254_v14, 1  ;;  %v4172_v37 = vld [vmem:[%s4646_s30] sm:$0xff]  }
  0x13   : > { %v4437_v21 = vld [vmem:[%s4646_s30 + $0x58] sm:$0xff]   ;;  %476 = vst [vmem:[#allocation2 + $0xf4] sm:$0x8] %v475_v12  ;;  %vm1092_vm3 = vsmask.f32 4352  ;;  %v4201_v24 = vunpack.c.l.bf16 %v4433_v16  ;;  %v4202_v25 = vunpack.c.h.bf16 %v4433_v16  ;;  %v4173_v41 = vunpack.c.l.bf16 %v4172_v37  ;;  %v4101_v59 = vld [vmem:[%s6025_s2 + $0x10] sm:$0xff] }
  0x14   : > { %2023 = vmatpush.bf16.msra.mxu0 %v4104_v6  ;;  %4525 = vmatpush.bf16.msra.mxu1 %v4104_v6  ;;  %v4663_v23 = vld [vmem:[#allocation2 + $0x8] sm:$0xff]   ;;  %v4217_v26 = vunpack.c.l.bf16 %v4437_v21  ;;  %v4218_v27 = vunpack.c.h.bf16 %v4437_v21  ;;  %v326_v29 = vmul.f32 %v4185_v17, %v4655_v19  ;;  %v327_v30 = vmul.f32 %v4186_v18, %v4655_v19  ;;  %443 = vst [vmem:[#allocation2 + $0x18] sm:$0x8] %v442_v31  ;;  %v4102_v42 = vld [vmem:[%s6025_s2 + $0x18] sm:$0xff]  ;;  %v4430_v0 = vld [vmem:[%s4646_s30 + $0x20] sm:$0xff]  }
  0x15   : > { %4526 = vmatpush.bf16.msra.mxu2 %v4104_v6  ;;  %4527 = vmatpush.bf16.msra.mxu3 %v4104_v6  ;;  %v4278_v28 = vunpack.c.h.b16 %v4663_v23  ;;  %v334_v33 = vmul.f32 %v4201_v24, %v4655_v19  ;;  %v335_v34 = vmul.f32 %v4202_v25, %v4655_v19  ;;  %v4174_v63 = vunpack.c.h.bf16 %v4172_v37  ;;  %v453_v6 = vld [vmem:[#allocation2 + $0x68] sm:$0x8] }
  0x16   : > { %v4543_v32 = vld [vmem:[#allocation2 + $0x4] sm:$0xff]   ;;  %v342_v35 = vmul.f32 %v4217_v26, %v4655_v19  ;;  %v343_v36 = vmul.f32 %v4218_v27, %v4655_v19  ;;  %v359_v39 = vadd.f32 %v4657_v20, %v326_v29  ;;  %v360_v40 = vadd.f32 %v4657_v20, %v327_v30 }
  0x17   : > { %v782_v38 = vpack.c.b16 %v4278_v28, %v4278_v28  ;;  %v1094_v43 = vshrl.u32 %v4543_v32, 16  ;;  %v1097_v44 = vshll.u32 %v4543_v32, 16  ;;  %v367_v45 = vadd.f32 %v4657_v20, %v334_v33  ;;  %v4100_v15 = vld [vmem:[%s6025_s2 + $0x8] sm:$0xff] }
  0x18   : > { %2024 = vmatpush.bf16.msra.mxu0 %v4103_v22  ;;  %4528 = vmatpush.bf16.msra.mxu1 %v4103_v22  ;;  %v368_v46 = vadd.f32 %v4657_v20, %v335_v34  ;;  %v391_v49 = vmax.f32 %v359_v39, 0.0  ;;  %v392_v50 = vmax.f32 %v360_v40, 0.0  ;;  %v375_v58 = vadd.f32 %v4657_v20, %v342_v35  ;;  %v4099_v35 = vld [vmem:[%s6025_s2] sm:$0xff] }
  0x19   : > { %4529 = vmatpush.bf16.msra.mxu2 %v4103_v22  ;;  %4530 = vmatpush.bf16.msra.mxu3 %v4103_v22  ;;  %v1102_v47 = vshrl.u32 %v782_v38, 16  ;;  %v1105_v48 = vshll.u32 %v782_v38, 16  ;;  %v1096_v51 = vrot.slane %v1094_v43, 3  ;;  %v1099_v52 = vrot.slane %v1097_v44, 4  ;;  %v4122_v43 = vld [vmem:[%s6025_s2 + $0xb8] sm:$0xff] }
  0x1a   : > { %v399_v53 = vmax.f32 %v367_v45, 0.0  ;;  %v400_v54 = vmax.f32 %v368_v46, 0.0  ;;  %v4243_v57 = vpack.c.bf16 %v392_v50, %v391_v49  ;;  %v376_v62 = vadd.f32 %v4657_v20, %v343_v36  ;;  %v4130_v50 = vld [vmem:[%s6025_s2 + $0xf8] sm:$0xff] }
  0x1b   : > { %v1104_v55 = vrot.slane %v1102_v47, 3  ;;  %v1107_v56 = vrot.slane %v1105_v48, 4  ;;  %v1100_v60 = vor.u32 %v1099_v52, %v1096_v51  ;;  %v407_v4 = vmax.f32 %v375_v58, 0.0 }
  0x1c   : > { %2025 = vmatpush.bf16.msra.mxu0 %v4102_v42  ;;  %4531 = vmatpush.bf16.msra.mxu1 %v4102_v42  ;;  %v4253_v61 = vpack.c.bf16 %v400_v54, %v399_v53  ;;  %4443 = vst [vmem:[#allocation2 + $0x58] sm:$0xff] %v4243_v57   ;;  %v4294_v3 = vunpack.c.h.b16 %v4243_v57  ;;  %v320_v5 = vmul.f32 %v4173_v41, %v4655_v19  ;;  %v408_v8 = vmax.f32 %v376_v62, 0.0  ;;  %v4114_v54 = vld [vmem:[%s6025_s2 + $0x78] sm:$0xff] }
  0x1d   : > { %4532 = vmatpush.bf16.msra.mxu2 %v4102_v42  ;;  %4533 = vmatpush.bf16.msra.mxu3 %v4102_v42  ;;  %v1108_v1 = vor.u32 %v1107_v56, %v1104_v55  ;;  %v321_v9 = vmul.f32 %v4174_v63, %v4655_v19  ;;  %v4189_v10 = vunpack.c.l.bf16 %v4430_v0  ;;  %v4190_v14 = vunpack.c.h.bf16 %v4430_v0  ;;  %v4434_v56 = vld [vmem:[%s4646_s30 + $0x40] sm:$0xff]  }
  0x1e   : > { %4445 = vst [vmem:[#allocation2 + $0xa8] sm:$0xff] %v4253_v61   ;;  %v4310_v7 = vunpack.c.h.b16 %v4253_v61  ;;  %v790_v12 = vpack.c.b16 %v4294_v3, %v4294_v3  ;;  %v353_v13 = vadd.f32 %v4657_v20, %v320_v5  ;;  %v4263_v17 = vpack.c.bf16 %v408_v8, %v407_v4  ;;  %v465_v4 = vld [vmem:[#allocation2 + $0xb8] sm:$0x8] }
  0x1f   : > { %v4691_v11 = vsel %vm1092_vm3, %v1100_v60, %v1108_v1  ;;  %v354_v18 = vadd.f32 %v4657_v20, %v321_v9  ;;  %v454_v21 = vsel %vm4622_vm2, 0, %v453_v6  ;;  %v328_v26 = vmul.f32 %v4189_v10, %v4655_v19  ;;  %v4138_v60 = vld [vmem:[%s6025_s2 + $0x138] sm:$0xff]  ;;  %v4129_v6 = vld [vmem:[%s6025_s2 + $0xf0] sm:$0xff] }
  0x20   : > { %2026 = vmatpush.bf16.msra.mxu0 %v4101_v59  ;;  %4534 = vmatpush.bf16.msra.mxu1 %v4101_v59  ;;  %v798_v16 = vpack.c.b16 %v4310_v7, %v4310_v7  ;;  %v1274_v22 = vshrl.u32 %v790_v12, 16  ;;  %v1277_v24 = vshll.u32 %v790_v12, 16  ;;  %v385_v25 = vmax.f32 %v353_v13, 0.0  ;;  %455 = vst [vmem:[#allocation2 + $0x68] sm:$0x8] %v454_v21 }
  0x21   : > { %4535 = vmatpush.bf16.msra.mxu2 %v4101_v59  ;;  %4536 = vmatpush.bf16.msra.mxu3 %v4101_v59  ;;  %4447 = vst [vmem:[#allocation2 + $0xf8] sm:$0xff] %v4263_v17   ;;  %v4326_v29 = vunpack.c.h.b16 %v4263_v17  ;;  %v386_v30 = vmax.f32 %v354_v18, 0.0  ;;  %v329_v34 = vmul.f32 %v4190_v14, %v4655_v19  ;;  %v361_v44 = vadd.f32 %v4657_v20, %v328_v26  ;;  %v4121_v14 = vld [vmem:[%s6025_s2 + $0xb0] sm:$0xff] }
  0x22   : > { %v1446_v27 = vshrl.u32 %v798_v16, 16  ;;  %v1449_v28 = vshll.u32 %v798_v16, 16  ;;  %v4701_v31 = vrot.slane %v1274_v22, 3  ;;  %v4703_v32 = vrot.slane %v1277_v24, 4  ;;  %v4438_v22 = vld [vmem:[%s4646_s30 + $0x60] sm:$0xff]  }
  0x23   : > { %v537_v33 = vpack.c.bf16 %v385_v25, %v385_v25  ;;  %v4545_v36 = vld [vmem:[#allocation2 + $0x54] sm:$0xff]   ;;  %v806_v39 = vpack.c.b16 %v4326_v29, %v4326_v29  ;;  %v538_v40 = vpack.c.bf16 %v386_v30, %v386_v30  ;;  %v362_v45 = vadd.f32 %v4657_v20, %v329_v34 }
  0x24   : > { %2027 = vmatpush.bf16.msra.mxu0 %v4100_v15  ;;  %4537 = vmatpush.bf16.msra.mxu1 %v4100_v15  ;;  %v4709_v37 = vrot.slane %v1446_v27, 3  ;;  %v4711_v38 = vrot.slane %v1449_v28, 4  ;;  %v1280_v41 = vor.u32 %v4703_v32, %v4701_v31  ;;  %v1266_v46 = vshrl.u32 %v4545_v36, 16 }
  0x25   : > { %4538 = vmatpush.bf16.msra.mxu2 %v4100_v15  ;;  %4539 = vmatpush.bf16.msra.mxu3 %v4100_v15  ;;  %v4547_v42 = vld [vmem:[#allocation2 + $0xa4] sm:$0xff]   ;;  %569 = vst [vmem:[#allocation2 + $0x1c] sm:$0xf] %v537_v33  ;;  %v1269_v47 = vshll.u32 %v4545_v36, 16  ;;  %v1618_v49 = vshrl.u32 %v806_v39, 16  ;;  %v1621_v53 = vshll.u32 %v806_v39, 16  ;;  %v4205_v8 = vunpack.c.l.bf16 %v4434_v56 }
  0x26   : > { %v1452_v48 = vor.u32 %v4711_v38, %v4709_v37  ;;  %570 = vst [vmem:[#allocation2 + $0x20] sm:$0xf] %v538_v40  ;;  %v1438_v51 = vshrl.u32 %v4547_v42, 16  ;;  %v1441_v52 = vshll.u32 %v4547_v42, 16  ;;  %v393_v55 = vmax.f32 %v361_v44, 0.0  ;;  %v4113_v15 = vld [vmem:[%s6025_s2 + $0x70] sm:$0xff] }
  0x27   : > { %v1268_v57 = vrot.slane %v1266_v46, 3  ;;  %v1271_v58 = vrot.slane %v1269_v47, 4  ;;  %v1620_v59 = vrot.slane %v1618_v49, 3  ;;  %v394_v61 = vmax.f32 %v362_v45, 0.0  ;;  %v4120_v37 = vld [vmem:[%s6025_s2 + $0xa8] sm:$0xff]  ;;  %v4137_v39 = vld [vmem:[%s6025_s2 + $0x130] sm:$0xff] }
  0x28   : > { %2028 = vmatpush.bf16.msra.mxu0 %v4099_v35  ;;  %4540 = vmatpush.bf16.msra.mxu1 %v4099_v35  ;;  %v1440_v62 = vrot.slane %v1438_v51, 3  ;;  %v1443_v63 = vrot.slane %v1441_v52, 4  ;;  %v4549_v0 = vld [vmem:[#allocation2 + $0xf4] sm:$0xff]   ;;  %v1623_v1 = vrot.slane %v1621_v53, 4  ;;  %v545_v3 = vpack.c.bf16 %v393_v55, %v393_v55  ;;  %v4128_v38 = vld [vmem:[%s6025_s2 + $0xe8] sm:$0xff] }
  0x29   : > { %4541 = vmatpush.bf16.msra.mxu2 %v4099_v35  ;;  %4542 = vmatpush.bf16.msra.mxu3 %v4099_v35  ;;  %v1272_v5 = vor.u32 %v1271_v58, %v1268_v57  ;;  %v546_v7 = vpack.c.bf16 %v394_v61, %v394_v61  ;;  %v4206_v9 = vunpack.c.h.bf16 %v4434_v56  ;;  %v1610_v12 = vshrl.u32 %v4549_v0, 16  ;;  %v4127_v61 = vld [vmem:[%s6025_s2 + $0xe0] sm:$0xff] }
  0x2a   : > { %v1444_v10 = vor.u32 %v1443_v63, %v1440_v62  ;;  %v1613_v13 = vshll.u32 %v4549_v0, 16  ;;  %577 = vst [vmem:[#allocation2 + $0x6c] sm:$0xf] %v545_v3  ;;  %v466_v21 = vsel %vm4622_vm2, 0, %v465_v4  ;;  %v1624_v27 = vor.u32 %v1623_v1, %v1620_v59  ;;  %v4111_v3 = vld [vmem:[%s6025_s2 + $0x60] sm:$0xff]  ;;  %v4427_v4 = vld [vmem:[%s4646_s30 + $0x8] sm:$0xff]  }
  0x2b   : > { %2029 = vmatmul.bf16.vlgmr.msra.gmra.mxu0 %v4691_v11  ;;  %v4743_v16 = vsel %vm1092_vm3, %v1272_v5, %v1280_v41  ;;  %578 = vst [vmem:[#allocation2 + $0x70] sm:$0xf] %v546_v7  ;;  %v336_v11 = vmul.f32 %v4205_v8, %v4655_v19  ;;  %v337_v18 = vmul.f32 %v4206_v9, %v4655_v19  ;;  %v1612_v25 = vrot.slane %v1610_v12, 3 }
  0x2c   : > { %2110 = vmatpush.bf16.msrb.mxu1 %v4114_v54  ;;  %6063 = vst [vmem:[#allocation3_spill] sm:$0xff] %v4743_v16  ;;  %2648 = vmatpush.bf16.msrb.mxu0 %v4138_v60  ;;  %v4745_v17 = vld [vmem:[#allocation2 + $0x18] sm:$0xff]   ;;  %v4754_v24 = vsel %vm1092_vm3, %v1444_v10, %v1452_v48  ;;  %v1615_v26 = vrot.slane %v1613_v13, 4  ;;  %v4221_v35 = vunpack.c.l.bf16 %v4438_v22  ;;  %v4222_v36 = vunpack.c.h.bf16 %v4438_v22  ;;  %v4136_v48 = vld [vmem:[%s6025_s2 + $0x128] sm:$0xff]  ;;  %v4119_v60 = vld [vmem:[%s6025_s2 + $0xa0] sm:$0xff] }
  0x2d   : > { %2199 = vmatpush.bf16.msrb.mxu2 %v4122_v43  ;;  %2559 = vmatpush.bf16.msrb.mxu3 %v4130_v50  ;;  %6064 = vst [vmem:[#allocation4_spill] sm:$0xff] %v4754_v24  ;;  %v607_v28 = vld [vmem:[#allocation2 + $0x20] sm:$0xf]  ;;  %v1137_v30 = vshrl.u32 %v4745_v17, 16  ;;  %v1140_v31 = vshll.u32 %v4745_v17, 16  ;;  %v369_v32 = vadd.f32 %v4657_v20, %v336_v11  ;;  %v370_v34 = vadd.f32 %v4657_v20, %v337_v18  ;;  %v4112_v43 = vld [vmem:[%s6025_s2 + $0x68] sm:$0xff] }
  0x2e   : > { %2049 = vmatmul.bf16.vlgmr.msra.gmra.mxu1 %v4743_v16  ;;  %467 = vst [vmem:[#allocation2 + $0xb8] sm:$0x8] %v466_v21  ;;  %2069 = vmatmul.bf16.vlgmr.msra.gmra.mxu2 %v4754_v24  ;;  %v4757_v29 = vunpack.c.l.b16 %v607_v28  ;;  %v1616_v33 = vor.u32 %v1615_v26, %v1612_v25  ;;  %v344_v47 = vmul.f32 %v4221_v35, %v4655_v19  ;;  %v477_v54 = vld [vmem:[#allocation2 + $0x108] sm:$0x8]  ;;  %v4177_v21 = vunpack.c.l.bf16 %v4427_v4 }
  0x2f   : > { %v1139_v41 = vrot.slane %v1137_v30, 3  ;;  %v1142_v42 = vrot.slane %v1140_v31, 4  ;;  %v401_v45 = vmax.f32 %v369_v32, 0.0  ;;  %v402_v46 = vmax.f32 %v370_v34, 0.0  ;;  %v4431_v22 = vld [vmem:[%s4646_s30 + $0x28] sm:$0xff]  }
  0x30   : > { %2111 = vmatpush.bf16.msrb.mxu1 %v4113_v15  ;;  %v784_v40 = vpack.c.b16 %v4757_v29, %v4757_v29  ;;  %v4778_v44 = vsel %vm1092_vm3, %v1616_v33, %v1624_v27  ;;  %2649 = vmatpush.bf16.msrb.mxu0 %v4137_v39  ;;  %v345_v53 = vmul.f32 %v4222_v36, %v4655_v19  ;;  %v478_v13 = vsel %vm4622_vm2, 0, %v477_v54  ;;  %v456_v30 = vld [vmem:[#allocation2 + $0x7c] sm:$0x8]  ;;  %v4435_v31 = vld [vmem:[%s4646_s30 + $0x48] sm:$0xff]  }
  0x31   : > { %2560 = vmatpush.bf16.msrb.mxu3 %v4129_v6  ;;  %2200 = vmatpush.bf16.msrb.mxu2 %v4121_v14  ;;  %v1143_v49 = vor.u32 %v1142_v42, %v1139_v41  ;;  %v4455_v52 = vld [vmem:[#allocation2 + $0x68] sm:$0xff]   ;;  %v553_v59 = vpack.c.bf16 %v401_v45, %v401_v45  ;;  %v554_v1 = vpack.c.bf16 %v402_v46, %v402_v46  ;;  %v4178_v28 = vunpack.c.h.bf16 %v4427_v4 }
  0x32   : > { %2089 = vmatmul.bf16.vlgmr.msra.gmra.mxu3 %v4778_v44  ;;  %v1145_v50 = vshrl.u32 %v784_v40, 16  ;;  %v1148_v51 = vshll.u32 %v784_v40, 16  ;;  %v4298_v55 = vunpack.c.h.b16 %v4455_v52  ;;  %v623_v56 = vld [vmem:[#allocation2 + $0x70] sm:$0xf]  ;;  %v1309_v57 = vshrl.u32 %v4455_v52, 16 }
  0x33   : > { %v1312_v58 = vshll.u32 %v4455_v52, 16  ;;  %v744_v0 = vunpack.c.l.b16 %v623_v56  ;;  %585 = vst [vmem:[#allocation2 + $0xbc] sm:$0xf] %v553_v59  ;;  %v377_v7 = vadd.f32 %v4657_v20, %v344_v47  ;;  %v378_v8 = vadd.f32 %v4657_v20, %v345_v53  ;;  %v444_v14 = vld [vmem:[#allocation2 + $0x2c] sm:$0x8] }
  0x34   : > { %v1147_v62 = vrot.slane %v1145_v50, 3  ;;  %v1150_v63 = vrot.slane %v1148_v51, 4  ;;  %2112 = vmatpush.bf16.msrb.mxu1 %v4112_v43  ;;  %v1311_v5 = vrot.slane %v1309_v57, 3  ;;  %2650 = vmatpush.bf16.msrb.mxu0 %v4136_v48  ;;  %586 = vst [vmem:[#allocation2 + $0xc0] sm:$0xf] %v554_v1  ;;  %v322_v34 = vmul.f32 %v4177_v21, %v4655_v19 }
  0x35   : > { %2201 = vmatpush.bf16.msrb.mxu2 %v4120_v37  ;;  %2561 = vmatpush.bf16.msrb.mxu3 %v4128_v38  ;;  %v1314_v6 = vrot.slane %v1312_v58, 4  ;;  %v792_v10 = vpack.c.b16 %v744_v0, %v744_v0  ;;  %v4798_v12 = vpack.c.b16 %v744_v0, %v4298_v55  ;;  %v409_v11 = vmax.f32 %v377_v7, 0.0  ;;  %479 = vst [vmem:[#allocation2 + $0x108] sm:$0x8] %v478_v13 }
  0x36   : > { %v1151_v9 = vor.u32 %v1150_v63, %v1147_v62  ;;  %v410_v18 = vmax.f32 %v378_v8, 0.0  ;;  %v445_v35 = vsel %vm4622_vm2, 0, %v444_v14  ;;  %v323_v38 = vmul.f32 %v4178_v28, %v4655_v19 }
  0x37   : > { %v1315_v15 = vor.u32 %v1314_v6, %v1311_v5  ;;  %v1317_v26 = vshrl.u32 %v792_v10, 16  ;;  %v1320_v27 = vshll.u32 %v792_v10, 16  ;;  %v561_v32 = vpack.c.bf16 %v409_v11, %v409_v11  ;;  %446 = vst [vmem:[#allocation2 + $0x2c] sm:$0x8] %v445_v35  ;;  %v4118_v35 = vld [vmem:[%s6025_s2 + $0x98] sm:$0xff] }
  0x38   : > { %v4804_v25 = vsel %vm1092_vm3, %v1143_v49, %v1151_v9  ;;  %2113 = vmatpush.bf16.msrb.mxu1 %v4111_v3  ;;  %v562_v33 = vpack.c.bf16 %v410_v18, %v410_v18  ;;  %v4193_v39 = vunpack.c.l.bf16 %v4431_v22  ;;  %v355_v40 = vadd.f32 %v4657_v20, %v322_v34 }
  0x39   : > { %2202 = vmatpush.bf16.msrb.mxu2 %v4119_v60  ;;  %2562 = vmatpush.bf16.msrb.mxu3 %v4127_v61  ;;  %v1319_v36 = vrot.slane %v1317_v26, 3  ;;  %v1322_v37 = vrot.slane %v1320_v27, 4  ;;  %593 = vst [vmem:[#allocation2 + $0x10c] sm:$0xf] %v561_v32  ;;  %v4194_v41 = vunpack.c.h.bf16 %v4431_v22  ;;  %v457_v42 = vsel %vm4622_vm2, 0, %v456_v30 }
  0x3a   : > { %v4209_v43 = vunpack.c.l.bf16 %v4435_v31  ;;  %v4459_v46 = vld [vmem:[#allocation2 + $0xb8] sm:$0xff]   ;;  %594 = vst [vmem:[#allocation2 + $0x110] sm:$0xf] %v562_v33  ;;  %v356_v47 = vadd.f32 %v4657_v20, %v323_v38  ;;  %v330_v48 = vmul.f32 %v4193_v39, %v4655_v19  ;;  %v4210_v49 = vunpack.c.h.bf16 %v4435_v31 }
  0x3b   : > { %2034 = vmatmul.bf16.gmra.mxu0 %v4804_v25  ;;  %v1323_v45 = vor.u32 %v1322_v37, %v1319_v36  ;;  %v4314_v50 = vunpack.c.h.b16 %v4459_v46  ;;  %v639_v51 = vld [vmem:[#allocation2 + $0xc0] sm:$0xf]  ;;  %v1481_v52 = vshrl.u32 %v4459_v46, 16  ;;  %v1484_v53 = vshll.u32 %v4459_v46, 16  ;;  %458 = vst [vmem:[#allocation2 + $0x7c] sm:$0x8] %v457_v42 }
  0x3c   : > { %v387_v54 = vmax.f32 %v355_v40, 0.0  ;;  %v756_v56 = vunpack.c.l.b16 %v639_v51  ;;  %v388_v57 = vmax.f32 %v356_v47, 0.0  ;;  %v331_v58 = vmul.f32 %v4194_v41, %v4655_v19  ;;  %v4126_v36 = vld [vmem:[%s6025_s2 + $0xd8] sm:$0xff]  ;;  %v4135_v37 = vld [vmem:[%s6025_s2 + $0x120] sm:$0xff]  ;;  %v468_v42 = vld [vmem:[#allocation2 + $0xcc] sm:$0x8] }
  0x3d   : > { %v4818_v55 = vsel %vm1092_vm3, %v1315_v15, %v1323_v45  ;;  %v1483_v59 = vrot.slane %v1481_v52, 3  ;;  %v1486_v60 = vrot.slane %v1484_v53, 4  ;;  %v363_v61 = vadd.f32 %v4657_v20, %v330_v48  ;;  %2203 = vmatpush.bf16.msrb.mxu2 %v4118_v35  ;;  %2563 = vmatpush.bf16.msrb.mxu3 %v4126_v36  ;;  %v4125_v51 = vld [vmem:[%s6025_s2 + $0xd0] sm:$0xff] }
  0x3e   : > { %6065 = vst [vmem:[#allocation5_spill] sm:$0xff] %v4818_v55  ;;  %2054 = vmatmul.bf16.gmra.mxu1 %v4818_v55  ;;  %v338_v62 = vmul.f32 %v4209_v43, %v4655_v19  ;;  %v800_v63 = vpack.c.b16 %v756_v56, %v756_v56  ;;  %v4824_v0 = vpack.c.b16 %v756_v56, %v4314_v50  ;;  %v4110_v43 = vld [vmem:[%s6025_s2 + $0x58] sm:$0xff]  ;;  %v4117_v50 = vld [vmem:[%s6025_s2 + $0x90] sm:$0xff]  ;;  %vm425_vm4 = vcmask 1040384  }
  0x3f   : > { %v4826_v1 = vpack.c.bf16 %v388_v57, %v387_v54  ;;  %v364_v3 = vadd.f32 %v4657_v20, %v331_v58  ;;  %v1487_v4 = vor.u32 %v1486_v60, %v1483_v59  ;;  %v395_v5 = vmax.f32 %v363_v61, 0.0  ;;  %2651 = vmatpush.bf16.msrb.mxu0 %v4135_v37  ;;  %2114 = vmatpush.bf16.msrb.mxu1 %v4110_v43  ;;  %v4134_v57 = vld [vmem:[%s6025_s2 + $0x118] sm:$0xff]  ;;  %v4109_v58 = vld [vmem:[%s6025_s2 + $0x50] sm:$0xff] }
  0x40   : > { %v339_v6 = vmul.f32 %v4210_v49, %v4655_v19  ;;  %v371_v7 = vadd.f32 %v4657_v20, %v338_v62  ;;  %v1489_v8 = vshrl.u32 %v800_v63, 16  ;;  %v1492_v9 = vshll.u32 %v800_v63, 16  ;;  %v4463_v10 = vld [vmem:[#allocation2 + $0x108] sm:$0xff]   ;;  %v4428_v35 = vld [vmem:[%s4646_s30 + $0x10] sm:$0xff]  }
  0x41   : > { %4442 = vst [vmem:[#allocation2 + $0x30] sm:$0xff] %v4826_v1   ;;  %v4286_v13 = vunpack.c.h.b16 %v4826_v1  ;;  %v396_v14 = vmax.f32 %v364_v3, 0.0  ;;  %v4330_v15 = vunpack.c.h.b16 %v4463_v10  ;;  %v655_v11 = vld [vmem:[#allocation2 + $0x110] sm:$0xf]  ;;  %v1653_v18 = vshrl.u32 %v4463_v10, 16  ;;  %v4439_v49 = vld [vmem:[%s4646_s30 + $0x68] sm:$0xff]   ;;  %2204 = vmatpush.bf16.msrb.mxu2 %v4117_v50  ;;  %2564 = vmatpush.bf16.msrb.mxu3 %v4125_v51 }
  0x42   : > { %v1656_v21 = vshll.u32 %v4463_v10, 16  ;;  %v372_v22 = vadd.f32 %v4657_v20, %v339_v6  ;;  %v1491_v26 = vrot.slane %v1489_v8, 3  ;;  %v1494_v27 = vrot.slane %v1492_v9, 4 }
  0x43   : > { %v768_v28 = vunpack.c.l.b16 %v655_v11  ;;  %v786_v30 = vpack.c.b16 %v4286_v13, %v4286_v13  ;;  %v1655_v31 = vrot.slane %v1653_v18, 3  ;;  %v4834_v33 = vpack.c.bf16 %v396_v14, %v395_v5  ;;  %v480_v18 = vld [vmem:[#allocation2 + $0x11c] sm:$0x8]  ;;  %2652 = vmatpush.bf16.msrb.mxu0 %v4134_v57  ;;  %2115 = vmatpush.bf16.msrb.mxu1 %v4109_v58 }
  0x44   : > { %v1658_v32 = vrot.slane %v1656_v21, 4  ;;  %v403_v34 = vmax.f32 %v371_v7, 0.0  ;;  %v1495_v38 = vor.u32 %v1494_v27, %v1491_v26  ;;  %v404_v48 = vmax.f32 %v372_v22, 0.0 }
  0x45   : > { %v808_v39 = vpack.c.b16 %v768_v28, %v768_v28  ;;  %v4845_v40 = vpack.c.b16 %v768_v28, %v4330_v15  ;;  %v1188_v41 = vshrl.u32 %v786_v30, 16  ;;  %v1191_v46 = vshll.u32 %v786_v30, 16  ;;  %4444 = vst [vmem:[#allocation2 + $0x80] sm:$0xff] %v4834_v33  }
  0x46   : > { %v1659_v45 = vor.u32 %v1658_v32, %v1655_v31  ;;  %v4302_v47 = vunpack.c.h.b16 %v4834_v33  ;;  %v4860_v52 = vsel %vm1092_vm3, %v1487_v4, %v1495_v38  ;;  %v469_v62 = vsel %vm4622_vm2, 0, %v468_v42 }
  0x47   : > { %6066 = vst [vmem:[#allocation6_spill] sm:$0xff] %v4860_v52  ;;  %v1661_v53 = vshrl.u32 %v808_v39, 16  ;;  %v1664_v54 = vshll.u32 %v808_v39, 16  ;;  %v1190_v56 = vrot.slane %v1188_v41, 3  ;;  %2074 = vmatmul.bf16.gmra.mxu2 %v4860_v52  ;;  %v1193_v60 = vrot.slane %v1191_v46, 4 }
  0x48   : > { %v4544_v59 = vld [vmem:[#allocation2 + $0x2c] sm:$0xff]   ;;  %v794_v61 = vpack.c.b16 %v4302_v47, %v4302_v47  ;;  %v4258_v63 = vpack.c.bf16 %v404_v48, %v403_v34  ;;  %470 = vst [vmem:[#allocation2 + $0xcc] sm:$0x8] %v469_v62  ;;  %v4225_v5 = vunpack.c.l.bf16 %v4439_v49  ;;  %v4226_v6 = vunpack.c.h.bf16 %v4439_v49  ;;  %v447_v41 = vld [vmem:[#allocation2 + $0x40] sm:$0x8] }
  0x49   : > { %v1663_v3 = vrot.slane %v1661_v53, 3  ;;  %v1666_v4 = vrot.slane %v1664_v54, 4  ;;  %v1180_v7 = vshrl.u32 %v4544_v59, 16  ;;  %v1183_v8 = vshll.u32 %v4544_v59, 16 }
  0x4a   : > { %v1194_v9 = vor.u32 %v1193_v60, %v1190_v56  ;;  %v1360_v10 = vshrl.u32 %v794_v61, 16  ;;  %4446 = vst [vmem:[#allocation2 + $0xd0] sm:$0xff] %v4258_v63   ;;  %v1363_v14 = vshll.u32 %v794_v61, 16  ;;  %v4318_v15 = vunpack.c.h.b16 %v4258_v63 }
  0x4b   : > { %v1667_v13 = vor.u32 %v1666_v4, %v1663_v3  ;;  %v346_v11 = vmul.f32 %v4225_v5, %v4655_v19  ;;  %v1182_v21 = vrot.slane %v1180_v7, 3  ;;  %v1185_v22 = vrot.slane %v1183_v8, 4  ;;  %v4432_v5 = vld [vmem:[%s4646_s30 + $0x30] sm:$0xff]  }
  0x4c   : > { %v1362_v26 = vrot.slane %v1360_v10, 3  ;;  %v347_v27 = vmul.f32 %v4226_v6, %v4655_v19  ;;  %v4546_v30 = vld [vmem:[#allocation2 + $0x7c] sm:$0xff]   ;;  %v1365_v31 = vrot.slane %v1363_v14, 4  ;;  %v802_v32 = vpack.c.b16 %v4318_v15, %v4318_v15  ;;  %v459_v10 = vld [vmem:[#allocation2 + $0x90] sm:$0x8] }
  0x4d   : > { %v4874_v28 = vsel %vm1092_vm3, %v1659_v45, %v1667_v13  ;;  %v379_v34 = vadd.f32 %v4657_v20, %v346_v11  ;;  %v1186_v36 = vor.u32 %v1185_v22, %v1182_v21  ;;  %v481_v38 = vsel %vm4622_vm2, 0, %v480_v18 }
  0x4e   : > { %2094 = vmatmul.bf16.gmra.mxu3 %v4874_v28  ;;  %v380_v37 = vadd.f32 %v4657_v20, %v347_v27  ;;  %v4181_v39 = vunpack.c.l.bf16 %v4428_v35  ;;  %v1352_v42 = vshrl.u32 %v4546_v30, 16  ;;  %v1355_v43 = vshll.u32 %v4546_v30, 16  ;;  %482 = vst [vmem:[#allocation2 + $0x11c] sm:$0x8] %v481_v38  ;;  %v4436_v27 = vld [vmem:[%s4646_s30 + $0x50] sm:$0xff]  }
  0x4f   : > { %v1366_v45 = vor.u32 %v1365_v31, %v1362_v26  ;;  %v1532_v46 = vshrl.u32 %v802_v32, 16  ;;  %v4883_v47 = vsel %vm1092_vm3, %v1186_v36, %v1194_v9  ;;  %v1535_v48 = vshll.u32 %v802_v32, 16 }
  0x50   : > { %v411_v49 = vmax.f32 %v379_v34, 0.0  ;;  %v412_v50 = vmax.f32 %v380_v37, 0.0  ;;  %2039 = vmatmul.bf16.gmra.mxu0 %v4883_v47  ;;  %v1354_v51 = vrot.slane %v1352_v42, 3  ;;  %v1357_v53 = vrot.slane %v1355_v43, 4 }
  0x51   : > { %v4548_v54 = vld [vmem:[#allocation2 + $0xcc] sm:$0xff]   ;;  %v1534_v56 = vrot.slane %v1532_v46, 3  ;;  %v4182_v57 = vunpack.c.h.bf16 %v4428_v35  ;;  %v1537_v58 = vrot.slane %v1535_v48, 4  ;;  %v324_v60 = vmul.f32 %v4181_v39, %v4655_v19  ;;  %v471_v39 = vld [vmem:[#allocation2 + $0xe0] sm:$0x8] }
  0x52   : > { %v4268_v59 = vpack.c.bf16 %v412_v50, %v411_v49  ;;  %v448_v61 = vsel %vm4622_vm2, 0, %v447_v41  ;;  %v1358_v62 = vor.u32 %v1357_v53, %v1354_v51  ;;  %v1524_v63 = vshrl.u32 %v4548_v54, 16  ;;  %v4440_v46 = vld [vmem:[%s4646_s30 + $0x70] sm:$0xff]  }
  0x53   : > { %v1527_v3 = vshll.u32 %v4548_v54, 16  ;;  %v325_v4 = vmul.f32 %v4182_v57, %v4655_v19  ;;  %449 = vst [vmem:[#allocation2 + $0x40] sm:$0x8] %v448_v61  ;;  %v1538_v6 = vor.u32 %v1537_v58, %v1534_v56  ;;  %v357_v8 = vadd.f32 %v4657_v20, %v324_v60  ;;  %v483_v53 = vld [vmem:[#allocation2 + $0x130] sm:$0x8] }
  0x54   : > { %4448 = vst [vmem:[#allocation2 + $0x120] sm:$0xff] %v4268_v59   ;;  %v4334_v7 = vunpack.c.h.b16 %v4268_v59  ;;  %v4197_v9 = vunpack.c.l.bf16 %v4432_v5  ;;  %v4893_v13 = vsel %vm1092_vm3, %v1358_v62, %v1366_v45  ;;  %v1526_v14 = vrot.slane %v1524_v63, 3 }
  0x55   : > { %6067 = vst [vmem:[#allocation7_spill] sm:$0xff] %v4893_v13  ;;  %v1529_v15 = vrot.slane %v1527_v3, 4  ;;  %v358_v11 = vadd.f32 %v4657_v20, %v325_v4  ;;  %2059 = vmatmul.bf16.gmra.mxu1 %v4893_v13  ;;  %v389_v21 = vmax.f32 %v357_v8, 0.0  ;;  %v4198_v22 = vunpack.c.h.bf16 %v4432_v5  ;;  %v4116_v3 = vld [vmem:[%s6025_s2 + $0x88] sm:$0xff]  ;;  %v4133_v5 = vld [vmem:[%s6025_s2 + $0x110] sm:$0xff] }
  0x56   : > { %v810_v18 = vpack.c.b16 %v4334_v7, %v4334_v7  ;;  %v332_v26 = vmul.f32 %v4197_v9, %v4655_v19  ;;  %v460_v32 = vsel %vm4622_vm2, 0, %v459_v10  ;;  %v4213_v34 = vunpack.c.l.bf16 %v4436_v27  ;;  %v4124_v4 = vld [vmem:[%s6025_s2 + $0xc8] sm:$0xff]  ;;  %2205 = vmatpush.bf16.msrb.mxu2 %v4116_v3  ;;  %2653 = vmatpush.bf16.msrb.mxu0 %v4133_v5 }
  0x57   : > { %v1530_v30 = vor.u32 %v1529_v15, %v1526_v14  ;;  %v390_v31 = vmax.f32 %v358_v11, 0.0  ;;  %v541_v37 = vpack.c.bf16 %v389_v21, %v389_v21  ;;  %v333_v38 = vmul.f32 %v4198_v22, %v4655_v19  ;;  %461 = vst [vmem:[#allocation2 + $0x90] sm:$0x8] %v460_v32  ;;  %v4108_v10 = vld [vmem:[%s6025_s2 + $0x48] sm:$0xff]  ;;  %v4115_v14 = vld [vmem:[%s6025_s2 + $0x80] sm:$0xff]  ;;  %2565 = vmatpush.bf16.msrb.mxu3 %v4124_v4 }
  0x58   : > { %v1704_v35 = vshrl.u32 %v810_v18, 16  ;;  %v1707_v36 = vshll.u32 %v810_v18, 16  ;;  %v365_v43 = vadd.f32 %v4657_v20, %v332_v26  ;;  %v4214_v45 = vunpack.c.h.bf16 %v4436_v27  ;;  %v4123_v22 = vld [vmem:[%s6025_s2 + $0xc0] sm:$0xff]  ;;  %v4132_v26 = vld [vmem:[%s6025_s2 + $0x108] sm:$0xff]  ;;  %2116 = vmatpush.bf16.msrb.mxu1 %v4108_v10 }
  0x59   : > { %v4903_v41 = vsel %vm1092_vm3, %v1530_v30, %v1538_v6  ;;  %v542_v42 = vpack.c.bf16 %v390_v31, %v390_v31  ;;  %573 = vst [vmem:[#allocation2 + $0x44] sm:$0xf] %v541_v37  ;;  %v366_v50 = vadd.f32 %v4657_v20, %v333_v38  ;;  %v340_v51 = vmul.f32 %v4213_v34, %v4655_v19  ;;  %v4107_v27 = vld [vmem:[%s6025_s2 + $0x40] sm:$0xff] }
  0x5a   : > { %2079 = vmatmul.bf16.gmra.mxu2 %v4903_v41  ;;  %v1706_v48 = vrot.slane %v1704_v35, 3  ;;  %v1709_v49 = vrot.slane %v1707_v36, 4  ;;  %v397_v56 = vmax.f32 %v365_v43, 0.0  ;;  %v341_v57 = vmul.f32 %v4214_v45, %v4655_v19  ;;  %2654 = vmatpush.bf16.msrb.mxu0 %v4132_v26 }
  0x5b   : > { %v4550_v54 = vld [vmem:[#allocation2 + $0x11c] sm:$0xff]   ;;  %574 = vst [vmem:[#allocation2 + $0x48] sm:$0xf] %v542_v42  ;;  %v472_v58 = vsel %vm4622_vm2, 0, %v471_v39  ;;  %v4229_v59 = vunpack.c.l.bf16 %v4440_v46  ;;  %v398_v61 = vmax.f32 %v366_v50, 0.0  ;;  %v373_v62 = vadd.f32 %v4657_v20, %v340_v51  ;;  %2206 = vmatpush.bf16.msrb.mxu2 %v4115_v14  ;;  %2566 = vmatpush.bf16.msrb.mxu3 %v4123_v22 }
  0x5c   : > { %v1710_v60 = vor.u32 %v1709_v49, %v1706_v48  ;;  %473 = vst [vmem:[#allocation2 + $0xe0] sm:$0x8] %v472_v58  ;;  %v4230_v63 = vunpack.c.h.bf16 %v4440_v46  ;;  %v1696_v6 = vshrl.u32 %v4550_v54, 16  ;;  %v1699_v7 = vshll.u32 %v4550_v54, 16  ;;  %2117 = vmatpush.bf16.msrb.mxu1 %v4107_v27  ;;  %v4131_v54 = vld [vmem:[%s6025_s2 + $0x100] sm:$0xff] }
  0x5d   : > { %v549_v8 = vpack.c.bf16 %v397_v56, %v397_v56  ;;  %v374_v9 = vadd.f32 %v4657_v20, %v341_v57  ;;  %v550_v15 = vpack.c.bf16 %v398_v61, %v398_v61  ;;  %v405_v11 = vmax.f32 %v373_v62, 0.0 }
  0x5e   : > { %v348_v18 = vmul.f32 %v4229_v59, %v4655_v19  ;;  %v349_v21 = vmul.f32 %v4230_v63, %v4655_v19  ;;  %v1698_v30 = vrot.slane %v1696_v6, 3  ;;  %v1701_v31 = vrot.slane %v1699_v7, 4  ;;  %2655 = vmatpush.bf16.msrb.mxu0 %v4131_v54 }
  0x5f   : > { %581 = vst [vmem:[#allocation2 + $0x94] sm:$0xf] %v549_v8  ;;  %v406_v32 = vmax.f32 %v374_v9, 0.0  ;;  %v484_v34 = vsel %vm4622_vm2, 0, %v483_v53  ;;  %v557_v35 = vpack.c.bf16 %v405_v11, %v405_v11  ;;  %v836_v43 = vshrl.u32 %v4663_v23, 16 }
  0x60   : > { %582 = vst [vmem:[#allocation2 + $0x98] sm:$0xf] %v550_v15  ;;  %v381_v36 = vadd.f32 %v4657_v20, %v348_v18  ;;  %v382_v37 = vadd.f32 %v4657_v20, %v349_v21  ;;  %v1702_v38 = vor.u32 %v1701_v31, %v1698_v30  ;;  %v4945_v39 = vld [vmem:[#allocation2 + $0x40] sm:$0xff]   ;;  %v839_v57 = vshll.u32 %v4663_v23, 16 }
  0x61   : > { %v558_v42 = vpack.c.bf16 %v406_v32, %v406_v32  ;;  %485 = vst [vmem:[#allocation2 + $0x130] sm:$0x8] %v484_v34  ;;  %v1223_v46 = vshrl.u32 %v4945_v39, 16  ;;  %v1226_v48 = vshll.u32 %v4945_v39, 16  ;;  %v4282_v62 = vunpack.c.h.b16 %v4745_v17 }
  0x62   : > { %v615_v45 = vld [vmem:[#allocation2 + $0x48] sm:$0xf]  ;;  %589 = vst [vmem:[#allocation2 + $0xe4] sm:$0xf] %v557_v35  ;;  %v4951_v49 = vsel %vm1092_vm3, %v1702_v38, %v1710_v60  ;;  %v413_v51 = vmax.f32 %v381_v36, 0.0  ;;  %v414_v53 = vmax.f32 %v382_v37, 0.0 }
  0x63   : > { %v4953_v50 = vunpack.c.l.b16 %v615_v45  ;;  %590 = vst [vmem:[#allocation2 + $0xe8] sm:$0xf] %v558_v42  ;;  %2099 = vmatmul.bf16.gmra.mxu3 %v4951_v49  ;;  %v1225_v56 = vrot.slane %v1223_v46, 3  ;;  %v1228_v59 = vrot.slane %v1226_v48, 4  ;;  %v838_v3 = vrot.slane %v836_v43, 4  ;;  %v4154_v46 = vld [vmem:[%s6025_s2 + $0x1b8] sm:$0xff] }
  0x64   : > { %v565_v60 = vpack.c.bf16 %v413_v51, %v413_v51  ;;  %v566_v61 = vpack.c.bf16 %v414_v53, %v414_v53  ;;  %v841_v23 = vrot.slane %v839_v57, 5  ;;  %vm426_vm5 = vsmask.f32 256  ;;  %v428_v37 = vld [vmem:[#allocation2 + $0x10] sm:$0x1]  ;;  %v4162_v48 = vld [vmem:[%s6025_s2 + $0x1f8] sm:$0xff]  ;;  %3097 = vmatpush.bf16.msra.mxu2 %v4154_v46 }
  0x65   : > { %v788_v58 = vpack.c.b16 %v4953_v50, %v4953_v50  ;;  %v1229_v14 = vor.u32 %v1228_v59, %v1225_v56  ;;  %vm4967_vm6 = vmand %vm425_vm4, %vm426_vm5  ;;  %v6068_v36 = vmov 0  ;;  %v4972_v38 = vpack.c.b16 %v4757_v29, %v4282_v62  ;;  %v4146_v51 = vld [vmem:[%s6025_s2 + $0x178] sm:$0xff]  ;;  %3186 = vmatpush.bf16.msra.mxu3 %v4162_v48 }
  0x66   : > { %v4457_v63 = vld [vmem:[#allocation2 + $0x90] sm:$0xff]   ;;  %597 = vst [vmem:[#allocation2 + $0x134] sm:$0xf] %v565_v60  ;;  %v6069_v36 = vsel %vm4967_vm6, 4294967295, %v6068_v36  ;;  %v4974_v45 = vor.u32 %v841_v23, %v838_v3  ;;  %v4170_v57 = vld [vmem:[%s6025_s2 + $0x238] sm:$0xff]  ;;  %2737 = vmatpush.bf16.msra.mxu1 %v4146_v51  ;;  %vm1033_vm7 = vcmask 1042432  }
  0x67   : > { %v1231_v4 = vshrl.u32 %v788_v58, 16  ;;  %v1234_v5 = vshll.u32 %v788_v58, 16  ;;  %v4306_v6 = vunpack.c.h.b16 %v4457_v63  ;;  %v631_v7 = vld [vmem:[#allocation2 + $0x98] sm:$0xf]  ;;  %v1395_v8 = vshrl.u32 %v4457_v63, 16  ;;  %6070 = vst [vmem:[#allocation8_spill] sm:$0xff] %v6069_v36  ;;  %3275 = vmatpush.bf16.msra.mxu0 %v4170_v57 }
  0x68   : > { %v750_v9 = vunpack.c.l.b16 %v631_v7  ;;  %v1398_v10 = vshll.u32 %v4457_v63, 16  ;;  %598 = vst [vmem:[#allocation2 + $0x138] sm:$0xf] %v566_v61 }
  0x69   : > { %v1233_v15 = vrot.slane %v1231_v4, 3  ;;  %v1236_v11 = vrot.slane %v1234_v5, 4  ;;  %v1397_v18 = vrot.slane %v1395_v8, 3  ;;  %v4461_v21 = vld [vmem:[#allocation2 + $0xe0] sm:$0xff]   ;;  %v429_v4 = vsel %vm4967_vm6, 0, %v428_v37  ;;  %v4562_v5 = vld [vmem:[#allocation2 + $0x8] sm:$0xff]  }
  0x6a   : > { %v796_v17 = vpack.c.b16 %v750_v9, %v750_v9  ;;  %v4963_v22 = vpack.c.b16 %v750_v9, %v4306_v6  ;;  %v1400_v26 = vrot.slane %v1398_v10, 4  ;;  %v4322_v27 = vunpack.c.h.b16 %v4461_v21  ;;  %v647_v30 = vld [vmem:[#allocation2 + $0xe8] sm:$0xf]  ;;  %430 = vst [vmem:[#allocation2 + $0x10] sm:$0x1] %v429_v4 }
  0x6b   : > { %v1237_v31 = vor.u32 %v1236_v11, %v1233_v15  ;;  %v762_v32 = vunpack.c.l.b16 %v647_v30  ;;  %v1567_v34 = vshrl.u32 %v4461_v21, 16  ;;  %v1570_v35 = vshll.u32 %v4461_v21, 16 }
  0x6c   : > { %v1403_v42 = vshrl.u32 %v796_v17, 16  ;;  %v1406_v43 = vshll.u32 %v796_v17, 16  ;;  %v1401_v58 = vor.u32 %v1400_v26, %v1397_v18  ;;  %v4996_v6 = vrot.slane %v4562_v5, 5 }
  0x6d   : > { %v4986_v53 = vsel %vm1092_vm3, %v1229_v14, %v1237_v31  ;;  %v804_v29 = vpack.c.b16 %v762_v32, %v762_v32  ;;  %v4988_v54 = vpack.c.b16 %v762_v32, %v4322_v27  ;;  %v1569_v56 = vrot.slane %v1567_v34, 3  ;;  %v4465_v3 = vld [vmem:[#allocation2 + $0x130] sm:$0xff]   ;;  %v489_v32 = vld [vmem:[#allocation2 + $0x24] sm:$0x1] }
  0x6e   : > { %6071 = vst [vmem:[#allocation9_spill] sm:$0xff] %v4986_v53  ;;  %2044 = vmatmul.bf16.gmra.mxu0 %v4986_v53  ;;  %v1405_v59 = vrot.slane %v1403_v42, 3  ;;  %v1408_v60 = vrot.slane %v1406_v43, 4  ;;  %v1572_v61 = vrot.slane %v1570_v35, 4  ;;  %v4338_v9 = vunpack.c.h.b16 %v4465_v3 }
  0x6f   : > { %v1575_v62 = vshrl.u32 %v804_v29, 16  ;;  %v1578_v63 = vshll.u32 %v804_v29, 16  ;;  %v663_v10 = vld [vmem:[#allocation2 + $0x138] sm:$0xf]  ;;  %v1739_v23 = vshrl.u32 %v4465_v3, 16  ;;  %v1742_v18 = vshll.u32 %v4465_v3, 16 }
  0x70   : > { %v1409_v7 = vor.u32 %v1408_v60, %v1405_v59  ;;  %v1573_v8 = vor.u32 %v1572_v61, %v1569_v56  ;;  %v774_v11 = vunpack.c.l.b16 %v663_v10  ;;  %v1111_v34 = vshrl.u32 %v4974_v45, 16 }
  0x71   : > { %v1577_v14 = vrot.slane %v1575_v62, 3  ;;  %v1580_v15 = vrot.slane %v1578_v63, 4  ;;  %v1741_v17 = vrot.slane %v1739_v23, 3  ;;  %v1744_v31 = vrot.slane %v1742_v18, 4  ;;  %v604_v62 = vld [vmem:[#allocation2 + $0x10] sm:$0x1] }
  0x72   : > { %v4999_v21 = vsel %vm1092_vm3, %v1401_v58, %v1409_v7  ;;  %v812_v27 = vpack.c.b16 %v774_v11, %v774_v11  ;;  %v5002_v30 = vpack.c.b16 %v774_v11, %v4338_v9  ;;  %v1114_v35 = vshll.u32 %v4974_v45, 16  ;;  %v492_v58 = vld [vmem:[#allocation2 + $0x38] sm:$0x1] }
  0x73   : > { %6072 = vst [vmem:[#allocation10_spill] sm:$0xff] %v4999_v21  ;;  %2064 = vmatmul.bf16.gmra.mxu1 %v4999_v21  ;;  %v1581_v26 = vor.u32 %v1580_v15, %v1577_v14  ;;  %v844_v37 = vshrl.u32 %v4972_v38, 16  ;;  %v847_v42 = vshll.u32 %v4972_v38, 16  ;;  %v1120_v51 = vshrl.u32 %v4996_v6, 16 }
  0x74   : > { %v1747_v46 = vshrl.u32 %v812_v27, 16  ;;  %v1750_v48 = vshll.u32 %v812_v27, 16  ;;  %v1123_v29 = vshll.u32 %v4996_v6, 16  ;;  %v490_v45 = vsel %vm4967_vm6, 0, %v489_v32 }
  0x75   : > { %v5009_v43 = vsel %vm1092_vm3, %v1573_v8, %v1581_v26  ;;  %v846_v56 = vrot.slane %v844_v37, 4  ;;  %v849_v57 = vrot.slane %v847_v42, 5  ;;  %v1745_v59 = vor.u32 %v1744_v31, %v1741_v17  ;;  %491 = vst [vmem:[#allocation2 + $0x24] sm:$0x1] %v490_v45 }
  0x76   : > { %2084 = vmatmul.bf16.gmra.mxu2 %v5009_v43  ;;  %v1749_v60 = vrot.slane %v1747_v46, 3  ;;  %v1752_v61 = vrot.slane %v1750_v48, 4  ;;  %v1113_v63 = vrot.slane %v1111_v34, 3  ;;  %v997_v3 = vunpack.c.l.b16 %v604_v62 }
  0x77   : > { %v850_v4 = vor.u32 %v849_v57, %v846_v56  ;;  %v852_v7 = vshrl.u32 %v4826_v1, 16  ;;  %v855_v8 = vshll.u32 %v4826_v1, 16  ;;  %v493_v9 = vsel %vm4967_vm6, 0, %v492_v58 }
  0x78   : > { %v1753_v5 = vor.u32 %v1752_v61, %v1749_v60  ;;  %v1116_v10 = vrot.slane %v1114_v35, 4  ;;  %v1015_v23 = vpack.c.b16 %v997_v3, %v997_v3  ;;  %494 = vst [vmem:[#allocation2 + $0x38] sm:$0x1] %v493_v9  ;;  %v1122_v18 = vrot.slane %v1120_v51, 3 }
  0x79   : > { %v1154_v14 = vshrl.u32 %v850_v4, 16  ;;  %v1157_v15 = vshll.u32 %v850_v4, 16  ;;  %v1125_v17 = vrot.slane %v1123_v29, 4  ;;  %v854_v26 = vrot.slane %v852_v7, 4 }
  0x7a   : > { %v5021_v11 = vsel %vm1092_vm3, %v1745_v59, %v1753_v5  ;;  %v1035_v27 = vrot.slane %v1015_v23, 5  ;;  %v857_v34 = vrot.slane %v855_v8, 5  ;;  %v4290_v37 = vunpack.c.h.b16 %v4945_v39 }
  0x7b   : > { %2104 = vmatmul.bf16.gmra.mxu3 %v5021_v11  ;;  %v1156_v31 = vrot.slane %v1154_v14, 3  ;;  %v1159_v32 = vrot.slane %v1157_v15, 4  ;;  %v1117_v48 = vor.u32 %v1116_v10, %v1113_v63  ;;  %v1126_v51 = vor.u32 %v1125_v17, %v1122_v18  ;;  %v495_v63 = vld [vmem:[#allocation2 + $0x4c] sm:$0x1] }
  0x7c   : > { %v1036_v35 = vsel %vm1033_vm7, %v4996_v6, %v1035_v27  ;;  %v608_v46 = vld [vmem:[#allocation2 + $0x24] sm:$0x1]  ;;  %v858_v29 = vor.u32 %v857_v34, %v854_v26  ;;  %v1037_v61 = vrot.slane %v4972_v38, 5  ;;  %v5029_v62 = vpack.c.b16 %v4953_v50, %v4290_v37 }
  0x7d   : > { %v1160_v42 = vor.u32 %v1159_v32, %v1156_v31  ;;  %v1128_v56 = vshrl.u32 %v1036_v35, 16  ;;  %v1131_v57 = vshll.u32 %v1036_v35, 16  ;;  %v998_v45 = vunpack.c.l.b16 %v608_v46 }
  0x7e   : > { %v1197_v3 = vshrl.u32 %v858_v29, 16  ;;  %v1200_v4 = vshll.u32 %v858_v29, 16  ;;  %v496_v9 = vsel %vm4967_vm6, 0, %v495_v63  ;;  %v1163_v10 = vshrl.u32 %v1037_v61, 16 }
  0x7f   : > { %2656 = vmatmul.bf16.vlgmr.msrb.gmra.mxu0 %v1160_v42  ;;  %v1130_v58 = vrot.slane %v1128_v56, 3  ;;  %v1133_v59 = vrot.slane %v1131_v57, 4  ;;  %v1016_v60 = vpack.c.b16 %v998_v45, %v998_v45  ;;  %v612_v8 = vld [vmem:[#allocation2 + $0x38] sm:$0x1]  ;;  %497 = vst [vmem:[#allocation2 + $0x4c] sm:$0x1] %v496_v9 }
  0x80   : > { %v1166_v38 = vshll.u32 %v1037_v61, 16  ;;  %v860_v14 = vshrl.u32 %v5029_v62, 16  ;;  %v1199_v15 = vrot.slane %v1197_v3, 3  ;;  %v1202_v18 = vrot.slane %v1200_v4, 4  ;;  %v4153_v56 = vld [vmem:[%s6025_s2 + $0x1b0] sm:$0xff] }
  0x81   : > { %v1134_v39 = vor.u32 %v1133_v59, %v1130_v58  ;;  %v1038_v6 = vrot.slane %v1016_v60, 5  ;;  %v999_v17 = vunpack.c.l.b16 %v612_v8  ;;  %v863_v26 = vshll.u32 %v5029_v62, 16  ;;  %v4161_v57 = vld [vmem:[%s6025_s2 + $0x1f0] sm:$0xff]  ;;  %3098 = vmatpush.bf16.msra.mxu2 %v4153_v56  ;;  %v498_v4 = vld [vmem:[#allocation2 + $0x60] sm:$0x1] }
  0x82   : > { %v1165_v27 = vrot.slane %v1163_v10, 3  ;;  %v1168_v31 = vrot.slane %v1166_v38, 4  ;;  %v5038_v37 = vor.u32 %v1202_v18, %v1199_v15  ;;  %v862_v46 = vrot.slane %v860_v14, 4  ;;  %v4145_v45 = vld [vmem:[%s6025_s2 + $0x170] sm:$0xff]  ;;  %3187 = vmatpush.bf16.msra.mxu3 %v4161_v57 }
  0x83   : > { %2118 = vmatmul.bf16.vlgmr.msrb.gmra.mxu1 %v1117_v48  ;;  %v1135_v5 = vsel %vm1092_vm3, %v1126_v51, %v1134_v39  ;;  %v1039_v7 = vsel %vm1033_vm7, %v1037_v61, %v1038_v6  ;;  %v1017_v35 = vpack.c.b16 %v999_v17, %v999_v17  ;;  %v865_v48 = vrot.slane %v863_v26, 5 }
  0x84   : > { %v1171_v50 = vshrl.u32 %v1039_v7, 16  ;;  %v1174_v23 = vshll.u32 %v1039_v7, 16  ;;  %v1169_v51 = vor.u32 %v1168_v31, %v1165_v27  ;;  %2738 = vmatpush.bf16.msra.mxu1 %v4145_v45  ;;  %v1040_v58 = vrot.slane %v4826_v1, 5 }
  0x85   : > { %v1041_v59 = vrot.slane %v1017_v35, 5  ;;  %v866_v60 = vor.u32 %v865_v48, %v862_v46  ;;  %v1043_v56 = vrot.slane %v5029_v62, 5 }
  0x86   : > { %2207 = vmatmul.bf16.vlgmr.msrb.gmra.mxu2 %v1135_v5  ;;  %v1173_v32 = vrot.slane %v1171_v50, 3  ;;  %v1176_v34 = vrot.slane %v1174_v23, 4  ;;  %v616_v63 = vld [vmem:[#allocation2 + $0x4c] sm:$0x1]  ;;  %v499_v5 = vsel %vm4967_vm6, 0, %v498_v4  ;;  %v1206_v7 = vshrl.u32 %v1040_v58, 16 }
  0x87   : > { %v1042_v39 = vsel %vm1033_vm7, %v1040_v58, %v1041_v59  ;;  %v1240_v6 = vshrl.u32 %v866_v60, 16  ;;  %v1243_v3 = vshll.u32 %v866_v60, 16  ;;  %v1209_v8 = vshll.u32 %v1040_v58, 16  ;;  %500 = vst [vmem:[#allocation2 + $0x60] sm:$0x1] %v499_v5 }
  0x88   : > { %v1177_v29 = vor.u32 %v1176_v34, %v1173_v32  ;;  %v1214_v1 = vshrl.u32 %v1042_v39, 16  ;;  %v1217_v9 = vshll.u32 %v1042_v39, 16  ;;  %v1000_v14 = vunpack.c.l.b16 %v616_v63  ;;  %v501_v58 = vld [vmem:[#allocation2 + $0x74] sm:$0x1] }
  0x89   : > { %v1242_v50 = vrot.slane %v1240_v6, 3  ;;  %v1245_v23 = vrot.slane %v1243_v3, 4  ;;  %v1208_v15 = vrot.slane %v1206_v7, 3  ;;  %v1211_v18 = vrot.slane %v1209_v8, 4 }
  0x8a   : > { %v5055_v61 = vsel %vm1092_vm3, %v1169_v51, %v1177_v29  ;;  %v1216_v17 = vrot.slane %v1214_v1, 3  ;;  %v1219_v26 = vrot.slane %v1217_v9, 4  ;;  %v1018_v34 = vpack.c.b16 %v1000_v14, %v1000_v14 }
  0x8b   : > { %2567 = vmatmul.bf16.vlgmr.msrb.gmra.mxu3 %v4804_v25  ;;  %v4169_v25 = vld [vmem:[%s6025_s2 + $0x230] sm:$0xff]  ;;  %v5062_v32 = vor.u32 %v1245_v23, %v1242_v50  ;;  %v1212_v35 = vor.u32 %v1211_v18, %v1208_v15  ;;  %v502_v60 = vsel %vm4967_vm6, 0, %v501_v58  ;;  %v1249_v39 = vshrl.u32 %v1043_v56, 16  ;;  %v4152_v18 = vld [vmem:[%s6025_s2 + $0x1a8] sm:$0xff] }
  0x8c   : > { %3276 = vmatpush.bf16.msra.mxu0 %v4169_v25  ;;  %v1220_v46 = vor.u32 %v1219_v26, %v1216_v17  ;;  %v1044_v57 = vrot.slane %v1018_v34, 5  ;;  %503 = vst [vmem:[#allocation2 + $0x74] sm:$0x1] %v502_v60  ;;  %v1252_v62 = vshll.u32 %v1043_v56, 16  ;;  %v876_v7 = vshrl.u32 %v4798_v12, 16  ;;  %v4160_v17 = vld [vmem:[%s6025_s2 + $0x1e8] sm:$0xff]  ;;  %3099 = vmatpush.bf16.msra.mxu2 %v4152_v18 }
  0x8d   : > { %6073 = vst [vmem:[#allocation11_spill] sm:$0xff] %v5062_v32  ;;  %v879_v8 = vshll.u32 %v4798_v12, 16  ;;  %v1251_v1 = vrot.slane %v1249_v39, 3  ;;  %v4144_v26 = vld [vmem:[%s6025_s2 + $0x168] sm:$0xff]  ;;  %3188 = vmatpush.bf16.msra.mxu3 %v4160_v17 }
  0x8e   : > { %v5068_v45 = vsel %vm1092_vm3, %v1212_v35, %v1220_v46  ;;  %v1045_v51 = vsel %vm1033_vm7, %v1043_v56, %v1044_v57  ;;  %v620_v59 = vld [vmem:[#allocation2 + $0x60] sm:$0x1]  ;;  %v1254_v9 = vrot.slane %v1252_v62, 4  ;;  %v878_v14 = vrot.slane %v876_v7, 4  ;;  %2739 = vmatpush.bf16.msra.mxu1 %v4144_v26 }
  0x8f   : > { %2661 = vmatmul.bf16.gmra.mxu0 %v5038_v37  ;;  %v1257_v6 = vshrl.u32 %v1045_v51, 16  ;;  %v1260_v3 = vshll.u32 %v1045_v51, 16  ;;  %v1001_v5 = vunpack.c.l.b16 %v620_v59  ;;  %v881_v15 = vrot.slane %v879_v8, 5  ;;  %v504_v59 = vld [vmem:[#allocation2 + $0x88] sm:$0x1] }
  0x90   : > { %v505_v39 = vsel %vm4967_vm6, 0, %v504_v59 }
  0x91   : > { %v1019_v23 = vpack.c.b16 %v1001_v5, %v1001_v5  ;;  %v882_v56 = vor.u32 %v881_v15, %v878_v14  ;;  %506 = vst [vmem:[#allocation2 + $0x88] sm:$0x1] %v505_v39  ;;  %v507_v39 = vld [vmem:[#allocation2 + $0x9c] sm:$0x1] }
  0x93   : > { %2123 = vmatmul.bf16.gmra.mxu1 %v1160_v42  ;;  %v4563_v42 = vld [vmem:[#allocation2 + $0x58] sm:$0xff]  ;;  %v1329_v58 = vshll.u32 %v882_v56, 16  ;;  %v624_v60 = vld [vmem:[#allocation2 + $0x74] sm:$0x1] }
  0x94   : > { %v868_v10 = vshrl.u32 %v4563_v42, 16  ;;  %v871_v38 = vshll.u32 %v4563_v42, 16  ;;  %v1046_v46 = vrot.slane %v4563_v42, 5  ;;  %v1002_v8 = vunpack.c.l.b16 %v624_v60 }
  0x95   : > { %v1331_v7 = vrot.slane %v1329_v58, 4 }
  0x96   : > { %2212 = vmatmul.bf16.gmra.mxu2 %v5055_v61  ;;  %v870_v27 = vrot.slane %v868_v10, 4  ;;  %v873_v31 = vrot.slane %v871_v38, 5  ;;  %v1259_v10 = vrot.slane %v1257_v6, 3  ;;  %v1262_v38 = vrot.slane %v1260_v3, 4 }
  0x97   : > { %v1292_v42 = vshrl.u32 %v1046_v46, 16  ;;  %v1295_v62 = vshll.u32 %v1046_v46, 16  ;;  %v1020_v17 = vpack.c.b16 %v1002_v8, %v1002_v8 }
  0x98   : > { %v874_v48 = vor.u32 %v873_v31, %v870_v27  ;;  %v4168_v27 = vld [vmem:[%s6025_s2 + $0x228] sm:$0xff]  ;;  %v1255_v31 = vor.u32 %v1254_v9, %v1251_v1  ;;  %v1263_v34 = vor.u32 %v1262_v38, %v1259_v10 }
  0x99   : > { %3277 = vmatpush.bf16.msra.mxu0 %v4168_v27  ;;  %v1294_v9 = vrot.slane %v1292_v42, 3  ;;  %v1297_v10 = vrot.slane %v1295_v62, 4  ;;  %v628_v42 = vld [vmem:[#allocation2 + $0x88] sm:$0x1]  ;;  %v508_v62 = vsel %vm4967_vm6, 0, %v507_v39 }
  0x9a   : > { %v1283_v25 = vshrl.u32 %v874_v48, 16  ;;  %v1286_v29 = vshll.u32 %v874_v48, 16  ;;  %v1047_v48 = vrot.slane %v1019_v23, 5  ;;  %v5096_v57 = vsel %vm1092_vm3, %v1255_v31, %v1263_v34  ;;  %509 = vst [vmem:[#allocation2 + $0x9c] sm:$0x1] %v508_v62 }
  0x9b   : > { %2572 = vmatmul.bf16.gmra.mxu3 %v4883_v47  ;;  %6075 = vst [vmem:[#allocation13_spill] sm:$0xff] %v5096_v57 }
  0x9c   : > { %v1285_v4 = vrot.slane %v1283_v25, 3  ;;  %v1288_v63 = vrot.slane %v1286_v29, 4  ;;  %v1048_v51 = vsel %vm1033_vm7, %v1046_v46, %v1047_v48  ;;  %v1326_v29 = vshrl.u32 %v882_v56, 16 }
  0x9d   : > { %v1300_v6 = vshrl.u32 %v1048_v51, 16  ;;  %v1303_v3 = vshll.u32 %v1048_v51, 16  ;;  %v1049_v46 = vrot.slane %v4798_v12, 5  ;;  %v1050_v48 = vrot.slane %v1020_v17, 5 }
  0x9e   : > { %v5077_v50 = vor.u32 %v1288_v63, %v1285_v4  ;;  %v884_v4 = vshrl.u32 %v4834_v33, 16  ;;  %v887_v63 = vshll.u32 %v4834_v33, 16  ;;  %v1328_v5 = vrot.slane %v1326_v29, 3 }
  0x9f   : > { %2666 = vmatmul.bf16.gmra.mxu0 %v5062_v32  ;;  %v1302_v38 = vrot.slane %v1300_v6, 3  ;;  %v1305_v23 = vrot.slane %v1303_v3, 4  ;;  %v1298_v33 = vor.u32 %v1297_v10, %v1294_v9  ;;  %v1051_v59 = vsel %vm1033_vm7, %v1049_v46, %v1050_v48  ;;  %v4151_v48 = vld [vmem:[%s6025_s2 + $0x1a0] sm:$0xff] }
  0xa0   : > { %6074 = vst [vmem:[#allocation12_spill] sm:$0xff] %v5077_v50  ;;  %v886_v14 = vrot.slane %v884_v4, 4  ;;  %v889_v15 = vrot.slane %v887_v63, 5  ;;  %v5109_v18 = vor.u32 %v1331_v7, %v1328_v5  ;;  %v1335_v12 = vshrl.u32 %v1049_v46, 16  ;;  %3100 = vmatpush.bf16.msra.mxu2 %v4151_v48 }
  0xa1   : > { %v1306_v31 = vor.u32 %v1305_v23, %v1302_v38  ;;  %v1338_v3 = vshll.u32 %v1049_v46, 16  ;;  %v1343_v4 = vshrl.u32 %v1051_v59, 16  ;;  %v1346_v63 = vshll.u32 %v1051_v59, 16  ;;  %v4143_v59 = vld [vmem:[%s6025_s2 + $0x160] sm:$0xff] }
  0xa2   : > { %6076 = vst [vmem:[#allocation14_spill] sm:$0xff] %v5109_v18  ;;  %v890_v34 = vor.u32 %v889_v15, %v886_v14  ;;  %v1003_v9 = vunpack.c.l.b16 %v628_v42  ;;  %v892_v10 = vshrl.u32 %v4963_v22, 16  ;;  %v895_v38 = vshll.u32 %v4963_v22, 16  ;;  %v4167_v42 = vld [vmem:[%s6025_s2 + $0x220] sm:$0xff]  ;;  %2740 = vmatpush.bf16.msra.mxu1 %v4143_v59 }
  0xa3   : > { %2128 = vmatmul.bf16.gmra.mxu1 %v5038_v37  ;;  %v5119_v56 = vsel %vm1092_vm3, %v1298_v33, %v1306_v31  ;;  %v1337_v23 = vrot.slane %v1335_v12, 3  ;;  %v1340_v14 = vrot.slane %v1338_v3, 4  ;;  %v1345_v15 = vrot.slane %v1343_v4, 3  ;;  %3278 = vmatpush.bf16.msra.mxu0 %v4167_v42  ;;  %v4564_v3 = vld [vmem:[#allocation2 + $0x80] sm:$0xff] }
  0xa4   : > { %6077 = vst [vmem:[#allocation15_spill] sm:$0xff] %v5119_v56  ;;  %v1369_v58 = vshrl.u32 %v890_v34, 16  ;;  %v1372_v60 = vshll.u32 %v890_v34, 16  ;;  %v1348_v17 = vrot.slane %v1346_v63, 4  ;;  %v1021_v31 = vpack.c.b16 %v1003_v9, %v1003_v9 }
  0xa5   : > { %v894_v34 = vrot.slane %v892_v10, 4  ;;  %v897_v46 = vrot.slane %v895_v38, 5  ;;  %v1341_v62 = vor.u32 %v1340_v14, %v1337_v23  ;;  %v1052_v4 = vrot.slane %v4564_v3, 5 }
  0xa6   : > { %2217 = vmatmul.bf16.gmra.mxu2 %v5068_v45  ;;  %v1371_v5 = vrot.slane %v1369_v58, 3  ;;  %v1374_v8 = vrot.slane %v1372_v60, 4  ;;  %v4159_v58 = vld [vmem:[%s6025_s2 + $0x1e0] sm:$0xff]  ;;  %v1349_v12 = vor.u32 %v1348_v17, %v1345_v15  ;;  %v1053_v63 = vrot.slane %v1021_v31, 5  ;;  %v510_v15 = vld [vmem:[#allocation2 + $0xb0] sm:$0x1] }
  0xa7   : > { %3189 = vmatpush.bf16.msra.mxu3 %v4159_v58  ;;  %v632_v17 = vld [vmem:[#allocation2 + $0x9c] sm:$0x1]  ;;  %v511_v48 = vsel %vm4967_vm6, 0, %v510_v15  ;;  %v1378_v31 = vshrl.u32 %v1052_v4, 16 }
  0xa8   : > { %v5091_v35 = vpop.f32.mrf.mxu0  ;;  %v5136_v33 = vor.u32 %v1374_v8, %v1371_v5  ;;  %v898_v5 = vor.u32 %v897_v46, %v894_v34  ;;  %v5161_v10 = vsel %vm1092_vm3, %v1341_v62, %v1349_v12  ;;  %v1054_v38 = vsel %vm1033_vm7, %v1052_v4, %v1053_v63  ;;  %512 = vst [vmem:[#allocation2 + $0xb0] sm:$0x1] %v511_v48  ;;  %v5171_v62 = vld [vmem:[#allocation2 + $0xa8] sm:$0xff] }
  0xa9   : > { %6082 = vst [vmem:[#allocation20_spill] sm:$0xff] %v5161_v10  ;;  %v1381_v34 = vshll.u32 %v1052_v4, 16  ;;  %v1386_v59 = vshrl.u32 %v1054_v38, 16  ;;  %v1389_v42 = vshll.u32 %v1054_v38, 16  ;;  %v900_v12 = vshrl.u32 %v5171_v62, 16 }
  0xaa   : > { %6079 = vst [vmem:[#allocation17_spill] sm:$0xff] %v5136_v33  ;;  %v1412_v23 = vshrl.u32 %v898_v5, 16  ;;  %v1415_v14 = vshll.u32 %v898_v5, 16  ;;  %v903_v3 = vshll.u32 %v5171_v62, 16  ;;  %v1004_v15 = vunpack.c.l.b16 %v632_v17 }
  0xab   : > { %2577 = vmatmul.bf16.gmra.mxu3 %v4986_v53  ;;  %v5098_v25 = vpop.f32.mrf.mxu1  ;;  %v1388_v4 = vrot.slane %v1386_v59, 3  ;;  %v1391_v48 = vrot.slane %v1389_v42, 4 }
  0xac   : > { %v1414_v63 = vrot.slane %v1412_v23, 3  ;;  %v1417_v5 = vrot.slane %v1415_v14, 4  ;;  %v1055_v14 = vrot.slane %v4963_v22, 5 }
  0xaf   : > { %2671 = vmatmul.bf16.gmra.mxu0 %v5077_v50 }
  0xb0   : > { %v5106_v1 = vpop.f32.mrf.mxu0 }
  0xb1   : > { %v5111_v26 = vpop.f32.mrf.mxu2 }
  0xb3   : > { %2133 = vmatmul.bf16.gmra.mxu1 %v5062_v32  ;;  %v5113_v27 = vpop.f32.mrf.mxu1 }
  0xb5   : > { %v5121_v51 = vpop.f32.mrf.mxu3 }
  0xb6   : > { %2222 = vmatmul.bf16.gmra.mxu2 %v5096_v57  ;;  %6078 = vst [vmem:[#allocation16_spill] sm:$0xff] %v5121_v51  ;;  %v1383_v51 = vrot.slane %v1381_v34, 4 }
  0xb8   : > { %v5123_v29 = vpop.f32.mrf.mxu0 }
  0xb9   : > { %v5129_v6 = vpop.f32.mrf.mxu2 }
  0xbb   : > { %2582 = vmatmul.bf16.gmra.mxu3 %v4743_v16  ;;  %v5131_v7 = vpop.f32.mrf.mxu1 }
  0xbd   : > { %v5147_v60 = vpop.f32.mrf.mxu3 }
  0xbe   : > { %6080 = vst [vmem:[#allocation18_spill] sm:$0xff] %v5147_v60  ;;  %v1380_v60 = vrot.slane %v1378_v31, 3 }
  0xbf   : > { %2676 = vmatmul.bf16.gmra.mxu0 %v5109_v18 }
  0xc0   : > { %v5149_v39 = vpop.f32.mrf.mxu0  ;;  %v1384_v16 = vor.u32 %v1383_v51, %v1380_v60  ;;  %v513_v60 = vld [vmem:[#allocation2 + $0xc4] sm:$0x1] }
  0xc3   : > { %2138 = vmatmul.bf16.gmra.mxu1 %v5077_v50  ;;  %v5157_v9 = vpop.f32.mrf.mxu1  ;;  %v1022_v50 = vpack.c.b16 %v1004_v15, %v1004_v15 }
  0xc5   : > { %v1056_v17 = vrot.slane %v1022_v50, 5  ;;  %v1421_v50 = vshrl.u32 %v1055_v14, 16 }
  0xc6   : > { %2227 = vmatmul.bf16.gmra.mxu2 %v5119_v56  ;;  %v1392_v56 = vor.u32 %v1391_v48, %v1388_v4  ;;  %v908_v48 = vshrl.u32 %v4824_v0, 16 }
  0xc8   : > { %v5190_v59 = vsel %vm1092_vm3, %v1384_v16, %v1392_v56 }
  0xc9   : > { %6087 = vst [vmem:[#allocation25_spill] sm:$0xff] %v5190_v59 }
  0xca   : > { %v5155_v8 = vpop.f32.mrf.mxu2 }
  0xcb   : > { %2587 = vmatmul.bf16.gmra.mxu3 %v4818_v55  ;;  %6081 = vst [vmem:[#allocation19_spill] sm:$0xff] %v5155_v8  ;;  %v905_v55 = vrot.slane %v903_v3, 5  ;;  %v514_v3 = vsel %vm4967_vm6, 0, %v513_v60  ;;  %v4150_v60 = vld [vmem:[%s6025_s2 + $0x198] sm:$0xff] }
  0xcc   : > { %515 = vst [vmem:[#allocation2 + $0xc4] sm:$0x1] %v514_v3  ;;  %3101 = vmatpush.bf16.msra.mxu2 %v4150_v60 }
  0xcd   : > { %v5169_v58 = vpop.f32.mrf.mxu0 }
  0xcf   : > { %2681 = vmatmul.bf16.gmra.mxu0 %v5136_v33 }
  0xd1   : > { %v5167_v46 = vpop.f32.mrf.mxu3 }
  0xd2   : > { %6083 = vst [vmem:[#allocation21_spill] sm:$0xff] %v5167_v46  ;;  %v902_v46 = vrot.slane %v900_v12, 4  ;;  %v5178_v38 = vpop.f32.mrf.mxu1  ;;  %v1057_v12 = vsel %vm1033_vm7, %v1055_v14, %v1056_v17 }
  0xd3   : > { %2143 = vmatmul.bf16.gmra.mxu1 %v5109_v18  ;;  %v5175_v18 = vpop.f32.mrf.mxu2  ;;  %v1432_v16 = vshll.u32 %v1057_v12, 16 }
  0xd4   : > { %6084 = vst [vmem:[#allocation22_spill] sm:$0xff] %v5175_v18  ;;  %v906_v23 = vor.u32 %v905_v55, %v902_v46  ;;  %v636_v46 = vld [vmem:[#allocation2 + $0xb0] sm:$0x1] }
  0xd5   : > { %v5186_v34 = vpop.f32.mrf.mxu0  ;;  %v1005_v4 = vunpack.c.l.b16 %v636_v46  ;;  %v4158_v46 = vld [vmem:[%s6025_s2 + $0x1d8] sm:$0xff] }
  0xd6   : > { %2232 = vmatmul.bf16.gmra.mxu2 %v5161_v10  ;;  %v5180_v10 = vor.u32 %v1417_v5, %v1414_v63  ;;  %v1455_v42 = vshrl.u32 %v906_v23, 16  ;;  %v1458_v51 = vshll.u32 %v906_v23, 16  ;;  %v1424_v63 = vshll.u32 %v1055_v14, 16  ;;  %3190 = vmatpush.bf16.msra.mxu3 %v4158_v46 }
  0xd7   : > { %v1429_v5 = vshrl.u32 %v1057_v12, 16  ;;  %v911_v23 = vshll.u32 %v4824_v0, 16  ;;  %v910_v12 = vrot.slane %v908_v48, 4  ;;  %v4166_v48 = vld [vmem:[%s6025_s2 + $0x218] sm:$0xff] }
  0xd8   : > { %6085 = vst [vmem:[#allocation23_spill] sm:$0xff] %v5180_v10  ;;  %v1457_v56 = vrot.slane %v1455_v42, 3  ;;  %v1460_v15 = vrot.slane %v1458_v51, 4  ;;  %v1023_v42 = vpack.c.b16 %v1005_v4, %v1005_v4  ;;  %v4142_v4 = vld [vmem:[%s6025_s2 + $0x158] sm:$0xff]  ;;  %3279 = vmatpush.bf16.msra.mxu0 %v4166_v48 }
  0xd9   : > { %v5184_v31 = vpop.f32.mrf.mxu3  ;;  %v913_v51 = vrot.slane %v911_v23, 5  ;;  %2741 = vmatpush.bf16.msra.mxu1 %v4142_v4  ;;  %v516_v23 = vld [vmem:[#allocation2 + $0xd8] sm:$0x1]  ;;  %v5239_v4 = vld [vmem:[#allocation2 + $0xd0] sm:$0xff] }
  0xda   : > { %6086 = vst [vmem:[#allocation24_spill] sm:$0xff] %v5184_v31  ;;  %v5196_v22 = vpop.f32.mrf.mxu1  ;;  %v5207_v14 = vor.u32 %v1460_v15, %v1457_v56  ;;  %v1059_v56 = vrot.slane %v1023_v42, 5 }
  0xdb   : > { %2592 = vmatmul.bf16.gmra.mxu3 %v4893_v13  ;;  %v1426_v13 = vrot.slane %v1424_v63, 4  ;;  %v914_v15 = vor.u32 %v913_v51, %v910_v12  ;;  %v640_v12 = vld [vmem:[#allocation2 + $0xc4] sm:$0x1]  ;;  %v517_v51 = vsel %vm4967_vm6, 0, %v516_v23 }
  0xdc   : > { %6090 = vst [vmem:[#allocation28_spill] sm:$0xff] %v5207_v14 }
  0xdd   : > { %v5193_v55 = vpop.f32.mrf.mxu2  ;;  %518 = vst [vmem:[#allocation2 + $0xd8] sm:$0x1] %v517_v51 }
  0xde   : > { %6088 = vst [vmem:[#allocation26_spill] sm:$0xff] %v5193_v55  ;;  %v1434_v55 = vrot.slane %v1432_v16, 4  ;;  %v1058_v16 = vrot.slane %v5171_v62, 5 }
  0xdf   : > { %2686 = vmatmul.bf16.gmra.mxu0 %v5180_v10 }
  0xe0   : > { %v1060_v62 = vsel %vm1033_vm7, %v1058_v16, %v1059_v56  ;;  %v1464_v60 = vshrl.u32 %v1058_v16, 16  ;;  %v1467_v46 = vshll.u32 %v1058_v16, 16  ;;  %v916_v56 = vshrl.u32 %v5239_v4, 16 }
  0xe2   : > { %v1466_v23 = vrot.slane %v1464_v60, 3  ;;  %v918_v51 = vrot.slane %v916_v56, 4  ;;  %v1061_v60 = vrot.slane %v4824_v0, 5 }
  0xe3   : > { %2148 = vmatmul.bf16.gmra.mxu1 %v5136_v33  ;;  %v1423_v33 = vrot.slane %v1421_v50, 3 }
  0xe4   : > { %v1507_v56 = vshrl.u32 %v1061_v60, 16  ;;  %v1510_v0 = vshll.u32 %v1061_v60, 16 }
  0xe5   : > { %v5215_v50 = vpop.f32.mrf.mxu2  ;;  %v1427_v3 = vor.u32 %v1426_v13, %v1423_v33 }
  0xe6   : > { %2237 = vmatmul.bf16.gmra.mxu2 %v5190_v59  ;;  %v5202_v17 = vpop.f32.mrf.mxu3  ;;  %v1431_v59 = vrot.slane %v1429_v5, 3  ;;  %6091 = vst [vmem:[#allocation29_spill] sm:$0xff] %v5215_v50 }
  0xe7   : > { %6089 = vst [vmem:[#allocation27_spill] sm:$0xff] %v5202_v17 }
  0xe8   : > { %v1435_v63 = vor.u32 %v1434_v55, %v1431_v59  ;;  %v1498_v59 = vshrl.u32 %v914_v15, 16  ;;  %v1501_v55 = vshll.u32 %v914_v15, 16  ;;  %v919_v15 = vshll.u32 %v5239_v4, 16 }
  0xea   : > { %v5229_v13 = vsel %vm1092_vm3, %v1427_v3, %v1435_v63  ;;  %v1472_v3 = vshrl.u32 %v1060_v62, 16  ;;  %v1475_v63 = vshll.u32 %v1060_v62, 16  ;;  %v1503_v17 = vrot.slane %v1501_v55, 4 }
  0xeb   : > { %v5204_v31 = vpop.f32.mrf.mxu0  ;;  %2597 = vmatmul.bf16.gmra.mxu3 %v4999_v21  ;;  %6092 = vst [vmem:[#allocation30_spill] sm:$0xff] %v5229_v13  ;;  %v921_v18 = vrot.slane %v919_v15, 5 }
  0xec   : > { %v1474_v50 = vrot.slane %v1472_v3, 3  ;;  %v1477_v16 = vrot.slane %v1475_v63, 4 }
  0xed   : > { %v922_v55 = vor.u32 %v921_v18, %v918_v51 }
  0xee   : > { %v5234_v42 = vpop.f32.mrf.mxu3 }
  0xef   : > { %2691 = vmatmul.bf16.gmra.mxu0 %v5207_v14  ;;  %6093 = vst [vmem:[#allocation31_spill] sm:$0xff] %v5234_v42  ;;  %v1500_v42 = vrot.slane %v1498_v59, 3  ;;  %v1478_v59 = vor.u32 %v1477_v16, %v1474_v50  ;;  %v1544_v63 = vshll.u32 %v922_v55, 16  ;;  %v519_v50 = vld [vmem:[#allocation2 + $0xec] sm:$0x1] }
  0xf0   : > { %v5217_v5 = vpop.f32.mrf.mxu1 }
  0xf1   : > { %v5248_v62 = vor.u32 %v1503_v17, %v1500_v42 }
  0xf3   : > { %2153 = vmatmul.bf16.gmra.mxu1 %v5180_v10  ;;  %v5231_v33 = vpop.f32.mrf.mxu0  ;;  %v1006_v10 = vunpack.c.l.b16 %v640_v12  ;;  %6095 = vst [vmem:[#allocation33_spill] sm:$0xff] %v5248_v62 }
  0xf5   : > { %v1024_v32 = vpack.c.b16 %v1006_v10, %v1006_v10  ;;  %v1541_v10 = vshrl.u32 %v922_v55, 16 }
  0xf6   : > { %2242 = vmatmul.bf16.gmra.mxu2 %v5229_v13  ;;  %v1469_v13 = vrot.slane %v1467_v46, 4 }
  0xf7   : > { %v1062_v46 = vrot.slane %v1024_v32, 5  ;;  %v520_v32 = vsel %vm4967_vm6, 0, %v519_v50  ;;  %v1543_v16 = vrot.slane %v1541_v10, 3  ;;  %v1512_v50 = vrot.slane %v1510_v0, 4 }
  0xf8   : > { %v5243_v48 = vpop.f32.mrf.mxu1  ;;  %v1470_v57 = vor.u32 %v1469_v13, %v1466_v23  ;;  %v644_v13 = vld [vmem:[#allocation2 + $0xd8] sm:$0x1]  ;;  %521 = vst [vmem:[#allocation2 + $0xec] sm:$0x1] %v520_v32  ;;  %v1064_v32 = vrot.slane %v5239_v4, 5 }
  0xf9   : > { %v5245_v21 = vpop.f32.mrf.mxu2  ;;  %v1063_v42 = vsel %vm1033_vm7, %v1061_v60, %v1062_v46  ;;  %v1007_v51 = vunpack.c.l.b16 %v644_v13  ;;  %v1546_v46 = vrot.slane %v1544_v63, 4 }
  0xfa   : > { %6094 = vst [vmem:[#allocation32_spill] sm:$0xff] %v5245_v21  ;;  %v5258_v17 = vsel %vm1092_vm3, %v1470_v57, %v1478_v59  ;;  %v1515_v23 = vshrl.u32 %v1063_v42, 16  ;;  %v1518_v57 = vshll.u32 %v1063_v42, 16 }
  0xfb   : > { %2602 = vmatmul.bf16.gmra.mxu3 %v4754_v24  ;;  %6098 = vst [vmem:[#allocation36_spill] sm:$0xff] %v5258_v17  ;;  %v1025_v21 = vpack.c.b16 %v1007_v51, %v1007_v51  ;;  %v5274_v10 = vor.u32 %v1546_v46, %v1543_v16  ;;  %v4141_v51 = vld [vmem:[%s6025_s2 + $0x150] sm:$0xff] }
  0xfc   : > { %v2657_v8 = vpop.f32.mrf.mxu0  ;;  %2742 = vmatpush.bf16.msra.mxu1 %v4141_v51 }
  0xfe   : > { %v5250_v53 = vpop.f32.mrf.mxu3 }
  0xff   : > { %6096 = vst [vmem:[#allocation34_spill] sm:$0xff] %v5250_v53  ;;  %2696 = vmatmul.bf16.gmra.mxu0 %v5248_v62  ;;  %v924_v53 = vshrl.u32 %v4988_v54, 16 }
 0x100   : > { %v2119_v12 = vpop.f32.mrf.mxu1 }
 0x101   : > { %v5254_v3 = vpop.f32.mrf.mxu2  ;;  %v2120_v59 = vadd.f32 %v2119_v12, %v5091_v35  ;;  %v926_v42 = vrot.slane %v924_v53, 4  ;;  %v4149_v12 = vld [vmem:[%s6025_s2 + $0x190] sm:$0xff] }
 0x102   : > { %6097 = vst [vmem:[#allocation35_spill] sm:$0xff] %v5254_v3  ;;  %v1517_v3 = vrot.slane %v1515_v23, 3  ;;  %3102 = vmatpush.bf16.msra.mxu2 %v4149_v12  ;;  %v1065_v23 = vrot.slane %v1025_v21, 5 }
 0x103   : > { %2158 = vmatmul.bf16.gmra.mxu1 %v5207_v14  ;;  %v927_v14 = vshll.u32 %v4988_v54, 16 }
 0x104   : > { %v5261_v18 = vpop.f32.mrf.mxu0 }
 0x105   : > { %v929_v35 = vrot.slane %v927_v14, 5 }
 0x106   : > { %2247 = vmatmul.bf16.gmra.mxu2 %v5258_v17  ;;  %v5266_v15 = vpop.f32.mrf.mxu3  ;;  %v1509_v17 = vrot.slane %v1507_v56, 3 }
 0x107   : > { %6099 = vst [vmem:[#allocation37_spill] sm:$0xff] %v5266_v15  ;;  %v1520_v15 = vrot.slane %v1518_v57, 4  ;;  %v930_v16 = vor.u32 %v929_v35, %v926_v42  ;;  %v1550_v42 = vshrl.u32 %v1064_v32, 16  ;;  %v1553_v35 = vshll.u32 %v1064_v32, 16 }
 0x108   : > { %v2121_v55 = vpop.f32.mrf.mxu1  ;;  %v1513_v56 = vor.u32 %v1512_v50, %v1509_v17  ;;  %v4165_v17 = vld [vmem:[%s6025_s2 + $0x210] sm:$0xff] }
 0x109   : > { %v2208_v24 = vpop.f32.mrf.mxu2  ;;  %v1521_v0 = vor.u32 %v1520_v15, %v1517_v3  ;;  %v2122_v53 = vadd.f32 %v2121_v55, %v5106_v1  ;;  %3280 = vmatpush.bf16.msra.mxu0 %v4165_v17  ;;  %v1066_v1 = vsel %vm1033_vm7, %v1064_v32, %v1065_v23  ;;  %v1587_v4 = vshll.u32 %v930_v16, 16  ;;  %v522_v55 = vld [vmem:[#allocation2 + $0x100] sm:$0x1] }
 0x10a   : > { %v5271_v60 = vadd.f32 %v2208_v24, %v2120_v59  ;;  %v4157_v24 = vld [vmem:[%s6025_s2 + $0x1d0] sm:$0xff]  ;;  %v648_v59 = vld [vmem:[#allocation2 + $0xec] sm:$0x1]  ;;  %v523_v50 = vsel %vm4967_vm6, 0, %v522_v55  ;;  %v1558_v12 = vshrl.u32 %v1066_v1, 16 }
 0x10b   : > { %2607 = vmatmul.bf16.gmra.mxu3 %v4860_v52  ;;  %v5297_v21 = vsel %vm1092_vm3, %v1513_v56, %v1521_v0  ;;  %524 = vst [vmem:[#allocation2 + $0x100] sm:$0x1] %v523_v50  ;;  %v1008_v56 = vunpack.c.l.b16 %v648_v59  ;;  %v5303_v0 = vld [vmem:[#allocation2 + $0xf8] sm:$0xff]  ;;  %v1589_v55 = vrot.slane %v1587_v4, 4  ;;  %v1552_v50 = vrot.slane %v1550_v42, 3 }
 0x10c   : > { %6100 = vst [vmem:[#allocation38_spill] sm:$0xff] %v5271_v60  ;;  %v2662_v63 = vpop.f32.mrf.mxu0  ;;  %3191 = vmatpush.bf16.msra.mxu3 %v4157_v24  ;;  %v932_v23 = vshrl.u32 %v5303_v0, 16  ;;  %v1560_v59 = vrot.slane %v1558_v12, 3 }
 0x10d   : > { %6103 = vst [vmem:[#allocation41_spill] sm:$0xff] %v5297_v21  ;;  %v1026_v60 = vpack.c.b16 %v1008_v56, %v1008_v56 }
 0x10e   : > { %v2568_v13 = vpop.f32.mrf.mxu3 }
 0x10f   : > { %v5283_v57 = vadd.f32 %v2657_v8, %v2568_v13  ;;  %2701 = vmatmul.bf16.gmra.mxu0 %v5274_v10  ;;  %v1584_v8 = vshrl.u32 %v930_v16, 16  ;;  %v1561_v13 = vshll.u32 %v1066_v1, 16  ;;  %v1555_v1 = vrot.slane %v1553_v35, 4 }
 0x110   : > { %v2124_v14 = vpop.f32.mrf.mxu1  ;;  %v1068_v4 = vrot.slane %v1026_v60, 5 }
 0x111   : > { %6101 = vst [vmem:[#allocation39_spill] sm:$0xff] %v5283_v57  ;;  %v2210_v3 = vpop.f32.mrf.mxu2  ;;  %v2125_v51 = vadd.f32 %v2124_v14, %v5123_v29  ;;  %v1563_v57 = vrot.slane %v1561_v13, 4 }
 0x112   : > { %v5293_v15 = vadd.f32 %v2210_v3, %v2122_v53  ;;  %v935_v53 = vshll.u32 %v5303_v0, 16  ;;  %v1586_v3 = vrot.slane %v1584_v8, 3  ;;  %v1067_v8 = vrot.slane %v4988_v54, 5 }
 0x113   : > { %2163 = vmatmul.bf16.gmra.mxu1 %v5248_v62  ;;  %v934_v62 = vrot.slane %v932_v23, 4  ;;  %v1564_v14 = vor.u32 %v1563_v57, %v1560_v59 }
 0x114   : > { %6102 = vst [vmem:[#allocation40_spill] sm:$0xff] %v5293_v15  ;;  %v2664_v46 = vpop.f32.mrf.mxu0  ;;  %v937_v52 = vrot.slane %v935_v53, 5  ;;  %v1069_v57 = vsel %vm1033_vm7, %v1067_v8, %v1068_v4  ;;  %v1596_v23 = vshll.u32 %v1067_v8, 16  ;;  %v940_v4 = vshrl.u32 %v4845_v40, 16 }
 0x115   : > { %v1601_v53 = vshrl.u32 %v1069_v57, 16 }
 0x116   : > { %2252 = vmatmul.bf16.gmra.mxu2 %v5297_v21  ;;  %v2570_v24 = vpop.f32.mrf.mxu3  ;;  %v5314_v21 = vor.u32 %v1589_v55, %v1586_v3  ;;  %v1604_v55 = vshll.u32 %v1069_v57, 16  ;;  %v1598_v57 = vrot.slane %v1596_v23, 4 }
 0x117   : > { %v5308_v16 = vadd.f32 %v5261_v18, %v2570_v24  ;;  %v1556_v24 = vor.u32 %v1555_v1, %v1552_v50 }
 0x118   : > { %v2126_v17 = vpop.f32.mrf.mxu1  ;;  %6104 = vst [vmem:[#allocation42_spill] sm:$0xff] %v5314_v21 }
 0x119   : > { %v2213_v32 = vpop.f32.mrf.mxu2  ;;  %v2127_v42 = vadd.f32 %v2126_v17, %v5149_v39  ;;  %v5325_v56 = vsel %vm1092_vm3, %v1556_v24, %v1564_v14  ;;  %v1593_v39 = vshrl.u32 %v1067_v8, 16 }
 0x11a   : > { %v5311_v15 = vadd.f32 %v2213_v32, %v2125_v51  ;;  %v938_v51 = vor.u32 %v937_v52, %v934_v62  ;;  %v652_v52 = vld [vmem:[#allocation2 + $0x100] sm:$0x1]  ;;  %v525_v62 = vld [vmem:[#allocation2 + $0x114] sm:$0x1] }
 0x11b   : > { %2612 = vmatmul.bf16.gmra.mxu3 %v4903_v41  ;;  %v526_v17 = vsel %vm4967_vm6, 0, %v525_v62  ;;  %v1009_v59 = vunpack.c.l.b16 %v652_v52  ;;  %v1595_v62 = vrot.slane %v1593_v39, 3 }
 0x11c   : > { %v2667_v18 = vpop.f32.mrf.mxu0  ;;  %v1627_v54 = vshrl.u32 %v938_v51, 16  ;;  %v1630_v60 = vshll.u32 %v938_v51, 16  ;;  %527 = vst [vmem:[#allocation2 + $0x114] sm:$0x1] %v526_v17  ;;  %v943_v51 = vshll.u32 %v4845_v40, 16  ;;  %v4148_v17 = vld [vmem:[%s6025_s2 + $0x188] sm:$0xff] }
 0x11d   : > { %v1027_v52 = vpack.c.b16 %v1009_v59, %v1009_v59  ;;  %3103 = vmatpush.bf16.msra.mxu2 %v4148_v17  ;;  %v1599_v23 = vor.u32 %v1598_v57, %v1595_v62 }
 0x11e   : > { %v2573_v29 = vpop.f32.mrf.mxu3  ;;  %v1629_v50 = vrot.slane %v1627_v54, 3  ;;  %v1632_v1 = vrot.slane %v1630_v60, 4  ;;  %v1603_v54 = vrot.slane %v1601_v53, 3  ;;  %v1606_v60 = vrot.slane %v1604_v55, 4 }
 0x11f   : > { %v5317_v32 = vadd.f32 %v2662_v63, %v2573_v29  ;;  %2706 = vmatmul.bf16.gmra.mxu0 %v5314_v21  ;;  %v1071_v59 = vrot.slane %v1027_v52, 5  ;;  %v528_v52 = vld [vmem:[#allocation2 + $0x128] sm:$0x1] }
 0x120   : > { %v2129_v35 = vpop.f32.mrf.mxu1  ;;  %v1607_v53 = vor.u32 %v1606_v60, %v1603_v54 }
 0x121   : > { %v2215_v12 = vpop.f32.mrf.mxu2  ;;  %v2130_v29 = vadd.f32 %v2129_v35, %v5169_v58  ;;  %v942_v58 = vrot.slane %v940_v4, 4  ;;  %v945_v35 = vrot.slane %v943_v51, 5  ;;  %v4164_v4 = vld [vmem:[%s6025_s2 + $0x208] sm:$0xff] }
 0x122   : > { %v5321_v13 = vadd.f32 %v2215_v12, %v2127_v42  ;;  %3281 = vmatpush.bf16.msra.mxu0 %v4164_v4 }
 0x123   : > { %2168 = vmatmul.bf16.gmra.mxu1 %v5274_v10  ;;  %v656_v62 = vld [vmem:[#allocation2 + $0x114] sm:$0x1] }
 0x124   : > { %v5328_v63 = vpop.f32.mrf.mxu0  ;;  %v1010_v17 = vunpack.c.l.b16 %v656_v62 }
 0x126   : > { %2257 = vmatmul.bf16.gmra.mxu2 %v5325_v56  ;;  %v2575_v3 = vpop.f32.mrf.mxu3 }
 0x127   : > { %v5333_v24 = vadd.f32 %v2664_v46, %v2575_v3  ;;  %v5342_v46 = vor.u32 %v1632_v1, %v1629_v50  ;;  %v1070_v1 = vrot.slane %v5303_v0, 5  ;;  %v5365_v0 = vsel %vm1092_vm3, %v1599_v23, %v1607_v53  ;;  %v5373_v53 = vld [vmem:[#allocation2 + $0x120] sm:$0xff] }
 0x128   : > { %v2131_v14 = vpop.f32.mrf.mxu1 }
 0x129   : > { %6105 = vst [vmem:[#allocation43_spill] sm:$0xff] %v5333_v24  ;;  %v2218_v8 = vpop.f32.mrf.mxu2  ;;  %v2132_v42 = vadd.f32 %v2131_v14, %v5186_v34  ;;  %v4156_v34 = vld [vmem:[%s6025_s2 + $0x1c8] sm:$0xff]  ;;  %v1072_v57 = vsel %vm1033_vm7, %v1070_v1, %v1071_v59  ;;  %v951_v59 = vshll.u32 %v5373_v53, 16 }
 0x12a   : > { %v5339_v12 = vadd.f32 %v2218_v8, %v2130_v29  ;;  %6107 = vst [vmem:[#allocation45_spill] sm:$0xff] %v5342_v46  ;;  %3192 = vmatpush.bf16.msra.mxu3 %v4156_v34  ;;  %v946_v29 = vor.u32 %v945_v35, %v942_v58  ;;  %v4140_v14 = vld [vmem:[%s6025_s2 + $0x148] sm:$0xff]  ;;  %v1639_v35 = vshll.u32 %v1070_v1, 16  ;;  %v1647_v23 = vshll.u32 %v1072_v57, 16 }
 0x12b   : > { %2617 = vmatmul.bf16.gmra.mxu3 %v5009_v43  ;;  %2743 = vmatpush.bf16.msra.mxu1 %v4140_v14  ;;  %v953_v24 = vrot.slane %v951_v59, 5 }
 0x12c   : > { %6106 = vst [vmem:[#allocation44_spill] sm:$0xff] %v5339_v12  ;;  %v2672_v3 = vpop.f32.mrf.mxu0  ;;  %v1670_v54 = vshrl.u32 %v946_v29, 16  ;;  %v1673_v60 = vshll.u32 %v946_v29, 16  ;;  %v1649_v12 = vrot.slane %v1647_v23, 4  ;;  %v4441_v23 = vld [vmem:[%s4646_s30 + $0x78] sm:$0xff]  }
 0x12e   : > { %v2578_v39 = vpop.f32.mrf.mxu3  ;;  %v1672_v4 = vrot.slane %v1670_v54, 3  ;;  %v1073_v54 = vrot.slane %v4845_v40, 5 }
 0x12f   : > { %v5350_v55 = vadd.f32 %v2667_v18, %v2578_v39  ;;  %2711 = vmatmul.bf16.gmra.mxu0 %v5342_v46  ;;  %v1644_v39 = vshrl.u32 %v1072_v57, 16  ;;  %v1028_v57 = vpack.c.b16 %v1010_v17, %v1010_v17 }
 0x130   : > { %v2134_v50 = vpop.f32.mrf.mxu1 }
 0x131   : > { %6108 = vst [vmem:[#allocation46_spill] sm:$0xff] %v5350_v55  ;;  %v2220_v51 = vpop.f32.mrf.mxu2  ;;  %v2135_v8 = vadd.f32 %v2134_v50, %v5204_v31  ;;  %v529_v31 = vsel %vm4967_vm6, 0, %v528_v52  ;;  %v948_v50 = vshrl.u32 %v5373_v53, 16  ;;  %v1646_v55 = vrot.slane %v1644_v39, 3 }
 0x132   : > { %v5361_v18 = vadd.f32 %v2220_v51, %v2132_v42  ;;  %v1636_v42 = vshrl.u32 %v1070_v1, 16  ;;  %530 = vst [vmem:[#allocation2 + $0x128] sm:$0x1] %v529_v31  ;;  %v1675_v51 = vrot.slane %v1673_v60, 4  ;;  %v1074_v60 = vrot.slane %v1028_v57, 5 }
 0x133   : > { %2173 = vmatmul.bf16.gmra.mxu1 %v5314_v21  ;;  %v950_v21 = vrot.slane %v948_v50, 4 }
 0x134   : > { %6109 = vst [vmem:[#allocation47_spill] sm:$0xff] %v5361_v18  ;;  %v5368_v58 = vpop.f32.mrf.mxu0  ;;  %v1638_v31 = vrot.slane %v1636_v42, 3  ;;  %v1641_v18 = vrot.slane %v1639_v35, 4  ;;  %v1075_v59 = vsel %vm1033_vm7, %v1073_v54, %v1074_v60 }
 0x135   : > { %v954_v42 = vor.u32 %v953_v24, %v950_v21  ;;  %v4234_v21 = vunpack.c.h.bf16 %v4441_v23 }
 0x136   : > { %2262 = vmatmul.bf16.gmra.mxu2 %v5365_v0  ;;  %v2580_v34 = vpop.f32.mrf.mxu3 }
 0x137   : > { %v5378_v29 = vadd.f32 %v5328_v63, %v2580_v34  ;;  %v5384_v63 = vor.u32 %v1675_v51, %v1672_v4  ;;  %v1713_v4 = vshrl.u32 %v954_v42, 16  ;;  %v1716_v24 = vshll.u32 %v954_v42, 16 }
 0x138   : > { %v2136_v14 = vpop.f32.mrf.mxu1  ;;  %v1679_v51 = vshrl.u32 %v1073_v54, 16  ;;  %v956_v42 = vshrl.u32 %v5002_v30, 16 }
 0x139   : > { %6110 = vst [vmem:[#allocation48_spill] sm:$0xff] %v5378_v29  ;;  %v2223_v52 = vpop.f32.mrf.mxu2  ;;  %v2137_v1 = vadd.f32 %v2136_v14, %v5231_v33  ;;  %v1650_v14 = vor.u32 %v1649_v12, %v1646_v55  ;;  %v4233_v12 = vunpack.c.l.bf16 %v4441_v23  ;;  %v959_v23 = vshll.u32 %v5002_v30, 16  ;;  %v486_v29 = vld [vmem:[#allocation2 + $0x144] sm:$0x8] }
 0x13a   : > { %v5381_v62 = vadd.f32 %v2223_v52, %v2135_v8  ;;  %v1642_v8 = vor.u32 %v1641_v18, %v1638_v31  ;;  %v660_v18 = vld [vmem:[#allocation2 + $0x128] sm:$0x1]  ;;  %v1682_v52 = vshll.u32 %v1073_v54, 16  ;;  %v1687_v31 = vshrl.u32 %v1075_v59, 16 }
 0x13b   : > { %2622 = vmatmul.bf16.gmra.mxu3 %v4778_v44  ;;  %v1011_v57 = vunpack.c.l.b16 %v660_v18 }
 0x13c   : > { %6111 = vst [vmem:[#allocation49_spill] sm:$0xff] %v5381_v62  ;;  %v5386_v34 = vpop.f32.mrf.mxu0  ;;  %v5398_v40 = vsel %vm1092_vm3, %v1642_v8, %v1650_v14  ;;  %v351_v8 = vmul.f32 %v4234_v21, %v4655_v19 }
 0x13e   : > { %v2583_v33 = vpop.f32.mrf.mxu3 }
 0x13f   : > { %v5389_v35 = vadd.f32 %v2672_v3, %v2583_v33  ;;  %2716 = vmatmul.bf16.gmra.mxu0 %v5384_v63  ;;  %v531_v3 = vld [vmem:[#allocation2 + $0x13c] sm:$0x1]  ;;  %v350_v33 = vmul.f32 %v4233_v12, %v4655_v19  ;;  %v1681_v12 = vrot.slane %v1679_v51, 3  ;;  %v1689_v19 = vrot.slane %v1687_v31, 3 }
 0x140   : > { %v2139_v17 = vpop.f32.mrf.mxu1  ;;  %v532_v60 = vsel %vm4967_vm6, 0, %v531_v3 }
 0x141   : > { %6112 = vst [vmem:[#allocation50_spill] sm:$0xff] %v5389_v35  ;;  %v2225_v39 = vpop.f32.mrf.mxu2  ;;  %v383_v3 = vadd.f32 %v4657_v20, %v350_v33  ;;  %v1684_v35 = vrot.slane %v1682_v52, 4 }
 0x142   : > { %v5393_v50 = vadd.f32 %v2225_v39, %v2137_v1  ;;  %v1690_v1 = vshll.u32 %v1075_v59, 16  ;;  %v1715_v39 = vrot.slane %v1713_v4, 3  ;;  %533 = vst [vmem:[#allocation2 + $0x13c] sm:$0x1] %v532_v60  ;;  %v2140_v59 = vadd.f32 %v2139_v17, %v5098_v25 }
 0x143   : > { %2178 = vmatmul.bf16.gmra.mxu1 %v5342_v46  ;;  %v384_v4 = vadd.f32 %v4657_v20, %v351_v8  ;;  %v1029_v46 = vpack.c.b16 %v1011_v57, %v1011_v57  ;;  %v415_v60 = vmax.f32 %v383_v3, 0.0  ;;  %v487_v25 = vsel %vm4622_vm2, 0, %v486_v29  ;;  %v4147_v20 = vld [vmem:[%s6025_s2 + $0x180] sm:$0xff] }
 0x144   : > { %6113 = vst [vmem:[#allocation51_spill] sm:$0xff] %v5393_v50  ;;  %v5400_v55 = vpop.f32.mrf.mxu0  ;;  %v1718_v50 = vrot.slane %v1716_v24, 4  ;;  %v1692_v62 = vrot.slane %v1690_v1, 4  ;;  %v1685_v52 = vor.u32 %v1684_v35, %v1681_v12  ;;  %3104 = vmatpush.bf16.msra.mxu2 %v4147_v20  ;;  %v4139_v35 = vld [vmem:[%s6025_s2 + $0x140] sm:$0xff] }
 0x145   : > { %488 = vst [vmem:[#allocation2 + $0x144] sm:$0x8] %v487_v25  ;;  %v1077_v1 = vrot.slane %v1029_v46, 5  ;;  %2744 = vmatpush.bf16.msra.mxu1 %v4139_v35 }
 0x146   : > { %2267 = vmatmul.bf16.gmra.mxu2 %v5398_v40  ;;  %v2585_v14 = vpop.f32.mrf.mxu3  ;;  %v5420_v17 = vor.u32 %v1718_v50, %v1715_v39  ;;  %v1693_v31 = vor.u32 %v1692_v62, %v1689_v19  ;;  %v1076_v50 = vrot.slane %v5373_v53, 5  ;;  %v4163_v53 = vld [vmem:[%s6025_s2 + $0x200] sm:$0xff] }
 0x147   : > { %v5410_v54 = vadd.f32 %v5368_v58, %v2585_v14  ;;  %v958_v58 = vrot.slane %v956_v42, 4  ;;  %v961_v14 = vrot.slane %v959_v23, 5  ;;  %3282 = vmatpush.bf16.msra.mxu0 %v4163_v53 }
 0x148   : > { %v2141_v18 = vpop.f32.mrf.mxu1  ;;  %v1725_v3 = vshll.u32 %v1076_v50, 16 }
 0x149   : > { %6114 = vst [vmem:[#allocation52_spill] sm:$0xff] %v5410_v54  ;;  %v2228_v36 = vpop.f32.mrf.mxu2  ;;  %v416_v54 = vmax.f32 %v384_v4, 0.0  ;;  %v962_v57 = vor.u32 %v961_v14, %v958_v58  ;;  %v2142_v8 = vadd.f32 %v2141_v18, %v5113_v27  ;;  %v5447_v27 = vsel %vm1092_vm3, %v1685_v52, %v1693_v31 }
 0x14a   : > { %v5415_v21 = vadd.f32 %v2228_v36, %v2140_v59  ;;  %v4155_v36 = vld [vmem:[%s6025_s2 + $0x1c0] sm:$0xff]  ;;  %v1722_v18 = vshrl.u32 %v1076_v50, 16 }
 0x14b   : > { %2627 = vmatmul.bf16.gmra.mxu3 %v4874_v28  ;;  %v5428_v51 = vpack.c.bf16 %v416_v54, %v415_v60  ;;  %v1756_v42 = vshrl.u32 %v962_v57, 16  ;;  %v1759_v23 = vshll.u32 %v962_v57, 16  ;;  %v664_v54 = vld [vmem:[#allocation2 + $0x13c] sm:$0x1]  ;;  %v1727_v57 = vrot.slane %v1725_v3, 4 }
 0x14c   : > { %v2682_v24 = vpop.f32.mrf.mxu0  ;;  %3193 = vmatpush.bf16.msra.mxu3 %v4155_v36  ;;  %v1012_v14 = vunpack.c.l.b16 %v664_v54  ;;  %v1079_v54 = vrot.slane %v5002_v30, 5 }
 0x14d   : > { %4449 = vst [vmem:[#allocation2 + $0x148] sm:$0xff] %v5428_v51   ;;  %v1758_v60 = vrot.slane %v1756_v42, 3  ;;  %v1761_v58 = vrot.slane %v1759_v23, 4  ;;  %v964_v52 = vshrl.u32 %v5428_v51, 16 }
 0x14e   : > { %v2588_v29 = vpop.f32.mrf.mxu3 }
 0x14f   : > { %v5433_v33 = vadd.f32 %v5386_v34, %v2588_v29  ;;  %2721 = vmatmul.bf16.gmra.mxu0 %v5420_v17  ;;  %v1078_v34 = vsel %vm1033_vm7, %v1076_v50, %v1077_v1  ;;  %v967_v29 = vshll.u32 %v5428_v51, 16  ;;  %v1724_v50 = vrot.slane %v1722_v18, 3 }
 0x150   : > { %v2144_v39 = vpop.f32.mrf.mxu1  ;;  %v1730_v12 = vshrl.u32 %v1078_v34, 16  ;;  %v1733_v4 = vshll.u32 %v1078_v34, 16  ;;  %v5460_v53 = vor.u32 %v1761_v58, %v1758_v60 }
 0x151   : > { %v2230_v46 = vpop.f32.mrf.mxu2  ;;  %v2145_v20 = vadd.f32 %v2144_v39, %v5131_v7  ;;  %v969_v34 = vrot.slane %v967_v29, 5  ;;  %v1728_v42 = vor.u32 %v1727_v57, %v1724_v50  ;;  %v1765_v29 = vshrl.u32 %v1079_v54, 16 }
 0x152   : > { %v5443_v62 = vadd.f32 %v2230_v46, %v2142_v8  ;;  %v1732_v8 = vrot.slane %v1730_v12, 3  ;;  %v1735_v35 = vrot.slane %v1733_v4, 4  ;;  %v966_v46 = vrot.slane %v964_v52, 4 }
 0x153   : > { %2183 = vmatmul.bf16.gmra.mxu1 %v5384_v63 }
 0x154   : > { %v2684_v59 = vpop.f32.mrf.mxu0  ;;  %v1736_v23 = vor.u32 %v1735_v35, %v1732_v8  ;;  %v970_v4 = vor.u32 %v969_v34, %v966_v46 }
 0x156   : > { %2272 = vmatmul.bf16.gmra.mxu2 %v5447_v27  ;;  %v2590_v19 = vpop.f32.mrf.mxu3  ;;  %v2338_v30 = vshrl.u32 %v970_v4, 16 }
 0x157   : > { %v5452_v25 = vadd.f32 %v5400_v55, %v2590_v19  ;;  %v1030_v55 = vpack.c.b16 %v1012_v14, %v1012_v14  ;;  %v5471_v14 = vsel %vm1092_vm3, %v1728_v42, %v1736_v23  ;;  %v4551_v42 = vld [vmem:[#allocation2 + $0x144] sm:$0xff]  }
 0x158   : > { %v2146_v36 = vpop.f32.mrf.mxu1  ;;  %v2340_v46 = vrot.slane %v2338_v30, 3 }
 0x159   : > { %v2233_v31 = vpop.f32.mrf.mxu2  ;;  %v2147_v18 = vadd.f32 %v2146_v36, %v5157_v9  ;;  %v1080_v12 = vrot.slane %v1030_v55, 5  ;;  %v4342_v9 = vunpack.c.h.b16 %v5428_v51 }
 0x15a   : > { %v5457_v1 = vadd.f32 %v2233_v31, %v2145_v20  ;;  %v1768_v31 = vshll.u32 %v1079_v54, 16 }
 0x15b   : > { %2632 = vmatmul.bf16.gmra.mxu3 %v4951_v49  ;;  %v1081_v20 = vsel %vm1033_vm7, %v1079_v54, %v1080_v12  ;;  %v814_v23 = vpack.c.b16 %v4342_v9, %v4342_v9  ;;  %v1767_v12 = vrot.slane %v1765_v29, 3 }
 0x15c   : > { %v2687_v7 = vpop.f32.mrf.mxu0  ;;  %v1773_v50 = vshrl.u32 %v1081_v20, 16  ;;  %v1776_v57 = vshll.u32 %v1081_v20, 16  ;;  %v2321_v20 = vshrl.u32 %v4551_v42, 16 }
 0x15e   : > { %v2593_v39 = vpop.f32.mrf.mxu3 }
 0x15f   : > { %v5463_v19 = vadd.f32 %v2682_v24, %v2593_v39  ;;  %2726 = vmatmul.bf16.gmra.mxu0 %v5460_v53  ;;  %v2341_v24 = vshll.u32 %v970_v4, 16  ;;  %v1770_v4 = vrot.slane %v1768_v31, 4 }
 0x160   : > { %v2149_v3 = vpop.f32.mrf.mxu1 }
 0x161   : > { %6115 = vst [vmem:[#allocation53_spill] sm:$0xff] %v5463_v19  ;;  %v2235_v60 = vpop.f32.mrf.mxu2  ;;  %v2150_v35 = vadd.f32 %v2149_v3, %v5178_v38  ;;  %v2343_v34 = vrot.slane %v2341_v24, 4  ;;  %v2329_v38 = vshrl.u32 %v814_v23, 16  ;;  %v2332_v3 = vshll.u32 %v814_v23, 16 }
 0x162   : > { %v5467_v58 = vadd.f32 %v2235_v60, %v2147_v18  ;;  %v1775_v60 = vrot.slane %v1773_v50, 3  ;;  %v1771_v24 = vor.u32 %v1770_v4, %v1767_v12  ;;  %v2323_v50 = vrot.slane %v2321_v20, 3 }
 0x163   : > { %2188 = vmatmul.bf16.gmra.mxu1 %v5420_v17  ;;  %v5482_v54 = vor.u32 %v2343_v34, %v2340_v46  ;;  %v2334_v46 = vrot.slane %v2332_v3, 4 }
 0x164   : > { %6116 = vst [vmem:[#allocation54_spill] sm:$0xff] %v5467_v58  ;;  %v2689_v52 = vpop.f32.mrf.mxu0  ;;  %v1778_v58 = vrot.slane %v1776_v57, 4 }
 0x166   : > { %2277 = vmatmul.bf16.gmra.mxu2 %v5471_v14  ;;  %v2595_v36 = vpop.f32.mrf.mxu3 }
 0x167   : > { %v5476_v8 = vadd.f32 %v2684_v59, %v2595_v36  ;;  %v2324_v36 = vshll.u32 %v4551_v42, 16 }
 0x168   : > { %v2151_v55 = vpop.f32.mrf.mxu1 }
 0x169   : > { %6117 = vst [vmem:[#allocation55_spill] sm:$0xff] %v5476_v8  ;;  %v2238_v39 = vpop.f32.mrf.mxu2  ;;  %v1779_v8 = vor.u32 %v1778_v58, %v1775_v60  ;;  %v2152_v9 = vadd.f32 %v2151_v55, %v5196_v22  ;;  %v2326_v57 = vrot.slane %v2324_v36, 4 }
 0x16a   : > { %v5479_v18 = vadd.f32 %v2238_v39, %v2150_v35  ;;  %v2331_v35 = vrot.slane %v2329_v38, 3 }
 0x16b   : > { %2637 = vmatmul.bf16.gmra.mxu3 %v5021_v11  ;;  %v5492_v39 = vsel %vm1092_vm3, %v1771_v24, %v1779_v8  ;;  %v2327_v58 = vor.u32 %v2326_v57, %v2323_v50 }
 0x16c   : > { %v2692_v59 = vpop.f32.mrf.mxu0 }
 0x16e   : > { %v2598_v30 = vpop.f32.mrf.mxu3 }
 0x16f   : > { %v5484_v19 = vadd.f32 %v2687_v7, %v2598_v30  ;;  %2731 = vmatmul.bf16.gmra.mxu0 %v5482_v54  ;;  %v2335_v7 = vor.u32 %v2334_v46, %v2331_v35 }
 0x170   : > { %v2154_v29 = vpop.f32.mrf.mxu1 }
 0x171   : > { %v2240_v31 = vpop.f32.mrf.mxu2  ;;  %v2155_v23 = vadd.f32 %v2154_v29, %v5217_v5  ;;  %v5499_v4 = vsel %vm1092_vm3, %v2327_v58, %v2335_v7  ;;  %v6118_v7 = vld [vmem:[#allocation13_spill] sm:$0xff] }
 0x172   : > { %v5488_v34 = vadd.f32 %v2240_v31, %v2152_v9 }
 0x173   : > { %2193 = vmatmul.bf16.gmra.mxu1 %v5460_v53 }
 0x174   : > { %v2694_v42 = vpop.f32.mrf.mxu0 }
 0x176   : > { %2282 = vmatmul.bf16.gmra.mxu2 %v5492_v39  ;;  %v2600_v22 = vpop.f32.mrf.mxu3 }
 0x177   : > { %v5495_v55 = vadd.f32 %v2689_v52, %v2600_v22  ;;  %v6119_v22 = vld [vmem:[#allocation9_spill] sm:$0xff] }
 0x178   : > { %v2156_v12 = vpop.f32.mrf.mxu1 }
 0x179   : > { %v2243_v60 = vpop.f32.mrf.mxu2  ;;  %v2157_v3 = vadd.f32 %v2156_v12, %v5243_v48 }
 0x17a   : > { %v5501_v20 = vadd.f32 %v2243_v60, %v2155_v23 }
 0x17b   : > { %2642 = vmatmul.bf16.gmra.mxu3 %v5499_v4 }
 0x17c   : > { %v2697_v8 = vpop.f32.mrf.mxu0 }
 0x17e   : > { %v2603_v36 = vpop.f32.mrf.mxu3 }
 0x17f   : > { %v5504_v38 = vadd.f32 %v2692_v59, %v2603_v36  ;;  %3283 = vmatmul.bf16.vlgmr.msra.gmra.mxu0 %v5068_v45 }
 0x180   : > { %v2159_v30 = vpop.f32.mrf.mxu1 }
 0x181   : > { %v2245_v52 = vpop.f32.mrf.mxu2  ;;  %v2160_v31 = vadd.f32 %v2159_v30, %v5111_v26 }
 0x182   : > { %v5508_v5 = vadd.f32 %v2245_v52, %v2157_v3 }
 0x183   : > { %2745 = vmatmul.bf16.vlgmr.msra.gmra.mxu1 %v5055_v61 }
 0x184   : > { %v2699_v24 = vpop.f32.mrf.mxu0 }
 0x186   : > { %3105 = vmatmul.bf16.vlgmr.msra.gmra.mxu2 %v4883_v47  ;;  %v2605_v9 = vpop.f32.mrf.mxu3 }
 0x187   : > { %v5512_v29 = vadd.f32 %v2694_v42, %v2605_v9 }
 0x188   : > { %v2161_v59 = vpop.f32.mrf.mxu1 }
 0x189   : > { %v2248_v50 = vpop.f32.mrf.mxu2  ;;  %v2162_v61 = vadd.f32 %v2161_v59, %v5129_v6  ;;  %v6121_v6 = vld [vmem:[#allocation11_spill] sm:$0xff] }
 0x18a   : > { %v5515_v57 = vadd.f32 %v2248_v50, %v2160_v31  ;;  %v6122_v31 = vld [vmem:[#allocation22_spill] sm:$0xff]  ;;  %v6123_v50 = vld [vmem:[#allocation15_spill] sm:$0xff] }
 0x18b   : > { %3194 = vmatmul.bf16.vlgmr.msra.gmra.mxu3 %v5038_v37  ;;  %v6120_v37 = vld [vmem:[#allocation19_spill] sm:$0xff] }
 0x18c   : > { %v2702_v48 = vpop.f32.mrf.mxu0 }
 0x18e   : > { %v2608_v35 = vpop.f32.mrf.mxu3 }
 0x18f   : > { %v5518_v46 = vadd.f32 %v2697_v8, %v2608_v35  ;;  %3288 = vmatmul.bf16.gmra.mxu0 %v6118_v7 }
 0x190   : > { %v2164_v58 = vpop.f32.mrf.mxu1 }
 0x191   : > { %v2250_v47 = vpop.f32.mrf.mxu2  ;;  %v2165_v60 = vadd.f32 %v2164_v58, %v6120_v37  ;;  %v6125_v58 = vld [vmem:[#allocation3_spill] sm:$0xff] }
 0x192   : > { %v5522_v42 = vadd.f32 %v2250_v47, %v2162_v61 }
 0x193   : > { %2750 = vmatmul.bf16.gmra.mxu1 %v5068_v45 }
 0x194   : > { %v2704_v26 = vpop.f32.mrf.mxu0 }
 0x196   : > { %3110 = vmatmul.bf16.gmra.mxu2 %v6119_v22  ;;  %v2610_v23 = vpop.f32.mrf.mxu3 }
 0x197   : > { %v5526_v12 = vadd.f32 %v2699_v24, %v2610_v23  ;;  %v6127_v23 = vld [vmem:[#allocation26_spill] sm:$0xff] }
 0x198   : > { %v2166_v8 = vpop.f32.mrf.mxu1 }
 0x199   : > { %v2253_v36 = vpop.f32.mrf.mxu2  ;;  %v2167_v45 = vadd.f32 %v2166_v8, %v6122_v31  ;;  %v6129_v8 = vld [vmem:[#allocation12_spill] sm:$0xff] }
 0x19a   : > { %v5529_v3 = vadd.f32 %v2253_v36, %v2165_v60 }
 0x19b   : > { %3199 = vmatmul.bf16.gmra.mxu3 %v6121_v6 }
 0x19c   : > { %v2707_v30 = vpop.f32.mrf.mxu0 }
 0x19e   : > { %v2613_v52 = vpop.f32.mrf.mxu3 }
 0x19f   : > { %v5532_v9 = vadd.f32 %v2702_v48, %v2613_v52  ;;  %3293 = vmatmul.bf16.gmra.mxu0 %v6123_v50 }
 0x1a0   : > { %v2169_v59 = vpop.f32.mrf.mxu1 }
 0x1a1   : > { %v2255_v35 = vpop.f32.mrf.mxu2  ;;  %v2170_v37 = vadd.f32 %v2169_v59, %v6127_v23 }
 0x1a2   : > { %v5536_v24 = vadd.f32 %v2255_v35, %v2167_v45  ;;  %v6131_v45 = vld [vmem:[#allocation29_spill] sm:$0xff] }
 0x1a3   : > { %2755 = vmatmul.bf16.gmra.mxu1 %v6118_v7 }
 0x1a4   : > { %6124 = vst [vmem:[#allocation13_spill] sm:$0xff] %v5536_v24  ;;  %v2709_v61 = vpop.f32.mrf.mxu0  ;;  %v6132_v24 = vld [vmem:[#allocation20_spill] sm:$0xff] }
 0x1a6   : > { %3115 = vmatmul.bf16.gmra.mxu2 %v6125_v58  ;;  %v2615_v47 = vpop.f32.mrf.mxu3 }
 0x1a7   : > { %v5540_v22 = vadd.f32 %v2704_v26, %v2615_v47  ;;  %v6134_v47 = vld [vmem:[#allocation5_spill] sm:$0xff] }
 0x1a8   : > { %v2171_v48 = vpop.f32.mrf.mxu1 }
 0x1a9   : > { %6126 = vst [vmem:[#allocation9_spill] sm:$0xff] %v5540_v22  ;;  %v2258_v60 = vpop.f32.mrf.mxu2  ;;  %v2172_v7 = vadd.f32 %v2171_v48, %v6131_v45  ;;  %v6138_v48 = vld [vmem:[#allocation14_spill] sm:$0xff]  ;;  %v6141_v22 = vld [vmem:[#allocation25_spill] sm:$0xff] }
 0x1aa   : > { %v5543_v36 = vadd.f32 %v2258_v60, %v2170_v37  ;;  %v6136_v60 = vld [vmem:[#allocation32_spill] sm:$0xff] }
 0x1ab   : > { %3204 = vmatmul.bf16.gmra.mxu3 %v6129_v8 }
 0x1ac   : > { %6128 = vst [vmem:[#allocation19_spill] sm:$0xff] %v5543_v36  ;;  %v2712_v6 = vpop.f32.mrf.mxu0 }
 0x1ae   : > { %v2618_v52 = vpop.f32.mrf.mxu3 }
 0x1af   : > { %v5546_v31 = vadd.f32 %v2707_v30, %v2618_v52  ;;  %3298 = vmatmul.bf16.gmra.mxu0 %v6132_v24 }
 0x1b0   : > { %v2174_v35 = vpop.f32.mrf.mxu1 }
 0x1b1   : > { %6130 = vst [vmem:[#allocation11_spill] sm:$0xff] %v5546_v31  ;;  %v2260_v58 = vpop.f32.mrf.mxu2  ;;  %v2175_v8 = vadd.f32 %v2174_v35, %v6136_v60 }
 0x1b2   : > { %v5550_v26 = vadd.f32 %v2260_v58, %v2172_v7  ;;  %v6140_v58 = vld [vmem:[#allocation35_spill] sm:$0xff] }
 0x1b3   : > { %2760 = vmatmul.bf16.gmra.mxu1 %v6123_v50 }
 0x1b4   : > { %6133 = vst [vmem:[#allocation22_spill] sm:$0xff] %v5550_v26  ;;  %v2714_v59 = vpop.f32.mrf.mxu0 }
 0x1b6   : > { %3120 = vmatmul.bf16.gmra.mxu2 %v6134_v47  ;;  %v2620_v23 = vpop.f32.mrf.mxu3 }
 0x1b7   : > { %v5554_v37 = vadd.f32 %v2709_v61, %v2620_v23  ;;  %v6143_v23 = vld [vmem:[#allocation7_spill] sm:$0xff] }
 0x1b8   : > { %v2176_v30 = vpop.f32.mrf.mxu1 }
 0x1b9   : > { %6135 = vst [vmem:[#allocation15_spill] sm:$0xff] %v5554_v37  ;;  %v2263_v52 = vpop.f32.mrf.mxu2  ;;  %v2177_v50 = vadd.f32 %v2176_v30, %v6140_v58  ;;  %v6147_v30 = vld [vmem:[#allocation17_spill] sm:$0xff]  ;;  %v6150_v37 = vld [vmem:[#allocation30_spill] sm:$0xff] }
 0x1ba   : > { %v5557_v31 = vadd.f32 %v2263_v52, %v2175_v8  ;;  %v6145_v52 = vld [vmem:[#allocation16_spill] sm:$0xff] }
 0x1bb   : > { %3209 = vmatmul.bf16.gmra.mxu3 %v6138_v48 }
 0x1bc   : > { %6137 = vst [vmem:[#allocation3_spill] sm:$0xff] %v5557_v31  ;;  %v2717_v45 = vpop.f32.mrf.mxu0 }
 0x1be   : > { %v2623_v36 = vpop.f32.mrf.mxu3 }
 0x1bf   : > { %v5560_v7 = vadd.f32 %v2712_v6, %v2623_v36  ;;  %3303 = vmatmul.bf16.gmra.mxu0 %v6141_v22 }
 0x1c0   : > { %v2179_v26 = vpop.f32.mrf.mxu1 }
 0x1c1   : > { %6139 = vst [vmem:[#allocation26_spill] sm:$0xff] %v5560_v7  ;;  %v2265_v47 = vpop.f32.mrf.mxu2  ;;  %v2180_v48 = vadd.f32 %v2179_v26, %v6145_v52 }
 0x1c2   : > { %v5564_v61 = vadd.f32 %v2265_v47, %v2177_v50  ;;  %v6149_v47 = vld [vmem:[#allocation18_spill] sm:$0xff] }
 0x1c3   : > { %2765 = vmatmul.bf16.gmra.mxu1 %v6132_v24 }
 0x1c4   : > { %6142 = vst [vmem:[#allocation12_spill] sm:$0xff] %v5564_v61  ;;  %v2719_v35 = vpop.f32.mrf.mxu0 }
 0x1c6   : > { %3125 = vmatmul.bf16.gmra.mxu2 %v6143_v23  ;;  %v2625_v60 = vpop.f32.mrf.mxu3 }
 0x1c7   : > { %v5568_v8 = vadd.f32 %v2714_v59, %v2625_v60  ;;  %v6152_v60 = vld [vmem:[#allocation10_spill] sm:$0xff] }
 0x1c8   : > { %v2181_v36 = vpop.f32.mrf.mxu1 }
 0x1c9   : > { %6144 = vst [vmem:[#allocation29_spill] sm:$0xff] %v5568_v8  ;;  %v2268_v6 = vpop.f32.mrf.mxu2  ;;  %v2182_v24 = vadd.f32 %v2181_v36, %v6149_v47  ;;  %v6156_v36 = vld [vmem:[#allocation23_spill] sm:$0xff]  ;;  %v6159_v8 = vld [vmem:[#allocation36_spill] sm:$0xff] }
 0x1ca   : > { %v5571_v7 = vadd.f32 %v2268_v6, %v2180_v48  ;;  %v6154_v6 = vld [vmem:[#allocation21_spill] sm:$0xff] }
 0x1cb   : > { %3214 = vmatmul.bf16.gmra.mxu3 %v6147_v30 }
 0x1cc   : > { %6146 = vst [vmem:[#allocation20_spill] sm:$0xff] %v5571_v7  ;;  %v2722_v58 = vpop.f32.mrf.mxu0 }
 0x1ce   : > { %v2628_v31 = vpop.f32.mrf.mxu3 }
 0x1cf   : > { %v5574_v50 = vadd.f32 %v2717_v45, %v2628_v31  ;;  %3308 = vmatmul.bf16.gmra.mxu0 %v6150_v37 }
 0x1d0   : > { %v2184_v61 = vpop.f32.mrf.mxu1 }
 0x1d1   : > { %6148 = vst [vmem:[#allocation5_spill] sm:$0xff] %v5574_v50  ;;  %v2270_v23 = vpop.f32.mrf.mxu2  ;;  %v2185_v30 = vadd.f32 %v2184_v61, %v6154_v6 }
 0x1d2   : > { %v5578_v59 = vadd.f32 %v2270_v23, %v2182_v24  ;;  %v6158_v23 = vld [vmem:[#allocation24_spill] sm:$0xff] }
 0x1d3   : > { %2770 = vmatmul.bf16.gmra.mxu1 %v6141_v22 }
 0x1d4   : > { %6151 = vst [vmem:[#allocation32_spill] sm:$0xff] %v5578_v59  ;;  %v2724_v26 = vpop.f32.mrf.mxu0 }
 0x1d6   : > { %3130 = vmatmul.bf16.gmra.mxu2 %v6152_v60  ;;  %v2630_v52 = vpop.f32.mrf.mxu3 }
 0x1d7   : > { %v5582_v48 = vadd.f32 %v2719_v35, %v2630_v52  ;;  %v6161_v52 = vld [vmem:[#allocation4_spill] sm:$0xff] }
 0x1d8   : > { %v2186_v31 = vpop.f32.mrf.mxu1 }
 0x1d9   : > { %6153 = vst [vmem:[#allocation14_spill] sm:$0xff] %v5582_v48  ;;  %v2273_v45 = vpop.f32.mrf.mxu2  ;;  %v2187_v22 = vadd.f32 %v2186_v31, %v6158_v23  ;;  %v6165_v31 = vld [vmem:[#allocation28_spill] sm:$0xff]  ;;  %v6168_v48 = vld [vmem:[#allocation41_spill] sm:$0xff] }
 0x1da   : > { %v5585_v50 = vadd.f32 %v2273_v45, %v2185_v30  ;;  %v6163_v45 = vld [vmem:[#allocation27_spill] sm:$0xff] }
 0x1db   : > { %3219 = vmatmul.bf16.gmra.mxu3 %v6156_v36 }
 0x1dc   : > { %6155 = vst [vmem:[#allocation35_spill] sm:$0xff] %v5585_v50  ;;  %v2727_v47 = vpop.f32.mrf.mxu0 }
 0x1de   : > { %v2633_v7 = vpop.f32.mrf.mxu3 }
 0x1df   : > { %v5588_v24 = vadd.f32 %v2722_v58, %v2633_v7  ;;  %3313 = vmatmul.bf16.gmra.mxu0 %v6159_v8 }
 0x1e0   : > { %v2189_v59 = vpop.f32.mrf.mxu1 }
 0x1e1   : > { %6157 = vst [vmem:[#allocation25_spill] sm:$0xff] %v5588_v24  ;;  %v2275_v60 = vpop.f32.mrf.mxu2  ;;  %v2190_v36 = vadd.f32 %v2189_v59, %v6163_v45 }
 0x1e2   : > { %v5592_v35 = vadd.f32 %v2275_v60, %v2187_v22  ;;  %v6167_v60 = vld [vmem:[#allocation31_spill] sm:$0xff] }
 0x1e3   : > { %2775 = vmatmul.bf16.gmra.mxu1 %v6150_v37 }
 0x1e4   : > { %6160 = vst [vmem:[#allocation7_spill] sm:$0xff] %v5592_v35  ;;  %v2729_v61 = vpop.f32.mrf.mxu0 }
 0x1e6   : > { %3135 = vmatmul.bf16.gmra.mxu2 %v6161_v52  ;;  %v2635_v6 = vpop.f32.mrf.mxu3 }
 0x1e7   : > { %v5596_v30 = vadd.f32 %v2724_v26, %v2635_v6  ;;  %v6170_v6 = vld [vmem:[#allocation6_spill] sm:$0xff] }
 0x1e8   : > { %v2191_v7 = vpop.f32.mrf.mxu1 }
 0x1e9   : > { %6162 = vst [vmem:[#allocation16_spill] sm:$0xff] %v5596_v30  ;;  %v2278_v58 = vpop.f32.mrf.mxu2  ;;  %v2192_v37 = vadd.f32 %v2191_v7, %v6167_v60  ;;  %v6174_v7 = vld [vmem:[#allocation33_spill] sm:$0xff]  ;;  %v5619_v60 = vld [vmem:[%s6026_s3] ss:$0 sm:$0xff] }
 0x1ea   : > { %v5599_v24 = vadd.f32 %v2278_v58, %v2190_v36  ;;  %v6172_v58 = vld [vmem:[#allocation34_spill] sm:$0xff] }
 0x1eb   : > { %3224 = vmatmul.bf16.gmra.mxu3 %v6165_v31 }
 0x1ec   : > { %6164 = vst [vmem:[#allocation17_spill] sm:$0xff] %v5599_v24  ;;  %v2732_v23 = vpop.f32.mrf.mxu0 }
 0x1ee   : > { %v2638_v50 = vpop.f32.mrf.mxu3 }
 0x1ef   : > { %v5602_v22 = vadd.f32 %v2727_v47, %v2638_v50  ;;  %3318 = vmatmul.bf16.gmra.mxu0 %v6168_v48 }
 0x1f0   : > { %v2194_v35 = vpop.f32.mrf.mxu1 }
 0x1f1   : > { %6166 = vst [vmem:[#allocation18_spill] sm:$0xff] %v5602_v22  ;;  %v2280_v52 = vpop.f32.mrf.mxu2  ;;  %v2195_v31 = vadd.f32 %v2194_v35, %v6172_v58  ;;  %v6177_v35 = vld [vmem:[#allocation38_spill] sm:$0xff] }
 0x1f2   : > { %v5606_v26 = vadd.f32 %v2280_v52, %v2192_v37  ;;  %v2288_v58 = vadd.f32 %v5619_v60, %v6177_v35 }
 0x1f3   : > { %2780 = vmatmul.bf16.gmra.mxu1 %v6159_v8 }
 0x1f4   : > { %6169 = vst [vmem:[#allocation30_spill] sm:$0xff] %v5606_v26  ;;  %v2734_v59 = vpop.f32.mrf.mxu0 }
 0x1f6   : > { %3140 = vmatmul.bf16.gmra.mxu2 %v6170_v6  ;;  %v2640_v45 = vpop.f32.mrf.mxu3  ;;  %v6176_v6 = vld [vmem:[#allocation37_spill] sm:$0xff] }
 0x1f7   : > { %v5610_v36 = vadd.f32 %v2729_v61, %v2640_v45 }
 0x1f8   : > { %v2196_v50 = vpop.f32.mrf.mxu1 }
 0x1f9   : > { %6171 = vst [vmem:[#allocation10_spill] sm:$0xff] %v5610_v36  ;;  %v2283_v47 = vpop.f32.mrf.mxu2  ;;  %v2197_v61 = vadd.f32 %v2196_v50, %v6176_v6  ;;  %v6180_v6 = vld [vmem:[#allocation40_spill] sm:$0xff] }
 0x1fa   : > { %v5613_v22 = vadd.f32 %v2283_v47, %v2195_v31  ;;  %v6178_v47 = vld [vmem:[#allocation39_spill] sm:$0xff] }
 0x1fb   : > { %3229 = vmatmul.bf16.gmra.mxu3 %v6174_v7 }
 0x1fc   : > { %6173 = vst [vmem:[#allocation21_spill] sm:$0xff] %v5613_v22  ;;  %v3284_v8 = vpop.f32.mrf.mxu0 }
 0x1fe   : > { %v2643_v37 = vpop.f32.mrf.mxu3 }
 0x1ff   : > { %v5621_v52 = vadd.f32 %v2732_v23, %v2643_v37  ;;  %3323 = vmatmul.bf16.gmra.mxu0 %v5325_v56 }
 0x200   : > { %v2746_v45 = vpop.f32.mrf.mxu1 }
 0x201   : > { %6175 = vst [vmem:[#allocation23_spill] sm:$0xff] %v5621_v52  ;;  %v2285_v31 = vpop.f32.mrf.mxu2  ;;  %v2747_v7 = vadd.f32 %v2746_v45, %v6178_v47  ;;  %v2289_v52 = vadd.f32 %v5619_v60, %v6180_v6 }
 0x202   : > { %v5628_v22 = vadd.f32 %v2285_v31, %v2197_v61 }
 0x203   : > { %v2826_v36 = vadd.f32 %v2747_v7, %v2288_v58  ;;  %2785 = vmatmul.bf16.gmra.mxu1 %v6168_v48 }
 0x204   : > { %v3286_v26 = vpop.f32.mrf.mxu0 }
 0x206   : > { %3145 = vmatmul.bf16.gmra.mxu2 %v4903_v41  ;;  %v2645_v23 = vpop.f32.mrf.mxu3  ;;  %v2290_v41 = vadd.f32 %v5619_v60, %v5311_v15  ;;  %v6181_v15 = vld [vmem:[#allocation43_spill] sm:$0xff] }
 0x207   : > { %v5632_v37 = vadd.f32 %v2734_v59, %v2645_v23 }
 0x208   : > { %v2748_v50 = vpop.f32.mrf.mxu1 }
 0x209   : > { %6179 = vst [vmem:[#allocation24_spill] sm:$0xff] %v5632_v37  ;;  %v3106_v24 = vpop.f32.mrf.mxu2  ;;  %v2749_v35 = vadd.f32 %v2748_v50, %v5308_v16  ;;  %v2291_v50 = vadd.f32 %v5619_v60, %v5321_v13 }
 0x20b   : > { %v2827_v30 = vadd.f32 %v2749_v35, %v2289_v52  ;;  %3234 = vmatmul.bf16.gmra.mxu3 %v5274_v10 }
 0x20c   : > { %v3289_v61 = vpop.f32.mrf.mxu0 }
 0x20e   : > { %v3195_v45 = vpop.f32.mrf.mxu3 }
 0x20f   : > { %3328 = vmatmul.bf16.gmra.mxu0 %v5365_v0  ;;  %v3196_v47 = vadd.f32 %v3195_v45, %v3106_v24  ;;  %v6182_v24 = vld [vmem:[#allocation42_spill] sm:$0xff] }
 0x210   : > { %v2751_v58 = vpop.f32.mrf.mxu1  ;;  %v6184_v45 = vld [vmem:[#allocation46_spill] sm:$0xff] }
 0x211   : > { %v3108_v48 = vpop.f32.mrf.mxu2  ;;  %v2752_v59 = vadd.f32 %v2751_v58, %v5317_v32  ;;  %v3285_v52 = vadd.f32 %v3284_v8, %v3196_v47 }
 0x213   : > { %v2828_v31 = vadd.f32 %v2752_v59, %v2290_v41  ;;  %2790 = vmatmul.bf16.gmra.mxu1 %v5325_v56  ;;  %v5647_v58 = vadd.f32 %v3285_v52, %v2826_v36 }
 0x214   : > { %v3291_v16 = vpop.f32.mrf.mxu0 }
 0x216   : > { %3150 = vmatmul.bf16.gmra.mxu2 %v5009_v43  ;;  %v3197_v10 = vpop.f32.mrf.mxu3 }
 0x217   : > { %v3198_v7 = vadd.f32 %v3197_v10, %v3108_v48 }
 0x218   : > { %v2753_v23 = vpop.f32.mrf.mxu1 }
 0x219   : > { %v3111_v6 = vpop.f32.mrf.mxu2  ;;  %v2754_v35 = vadd.f32 %v2753_v23, %v6181_v15  ;;  %v3287_v37 = vadd.f32 %v3286_v26, %v3198_v7 }
 0x21b   : > { %v2829_v32 = vadd.f32 %v2754_v35, %v2291_v50  ;;  %v5649_v56 = vadd.f32 %v3287_v37, %v2827_v30  ;;  %3239 = vmatmul.bf16.gmra.mxu3 %v6182_v24  ;;  %v6183_v30 = vld [vmem:[#allocation44_spill] sm:$0xff]  ;;  %v6185_v50 = vld [vmem:[#allocation47_spill] sm:$0xff] }
 0x21c   : > { %v3294_v43 = vpop.f32.mrf.mxu0  ;;  %v2292_v36 = vadd.f32 %v5619_v60, %v6183_v30  ;;  %v2293_v15 = vadd.f32 %v5619_v60, %v6185_v50  ;;  %v6186_v24 = vld [vmem:[#allocation48_spill] sm:$0xff] }
 0x21d   : > { %v4350_v13 = vpack.c.bf16 %v5649_v56, %v5647_v58 }
 0x21e   : > { %v3200_v8 = vpop.f32.mrf.mxu3 }
 0x21f   : > { %4351 = vst [vmem:[%s5657_s10] sm:$0xff] %v4350_v13   ;;  %3333 = vmatmul.bf16.gmra.mxu0 %v5398_v40  ;;  %v3201_v59 = vadd.f32 %v3200_v8, %v3111_v6  ;;  %v6187_v6 = vld [vmem:[#allocation45_spill] sm:$0xff] }
 0x220   : > { %v2756_v26 = vpop.f32.mrf.mxu1 }
 0x221   : > { %v3113_v37 = vpop.f32.mrf.mxu2  ;;  %v2757_v41 = vadd.f32 %v2756_v26, %v6184_v45  ;;  %v3290_v52 = vadd.f32 %v3289_v61, %v3201_v59  ;;  %v6188_v45 = vld [vmem:[#allocation49_spill] sm:$0xff]  ;;  %v6189_v59 = vld [vmem:[#allocation50_spill] sm:$0xff] }
 0x223   : > { %v2830_v48 = vadd.f32 %v2757_v41, %v2292_v36  ;;  %2795 = vmatmul.bf16.gmra.mxu1 %v5365_v0  ;;  %v5671_v36 = vadd.f32 %v3290_v52, %v2828_v31  ;;  %v2294_v41 = vadd.f32 %v5619_v60, %v6188_v45  ;;  %v534_v52 = vld [vmem:[#allocation2 + $0x150] sm:$0x1] }
 0x224   : > { %v3296_v47 = vpop.f32.mrf.mxu0  ;;  %v535_v50 = vsel %vm4967_vm6, 0, %v534_v52  ;;  %v6192_v45 = vld [vmem:[#allocation52_spill] sm:$0xff] }
 0x225   : > { %536 = vst [vmem:[#allocation2 + $0x150] sm:$0x1] %v535_v50  ;;  %v432_v50 = vld [vmem:[#allocation2 + $0x158] sm:$0x8] }
 0x226   : > { %3155 = vmatmul.bf16.gmra.mxu2 %v4778_v44  ;;  %v3202_v10 = vpop.f32.mrf.mxu3 }
 0x227   : > { %v3203_v7 = vadd.f32 %v3202_v10, %v3113_v37 }
 0x228   : > { %v2758_v23 = vpop.f32.mrf.mxu1 }
 0x229   : > { %v3116_v35 = vpop.f32.mrf.mxu2  ;;  %v2759_v13 = vadd.f32 %v2758_v23, %v6186_v24  ;;  %v3292_v30 = vadd.f32 %v3291_v16, %v3203_v7 }
 0x22b   : > { %v2831_v26 = vadd.f32 %v2759_v13, %v2293_v15  ;;  %v5673_v0 = vadd.f32 %v3292_v30, %v2829_v32  ;;  %3244 = vmatmul.bf16.gmra.mxu3 %v6187_v6  ;;  %v6191_v6 = vld [vmem:[#allocation51_spill] sm:$0xff] }
 0x22c   : > { %v3299_v44 = vpop.f32.mrf.mxu0 }
 0x22d   : > { %v4355_v61 = vpack.c.bf16 %v5673_v0, %v5671_v36 }
 0x22e   : > { %v3205_v8 = vpop.f32.mrf.mxu3 }
 0x22f   : > { %4468 = vst [vmem:[%s5657_s10 + $0x8] sm:$0xff] %v4355_v61   ;;  %3338 = vmatmul.bf16.gmra.mxu0 %v5447_v27  ;;  %v3206_v32 = vadd.f32 %v3205_v8, %v3116_v35  ;;  %v2295_v61 = vadd.f32 %v5619_v60, %v6191_v6 }
 0x230   : > { %v2761_v37 = vpop.f32.mrf.mxu1 }
 0x231   : > { %v3118_v16 = vpop.f32.mrf.mxu2  ;;  %v2762_v31 = vadd.f32 %v2761_v37, %v6189_v59  ;;  %v3295_v24 = vadd.f32 %v3294_v43, %v3206_v32 }
 0x233   : > { %v2832_v10 = vadd.f32 %v2762_v31, %v2294_v41  ;;  %2800 = vmatmul.bf16.gmra.mxu1 %v5398_v40  ;;  %v5690_v41 = vadd.f32 %v3295_v24, %v2830_v48  ;;  %v668_v31 = vld [vmem:[#allocation2 + $0x150] sm:$0x1] }
 0x234   : > { %v3301_v7 = vpop.f32.mrf.mxu0  ;;  %v1013_v52 = vunpack.c.l.b16 %v668_v31 }
 0x236   : > { %3160 = vmatmul.bf16.gmra.mxu2 %v4874_v28  ;;  %v3207_v15 = vpop.f32.mrf.mxu3  ;;  %v1031_v6 = vpack.c.b16 %v1013_v52, %v1013_v52 }
 0x237   : > { %v3208_v13 = vadd.f32 %v3207_v15, %v3118_v16  ;;  %v433_v15 = vsel %vm4622_vm2, 0, %v432_v50 }
 0x238   : > { %v2763_v30 = vpop.f32.mrf.mxu1  ;;  %434 = vst [vmem:[#allocation2 + $0x158] sm:$0x8] %v433_v15 }
 0x239   : > { %v3121_v37 = vpop.f32.mrf.mxu2  ;;  %v2764_v40 = vadd.f32 %v2763_v30, %v6192_v45  ;;  %v3297_v35 = vadd.f32 %v3296_v47, %v3208_v13  ;;  %v2296_v47 = vadd.f32 %v5619_v60, %v5415_v21  ;;  %v437_v13 = vld [vmem:[#allocation2 + $0x164] sm:$0x1] }
 0x23a   : > { %v438_v21 = vsel %vm4967_vm6, 0, %v437_v13 }
 0x23b   : > { %v2833_v8 = vadd.f32 %v2764_v40, %v2295_v61  ;;  %v5692_v59 = vadd.f32 %v3297_v35, %v2831_v26  ;;  %3249 = vmatmul.bf16.gmra.mxu3 %v5384_v63  ;;  %439 = vst [vmem:[#allocation2 + $0x164] sm:$0x1] %v438_v21 }
 0x23c   : > { %v5695_v28 = vpop.f32.mrf.mxu0 }
 0x23d   : > { %v4360_v43 = vpack.c.bf16 %v5692_v59, %v5690_v41 }
 0x23e   : > { %v3210_v16 = vpop.f32.mrf.mxu3 }
 0x23f   : > { %4469 = vst [vmem:[%s5657_s10 + $0x10] sm:$0xff] %v4360_v43   ;;  %3343 = vmatmul.bf16.gmra.mxu0 %v5471_v14  ;;  %v3211_v24 = vadd.f32 %v3210_v16, %v3121_v37  ;;  %v1082_v43 = vrot.slane %v5428_v51, 5  ;;  %v2298_v51 = vadd.f32 %v5619_v60, %v5457_v1  ;;  %v5731_v15 = vld [vmem:[#allocation2 + $0x158] sm:$0xff]  }
 0x240   : > { %v2766_v32 = vpop.f32.mrf.mxu1  ;;  %v4346_v21 = vunpack.c.h.b16 %v5731_v15 }
 0x241   : > { %v3123_v48 = vpop.f32.mrf.mxu2  ;;  %v2767_v26 = vadd.f32 %v2766_v32, %v5433_v33  ;;  %v3300_v61 = vadd.f32 %v3299_v44, %v3211_v24  ;;  %v671_v24 = vld [vmem:[#allocation2 + $0x160] sm:$0xf] }
 0x243   : > { %v5704_v63 = vadd.f32 %v2767_v26, %v2296_v47  ;;  %2805 = vmatmul.bf16.gmra.mxu1 %v5447_v27  ;;  %v2297_v27 = vadd.f32 %v5619_v60, %v5443_v62  ;;  %v5716_v31 = vadd.f32 %v3300_v61, %v2832_v10  ;;  %v2347_v10 = vshrl.u32 %v1082_v43, 16 }
 0x244   : > { %v3306_v30 = vpop.f32.mrf.mxu0  ;;  %v2350_v26 = vshll.u32 %v1082_v43, 16 }
 0x246   : > { %3165 = vmatmul.bf16.gmra.mxu2 %v4951_v49  ;;  %v3212_v33 = vpop.f32.mrf.mxu3  ;;  %v1083_v49 = vrot.slane %v1031_v6, 5 }
 0x247   : > { %v3213_v45 = vadd.f32 %v3212_v33, %v3123_v48  ;;  %v6193_v48 = vld [vmem:[#allocation53_spill] sm:$0xff]  ;;  %v780_v33 = vunpack.c.l.b16 %v671_v24 }
 0x248   : > { %v2768_v40 = vpop.f32.mrf.mxu1  ;;  %v1084_v32 = vsel %vm1033_vm7, %v1082_v43, %v1083_v49 }
 0x249   : > { %v3126_v2 = vpop.f32.mrf.mxu2  ;;  %v2769_v37 = vadd.f32 %v2768_v40, %v5452_v25  ;;  %v3302_v35 = vadd.f32 %v3301_v7, %v3213_v45  ;;  %v672_v25 = vld [vmem:[#allocation2 + $0x164] sm:$0x1]  ;;  %v2355_v52 = vshrl.u32 %v1084_v32, 16  ;;  %v2358_v50 = vshll.u32 %v1084_v32, 16 }
 0x24a   : > { %v1014_v13 = vunpack.c.l.b16 %v672_v25  ;;  %v2349_v45 = vrot.slane %v2347_v10, 3  ;;  %v2352_v40 = vrot.slane %v2350_v26, 4  ;;  %v834_v25 = vpack.c.b16 %v780_v33, %v4346_v21 }
 0x24b   : > { %v2835_v16 = vadd.f32 %v2769_v37, %v2297_v27  ;;  %v5718_v23 = vadd.f32 %v3302_v35, %v2833_v8  ;;  %3254 = vmatmul.bf16.gmra.mxu3 %v5420_v17  ;;  %v2357_v27 = vrot.slane %v2355_v52, 3  ;;  %v2360_v37 = vrot.slane %v2358_v50, 4 }
 0x24c   : > { %v5721_v44 = vpop.f32.mrf.mxu0  ;;  %v1032_v35 = vpack.c.b16 %v1014_v13, %v1014_v13  ;;  %v2353_v10 = vor.u32 %v2352_v40, %v2349_v45  ;;  %v1085_v26 = vrot.slane %v834_v25, 5  ;;  %v2300_v21 = vadd.f32 %v5619_v60, %v5479_v18 }
 0x24d   : > { %v4365_v62 = vpack.c.bf16 %v5718_v23, %v5716_v31 }
 0x24e   : > { %v3215_v47 = vpop.f32.mrf.mxu3  ;;  %v1086_v52 = vrot.slane %v1032_v35, 5  ;;  %v2888_v40 = vshll.u32 %v1085_v26, 16 }
 0x24f   : > { %4470 = vst [vmem:[%s5657_s10 + $0x18] sm:$0xff] %v4365_v62   ;;  %3348 = vmatmul.bf16.gmra.mxu0 %v5492_v39  ;;  %v3216_v1 = vadd.f32 %v3215_v47, %v3126_v2 }
 0x250   : > { %v2771_v7 = vpop.f32.mrf.mxu1 }
 0x251   : > { %v3128_v8 = vpop.f32.mrf.mxu2  ;;  %v2772_v17 = vadd.f32 %v2771_v7, %v6193_v48  ;;  %v3305_v49 = vadd.f32 %v5695_v28, %v3216_v1  ;;  %v2361_v48 = vor.u32 %v2360_v37, %v2357_v27 }
 0x253   : > { %v5733_v6 = vadd.f32 %v2772_v17, %v2298_v51  ;;  %2810 = vmatmul.bf16.gmra.mxu1 %v5471_v14  ;;  %v6194_v14 = vld [vmem:[#allocation54_spill] sm:$0xff]  ;;  %v6195_v51 = vld [vmem:[#allocation55_spill] sm:$0xff]  ;;  %v5745_v50 = vadd.f32 %v3305_v49, %v5704_v63  ;;  %v5753_v24 = vsel %vm1092_vm3, %v2353_v10, %v2361_v48  ;;  %v2862_v48 = vshll.u32 %v5731_v15, 16 }
 0x254   : > { %v5737_v61 = vpop.f32.mrf.mxu0  ;;  %v2299_v2 = vadd.f32 %v5619_v60, %v6194_v14 }
 0x256   : > { %3170 = vmatmul.bf16.gmra.mxu2 %v5021_v11  ;;  %v3217_v43 = vpop.f32.mrf.mxu3 }
 0x257   : > { %v3218_v62 = vadd.f32 %v3217_v43, %v3128_v8  ;;  %v816_v43 = vpack.c.b16 %v780_v33, %v780_v33 }
 0x258   : > { %v2773_v32 = vpop.f32.mrf.mxu1 }
 0x259   : > { %v3131_v47 = vpop.f32.mrf.mxu2  ;;  %v2774_v7 = vadd.f32 %v2773_v32, %v6195_v51  ;;  %v3307_v17 = vadd.f32 %v3306_v30, %v3218_v62  ;;  %v1087_v30 = vsel %vm1033_vm7, %v1085_v26, %v1086_v52  ;;  %v972_v62 = vshrl.u32 %v834_v25, 16 }
 0x25a   : > { %v2893_v27 = vshrl.u32 %v1087_v30, 16  ;;  %v2896_v37 = vshll.u32 %v1087_v30, 16  ;;  %v975_v32 = vshll.u32 %v834_v25, 16 }
 0x25b   : > { %v2837_v11 = vadd.f32 %v2774_v7, %v2299_v2  ;;  %v5747_v28 = vadd.f32 %v3307_v17, %v2835_v16  ;;  %3259 = vmatmul.bf16.gmra.mxu3 %v5460_v53  ;;  %v2885_v16 = vshrl.u32 %v1085_v26, 16  ;;  %v2890_v2 = vrot.slane %v2888_v40, 4 }
 0x25c   : > { %v5750_v8 = vpop.f32.mrf.mxu0  ;;  %v2895_v51 = vrot.slane %v2893_v27, 3  ;;  %v2898_v7 = vrot.slane %v2896_v37, 4  ;;  %v2867_v17 = vshrl.u32 %v816_v43, 16  ;;  %v2870_v26 = vshll.u32 %v816_v43, 16 }
 0x25d   : > { %v4370_v13 = vpack.c.bf16 %v5747_v28, %v5745_v50  ;;  %v2887_v14 = vrot.slane %v2885_v16, 3  ;;  %v974_v52 = vrot.slane %v972_v62, 4  ;;  %v977_v25 = vrot.slane %v975_v32, 5 }
 0x25e   : > { %v3220_v1 = vpop.f32.mrf.mxu3  ;;  %v2869_v40 = vrot.slane %v2867_v17, 3 }
 0x25f   : > { %4471 = vst [vmem:[%s5657_s10 + $0x20] sm:$0xff] %v4370_v13   ;;  %3353 = vmatmul.bf16.gmra.mxu0 %v5753_v24  ;;  %v3221_v49 = vadd.f32 %v3220_v1, %v3131_v47  ;;  %v2301_v13 = vadd.f32 %v5619_v60, %v5488_v34  ;;  %v978_v34 = vor.u32 %v977_v25, %v974_v52 }
 0x260   : > { %v2776_v63 = vpop.f32.mrf.mxu1 }
 0x261   : > { %v3133_v53 = vpop.f32.mrf.mxu2  ;;  %v2777_v45 = vadd.f32 %v2776_v63, %v5484_v19  ;;  %v2859_v19 = vshrl.u32 %v5731_v15, 16 }
 0x263   : > { %v5763_v35 = vadd.f32 %v2777_v45, %v2300_v21  ;;  %2815 = vmatmul.bf16.gmra.mxu1 %v5492_v39  ;;  %v3310_v39 = vadd.f32 %v5721_v44, %v3221_v49  ;;  %v2899_v21 = vor.u32 %v2898_v7, %v2895_v51  ;;  %v2861_v15 = vrot.slane %v2859_v19, 3 }
 0x264   : > { %v3316_v18 = vpop.f32.mrf.mxu0  ;;  %v2864_v45 = vrot.slane %v2862_v48, 4  ;;  %v2872_v44 = vrot.slane %v2870_v26, 4 }
 0x266   : > { %3175 = vmatmul.bf16.gmra.mxu2 %v5499_v4  ;;  %v3222_v10 = vpop.f32.mrf.mxu3  ;;  %v2891_v4 = vor.u32 %v2890_v2, %v2887_v14  ;;  %v2865_v49 = vor.u32 %v2864_v45, %v2861_v15  ;;  %v2873_v62 = vor.u32 %v2872_v44, %v2869_v40  ;;  %v2876_v14 = vshrl.u32 %v978_v34, 16 }
 0x267   : > { %v3223_v33 = vadd.f32 %v3222_v10, %v3133_v53  ;;  %v5775_v53 = vadd.f32 %v3310_v39, %v5733_v6  ;;  %v2879_v2 = vshll.u32 %v978_v34, 16  ;;  %v2302_v6 = vadd.f32 %v5619_v60, %v5501_v20 }
 0x268   : > { %v2778_v47 = vpop.f32.mrf.mxu1  ;;  %v2874_v7 = vsel %vm1092_vm3, %v2865_v49, %v2873_v62  ;;  %v2878_v10 = vrot.slane %v2876_v14, 3 }
 0x269   : > { %v3136_v30 = vpop.f32.mrf.mxu2  ;;  %v2779_v1 = vadd.f32 %v2778_v47, %v5495_v55  ;;  %v3312_v63 = vadd.f32 %v5737_v61, %v3223_v33  ;;  %v2900_v55 = vsel %vm1092_vm3, %v2891_v4, %v2899_v21  ;;  %v2881_v48 = vrot.slane %v2879_v2, 4 }
 0x26b   : > { %v2839_v16 = vadd.f32 %v2779_v1, %v2301_v13  ;;  %v5777_v27 = vadd.f32 %v3312_v63, %v2837_v11  ;;  %3264 = vmatmul.bf16.gmra.mxu3 %v5482_v54  ;;  %v2882_v47 = vor.u32 %v2881_v48, %v2878_v10 }
 0x26c   : > { %v3319_v37 = vpop.f32.mrf.mxu0 }
 0x26d   : > { %v4375_v61 = vpack.c.bf16 %v5777_v27, %v5775_v53 }
 0x26e   : > { %v3225_v43 = vpop.f32.mrf.mxu3 }
 0x26f   : > { %4472 = vst [vmem:[%s5657_s10 + $0x28] sm:$0xff] %v4375_v61   ;;  %3358 = vmatmul.bf16.gmra.mxu0 %v2900_v55  ;;  %v3226_v19 = vadd.f32 %v3225_v43, %v3136_v30  ;;  %v2305_v55 = vadd.f32 %v5619_v60, %v5522_v42 }
 0x270   : > { %v2781_v32 = vpop.f32.mrf.mxu1 }
 0x271   : > { %v3138_v11 = vpop.f32.mrf.mxu2  ;;  %v2782_v54 = vadd.f32 %v2781_v32, %v5504_v38  ;;  %v3315_v39 = vadd.f32 %v5750_v8, %v3226_v19  ;;  %v2303_v38 = vadd.f32 %v5619_v60, %v5508_v5  ;;  %v2304_v5 = vadd.f32 %v5619_v60, %v5515_v57 }
 0x273   : > { %v2840_v51 = vadd.f32 %v2782_v54, %v2302_v6  ;;  %2820 = vmatmul.bf16.gmra.mxu1 %v5753_v24  ;;  %v5794_v30 = vadd.f32 %v3315_v39, %v5763_v35  ;;  %v2306_v6 = vadd.f32 %v5619_v60, %v5529_v3 }
 0x274   : > { %v3321_v17 = vpop.f32.mrf.mxu0 }
 0x276   : > { %3180 = vmatmul.bf16.gmra.mxu2 %v2874_v7  ;;  %v3227_v26 = vpop.f32.mrf.mxu3 }
 0x277   : > { %v3228_v33 = vadd.f32 %v3227_v26, %v3138_v11 }
 0x278   : > { %v2783_v20 = vpop.f32.mrf.mxu1 }
 0x279   : > { %v3141_v52 = vpop.f32.mrf.mxu2  ;;  %v2784_v24 = vadd.f32 %v2783_v20, %v5512_v29  ;;  %v3317_v25 = vadd.f32 %v3316_v18, %v3228_v33  ;;  %v6197_v33 = vld [vmem:[#allocation9_spill] sm:$0xff] }
 0x27b   : > { %v2841_v13 = vadd.f32 %v2784_v24, %v2303_v38  ;;  %v5796_v1 = vadd.f32 %v3317_v25, %v2839_v16  ;;  %3269 = vmatmul.bf16.gmra.mxu3 %v2882_v47 }
 0x27c   : > { %v3324_v4 = vpop.f32.mrf.mxu0 }
 0x27d   : > { %v4380_v8 = vpack.c.bf16 %v5796_v1, %v5794_v30 }
 0x27e   : > { %v3230_v21 = vpop.f32.mrf.mxu3 }
 0x27f   : > { %4473 = vst [vmem:[%s5657_s10 + $0x30] sm:$0xff] %v4380_v8   ;;  %v3231_v45 = vadd.f32 %v3230_v21, %v3141_v52 }
 0x280   : > { %v2786_v63 = vpop.f32.mrf.mxu1 }
 0x281   : > { %v3143_v15 = vpop.f32.mrf.mxu2  ;;  %v2787_v29 = vadd.f32 %v2786_v63, %v5518_v46  ;;  %v3320_v40 = vadd.f32 %v3319_v37, %v3231_v45  ;;  %v6199_v63 = vld [vmem:[#allocation11_spill] sm:$0xff] }
 0x283   : > { %v2842_v18 = vadd.f32 %v2787_v29, %v2304_v5  ;;  %v5807_v57 = vadd.f32 %v3320_v40, %v2840_v51 }
 0x284   : > { %v3326_v35 = vpop.f32.mrf.mxu0 }
 0x286   : > { %v3232_v16 = vpop.f32.mrf.mxu3 }
 0x287   : > { %v3233_v44 = vadd.f32 %v3232_v16, %v3143_v15 }
 0x288   : > { %v2788_v34 = vpop.f32.mrf.mxu1 }
 0x289   : > { %v3146_v61 = vpop.f32.mrf.mxu2  ;;  %v2789_v43 = vadd.f32 %v2788_v34, %v5526_v12  ;;  %v3322_v49 = vadd.f32 %v3321_v17, %v3233_v44  ;;  %v6196_v17 = vld [vmem:[#allocation13_spill] sm:$0xff]  ;;  %v6200_v44 = vld [vmem:[#allocation22_spill] sm:$0xff] }
 0x28a   : > { %v2307_v26 = vadd.f32 %v5619_v60, %v6196_v17  ;;  %v2309_v34 = vadd.f32 %v5619_v60, %v6200_v44 }
 0x28b   : > { %v2843_v62 = vadd.f32 %v2789_v43, %v2305_v55  ;;  %v5809_v32 = vadd.f32 %v3322_v49, %v2841_v13 }
 0x28c   : > { %v3329_v46 = vpop.f32.mrf.mxu0 }
 0x28d   : > { %v4385_v14 = vpack.c.bf16 %v5809_v32, %v5807_v57 }
 0x28e   : > { %v3235_v2 = vpop.f32.mrf.mxu3 }
 0x28f   : > { %4474 = vst [vmem:[%s5657_s10 + $0x38] sm:$0xff] %v4385_v14   ;;  %v3236_v54 = vadd.f32 %v3235_v2, %v3146_v61  ;;  %v6201_v61 = vld [vmem:[#allocation15_spill] sm:$0xff] }
 0x290   : > { %v2791_v37 = vpop.f32.mrf.mxu1 }
 0x291   : > { %v3148_v42 = vpop.f32.mrf.mxu2  ;;  %v2792_v11 = vadd.f32 %v2791_v37, %v5532_v9  ;;  %v3325_v19 = vadd.f32 %v3324_v4, %v3236_v54  ;;  %v6198_v4 = vld [vmem:[#allocation19_spill] sm:$0xff] }
 0x292   : > { %v2308_v8 = vadd.f32 %v5619_v60, %v6198_v4 }
 0x293   : > { %v2844_v12 = vadd.f32 %v2792_v11, %v2306_v6  ;;  %v5820_v3 = vadd.f32 %v3325_v19, %v2842_v18  ;;  %v6202_v11 = vld [vmem:[#allocation3_spill] sm:$0xff]  ;;  %v6203_v19 = vld [vmem:[#allocation26_spill] sm:$0xff] }
 0x294   : > { %v3331_v51 = vpop.f32.mrf.mxu0  ;;  %v2310_v54 = vadd.f32 %v5619_v60, %v6202_v11 }
 0x296   : > { %v3237_v7 = vpop.f32.mrf.mxu3 }
 0x297   : > { %v3238_v10 = vadd.f32 %v3237_v7, %v3148_v42 }
 0x298   : > { %v2793_v48 = vpop.f32.mrf.mxu1 }
 0x299   : > { %v3151_v39 = vpop.f32.mrf.mxu2  ;;  %v2794_v47 = vadd.f32 %v2793_v48, %v6197_v33  ;;  %v3327_v20 = vadd.f32 %v3326_v35, %v3238_v10  ;;  %v6204_v33 = vld [vmem:[#allocation12_spill] sm:$0xff] }
 0x29b   : > { %v2845_v38 = vadd.f32 %v2794_v47, %v2307_v26  ;;  %v5822_v52 = vadd.f32 %v3327_v20, %v2843_v62  ;;  %v2311_v47 = vadd.f32 %v5619_v60, %v6204_v33 }
 0x29c   : > { %v3334_v9 = vpop.f32.mrf.mxu0 }
 0x29d   : > { %v4390_v24 = vpack.c.bf16 %v5822_v52, %v5820_v3 }
 0x29e   : > { %v3240_v25 = vpop.f32.mrf.mxu3 }
 0x29f   : > { %4475 = vst [vmem:[%s5657_s10 + $0x40] sm:$0xff] %v4390_v24   ;;  %v3241_v29 = vadd.f32 %v3240_v25, %v3151_v39 }
 0x2a0   : > { %v2796_v13 = vpop.f32.mrf.mxu1 }
 0x2a1   : > { %v3153_v21 = vpop.f32.mrf.mxu2  ;;  %v2797_v5 = vadd.f32 %v2796_v13, %v6199_v63  ;;  %v3330_v35 = vadd.f32 %v3329_v46, %v3241_v29  ;;  %v3460_v13 = vadd.f32 %v5649_v56, %v5647_v58 }
 0x2a3   : > { %v2846_v15 = vadd.f32 %v2797_v5, %v2308_v8  ;;  %v5833_v14 = vadd.f32 %v3330_v35, %v2844_v12 }
 0x2a4   : > { %v3336_v18 = vpop.f32.mrf.mxu0 }
 0x2a6   : > { %v3242_v45 = vpop.f32.mrf.mxu3 }
 0x2a7   : > { %v3243_v16 = vadd.f32 %v3242_v45, %v3153_v21  ;;  %v3461_v21 = vadd.f32 %v3460_v13, %v5671_v36 }
 0x2a8   : > { %v2798_v40 = vpop.f32.mrf.mxu1 }
 0x2a9   : > { %v3156_v55 = vpop.f32.mrf.mxu2  ;;  %v2799_v43 = vadd.f32 %v2798_v40, %v6201_v61  ;;  %v3332_v49 = vadd.f32 %v3331_v51, %v3243_v16  ;;  %v3462_v5 = vadd.f32 %v3461_v21, %v5673_v0  ;;  %v6206_v40 = vld [vmem:[#allocation20_spill] sm:$0xff] }
 0x2ab   : > { %v2847_v62 = vadd.f32 %v2799_v43, %v2309_v34  ;;  %v5835_v2 = vadd.f32 %v3332_v49, %v2845_v38  ;;  %v6205_v38 = vld [vmem:[#allocation29_spill] sm:$0xff]  ;;  %v3463_v35 = vadd.f32 %v3462_v5, %v5690_v41 }
 0x2ac   : > { %v3339_v42 = vpop.f32.mrf.mxu0  ;;  %v6207_v34 = vld [vmem:[#allocation5_spill] sm:$0xff] }
 0x2ad   : > { %v4395_v37 = vpack.c.bf16 %v5835_v2, %v5833_v14 }
 0x2ae   : > { %v3245_v6 = vpop.f32.mrf.mxu3 }
 0x2af   : > { %4476 = vst [vmem:[%s5657_s10 + $0x48] sm:$0xff] %v4395_v37   ;;  %v3246_v51 = vadd.f32 %v3245_v6, %v3156_v55 }
 0x2b0   : > { %v2801_v46 = vpop.f32.mrf.mxu1 }
 0x2b1   : > { %v3158_v7 = vpop.f32.mrf.mxu2  ;;  %v2802_v10 = vadd.f32 %v2801_v46, %v6203_v19  ;;  %v3335_v12 = vadd.f32 %v3334_v9, %v3246_v51  ;;  %v6208_v19 = vld [vmem:[#allocation32_spill] sm:$0xff] }
 0x2b3   : > { %v2848_v48 = vadd.f32 %v2802_v10, %v2310_v54  ;;  %v5849_v63 = vadd.f32 %v3335_v12, %v2846_v15  ;;  %v3464_v15 = vadd.f32 %v3463_v35, %v5692_v59  ;;  %v2313_v10 = vadd.f32 %v5619_v60, %v6208_v19  ;;  %v6211_v35 = vld [vmem:[#allocation25_spill] sm:$0xff] }
 0x2b4   : > { %v3341_v25 = vpop.f32.mrf.mxu0 }
 0x2b5   : > { %v3465_v49 = vadd.f32 %v3464_v15, %v5716_v31 }
 0x2b6   : > { %v3247_v17 = vpop.f32.mrf.mxu3 }
 0x2b7   : > { %v3248_v26 = vadd.f32 %v3247_v17, %v3158_v7  ;;  %v3466_v37 = vadd.f32 %v3465_v49, %v5718_v23  ;;  %v6209_v17 = vld [vmem:[#allocation14_spill] sm:$0xff] }
 0x2b8   : > { %v2803_v39 = vpop.f32.mrf.mxu1 }
 0x2b9   : > { %v3161_v20 = vpop.f32.mrf.mxu2  ;;  %v2804_v24 = vadd.f32 %v2803_v39, %v6205_v38  ;;  %v3337_v4 = vadd.f32 %v3336_v18, %v3248_v26  ;;  %v2312_v18 = vadd.f32 %v5619_v60, %v6206_v40  ;;  %v3467_v46 = vadd.f32 %v3466_v37, %v5745_v50 }
 0x2bb   : > { %v2849_v8 = vadd.f32 %v2804_v24, %v2311_v47  ;;  %v5851_v9 = vadd.f32 %v3337_v4, %v2847_v62  ;;  %v3468_v26 = vadd.f32 %v3467_v46, %v5747_v28 }
 0x2bc   : > { %v3344_v43 = vpop.f32.mrf.mxu0 }
 0x2bd   : > { %v4400_v29 = vpack.c.bf16 %v5851_v9, %v5849_v63  ;;  %v3469_v47 = vadd.f32 %v3468_v26, %v5775_v53 }
 0x2be   : > { %v3250_v45 = vpop.f32.mrf.mxu3 }
 0x2bf   : > { %4477 = vst [vmem:[%s5657_s10 + $0x50] sm:$0xff] %v4400_v29   ;;  %v3251_v62 = vadd.f32 %v3250_v45, %v3161_v20  ;;  %v3470_v24 = vadd.f32 %v3469_v47, %v5777_v27  ;;  %v6210_v29 = vld [vmem:[#allocation35_spill] sm:$0xff] }
 0x2c0   : > { %v2806_v16 = vpop.f32.mrf.mxu1 }
 0x2c1   : > { %v3163_v44 = vpop.f32.mrf.mxu2  ;;  %v2807_v55 = vadd.f32 %v2806_v16, %v6207_v34  ;;  %v3340_v11 = vadd.f32 %v3339_v42, %v3251_v62  ;;  %v3471_v21 = vadd.f32 %v3470_v24, %v5794_v30 }
 0x2c3   : > { %v2850_v61 = vadd.f32 %v2807_v55, %v2312_v18  ;;  %v5870_v20 = vadd.f32 %v3340_v11, %v2848_v48 }
 0x2c4   : > { %v3346_v42 = vpop.f32.mrf.mxu0 }
 0x2c6   : > { %v3252_v6 = vpop.f32.mrf.mxu3 }
 0x2c7   : > { %v3253_v54 = vadd.f32 %v3252_v6, %v3163_v44  ;;  %v6212_v6 = vld [vmem:[#allocation7_spill] sm:$0xff] }
 0x2c8   : > { %v2808_v7 = vpop.f32.mrf.mxu1  ;;  %v2315_v46 = vadd.f32 %v5619_v60, %v6212_v6  ;;  %v6217_v6 = vld [vmem:[#allocation10_spill] sm:$0xff] }
 0x2c9   : > { %v3166_v51 = vpop.f32.mrf.mxu2  ;;  %v2809_v12 = vadd.f32 %v2808_v7, %v6209_v17  ;;  %v3342_v39 = vadd.f32 %v3341_v25, %v3253_v54  ;;  %v2314_v25 = vadd.f32 %v5619_v60, %v6210_v29  ;;  %v6213_v54 = vld [vmem:[#allocation16_spill] sm:$0xff] }
 0x2cb   : > { %v2851_v33 = vadd.f32 %v2809_v12, %v2313_v10  ;;  %v5872_v38 = vadd.f32 %v3342_v39, %v2849_v8  ;;  %v3472_v8 = vadd.f32 %v3471_v21, %v5796_v1  ;;  %v6214_v21 = vld [vmem:[#allocation17_spill] sm:$0xff] }
 0x2cc   : > { %v3349_v55 = vpop.f32.mrf.mxu0 }
 0x2cd   : > { %v4405_v13 = vpack.c.bf16 %v5872_v38, %v5870_v20  ;;  %v3473_v40 = vadd.f32 %v3472_v8, %v5807_v57 }
 0x2ce   : > { %v3255_v4 = vpop.f32.mrf.mxu3 }
 0x2cf   : > { %4478 = vst [vmem:[%s5657_s10 + $0x58] sm:$0xff] %v4405_v13   ;;  %v3256_v18 = vadd.f32 %v3255_v4, %v3166_v51  ;;  %v3474_v44 = vadd.f32 %v3473_v40, %v5809_v32 }
 0x2d0   : > { %v2811_v5 = vpop.f32.mrf.mxu1 }
 0x2d1   : > { %v3168_v45 = vpop.f32.mrf.mxu2  ;;  %v2812_v48 = vadd.f32 %v2811_v5, %v6211_v35  ;;  %v3475_v15 = vadd.f32 %v3474_v44, %v5820_v3  ;;  %v3345_v49 = vadd.f32 %v3344_v43, %v3256_v18 }
 0x2d3   : > { %v2852_v16 = vadd.f32 %v2812_v48, %v2314_v25  ;;  %v3476_v19 = vadd.f32 %v3475_v15, %v5822_v52  ;;  %v5891_v12 = vadd.f32 %v3345_v49, %v2850_v61  ;;  %v6215_v61 = vld [vmem:[#allocation18_spill] sm:$0xff] }
 0x2d4   : > { %v3351_v5 = vpop.f32.mrf.mxu0  ;;  %v6216_v49 = vld [vmem:[#allocation30_spill] sm:$0xff] }
 0x2d5   : > { %v3477_v17 = vadd.f32 %v3476_v19, %v5833_v14 }
 0x2d6   : > { %v3257_v34 = vpop.f32.mrf.mxu3 }
 0x2d7   : > { %v3258_v62 = vadd.f32 %v3257_v34, %v3168_v45  ;;  %v3478_v43 = vadd.f32 %v3477_v17, %v5835_v2 }
 0x2d8   : > { %v2813_v37 = vpop.f32.mrf.mxu1 }
 0x2d9   : > { %v3171_v11 = vpop.f32.mrf.mxu2  ;;  %v2814_v7 = vadd.f32 %v2813_v37, %v6213_v54  ;;  %v3347_v10 = vadd.f32 %v3346_v42, %v3258_v62  ;;  %v3479_v24 = vadd.f32 %v3478_v43, %v5849_v63  ;;  %v2316_v42 = vadd.f32 %v5619_v60, %v6214_v21  ;;  %v6219_v21 = vld [vmem:[#allocation23_spill] sm:$0xff] }
 0x2da   : > { %v2317_v62 = vadd.f32 %v5619_v60, %v6216_v49 }
 0x2db   : > { %v2853_v51 = vadd.f32 %v2814_v7, %v2315_v46  ;;  %v5893_v26 = vadd.f32 %v3347_v10, %v2851_v33  ;;  %v3480_v33 = vadd.f32 %v3479_v24, %v5851_v9  ;;  %v6218_v24 = vld [vmem:[#allocation21_spill] sm:$0xff] }
 0x2dd   : > { %v4410_v39 = vpack.c.bf16 %v5893_v26, %v5891_v12  ;;  %v3481_v35 = vadd.f32 %v3480_v33, %v5870_v20 }
 0x2de   : > { %v3260_v47 = vpop.f32.mrf.mxu3 }
 0x2df   : > { %4479 = vst [vmem:[%s5657_s10 + $0x60] sm:$0xff] %v4410_v39   ;;  %v3261_v13 = vadd.f32 %v3260_v47, %v3171_v11  ;;  %v3482_v8 = vadd.f32 %v3481_v35, %v5872_v38 }
 0x2e0   : > { %v2816_v4 = vpop.f32.mrf.mxu1 }
 0x2e1   : > { %v3173_v29 = vpop.f32.mrf.mxu2  ;;  %v2817_v25 = vadd.f32 %v2816_v4, %v6215_v61  ;;  %v3350_v48 = vadd.f32 %v3349_v55, %v3261_v13  ;;  %v3483_v18 = vadd.f32 %v3482_v8, %v5891_v12  ;;  %v3354_v55 = vpop.f32.mrf.mxu0  ;;  %v2318_v13 = vadd.f32 %v5619_v60, %v6218_v24 }
 0x2e2   : > { %v2319_v8 = vadd.f32 %v5619_v60, %v5628_v22 }
 0x2e3   : > { %v2854_v45 = vadd.f32 %v2817_v25, %v2316_v42  ;;  %v5907_v44 = vadd.f32 %v3350_v48, %v2852_v16  ;;  %v3484_v11 = vadd.f32 %v3483_v18, %v5893_v26 }
 0x2e5   : > { %v3485_v19 = vadd.f32 %v3484_v11, %v5907_v44 }
 0x2e6   : > { %v3262_v40 = vpop.f32.mrf.mxu3 }
 0x2e7   : > { %v3263_v34 = vadd.f32 %v3262_v40, %v3173_v29  ;;  %v6220_v40 = vld [vmem:[#allocation24_spill] sm:$0xff] }
 0x2e8   : > { %v2818_v15 = vpop.f32.mrf.mxu1 }
 0x2e9   : > { %v3176_v37 = vpop.f32.mrf.mxu2  ;;  %v2819_v46 = vadd.f32 %v2818_v15, %v6217_v6  ;;  %v3352_v54 = vadd.f32 %v3351_v5, %v3263_v34 }
 0x2eb   : > { %v2855_v7 = vadd.f32 %v2819_v46, %v2317_v62  ;;  %v5914_v10 = vadd.f32 %v3352_v54, %v2853_v51  ;;  %v3356_v51 = vpop.f32.mrf.mxu0 }
 0x2ed   : > { %v4415_v16 = vpack.c.bf16 %v5914_v10, %v5907_v44  ;;  %v3486_v17 = vadd.f32 %v3485_v19, %v5914_v10 }
 0x2ee   : > { %v3265_v43 = vpop.f32.mrf.mxu3 }
 0x2ef   : > { %4480 = vst [vmem:[%s5657_s10 + $0x68] sm:$0xff] %v4415_v16   ;;  %v3266_v39 = vadd.f32 %v3265_v43, %v3176_v37 }
 0x2f0   : > { %v2821_v47 = vpop.f32.mrf.mxu1 }
 0x2f1   : > { %v3178_v4 = vpop.f32.mrf.mxu2  ;;  %v2822_v42 = vadd.f32 %v2821_v47, %v6219_v21  ;;  %v3355_v5 = vadd.f32 %v3354_v55, %v3266_v39 }
 0x2f3   : > { %v2856_v29 = vadd.f32 %v2822_v42, %v2318_v13  ;;  %v5923_v61 = vadd.f32 %v3355_v5, %v2854_v45  ;;  %v3359_v6 = vpop.f32.mrf.mxu0 }
 0x2f5   : > { %v3487_v25 = vadd.f32 %v3486_v17, %v5923_v61 }
 0x2f6   : > { %v3267_v33 = vpop.f32.mrf.mxu3 }
 0x2f7   : > { %v3268_v35 = vadd.f32 %v3267_v33, %v3178_v4 }
 0x2f8   : > { %v2823_v48 = vpop.f32.mrf.mxu1 }
 0x2f9   : > { %v2824_v18 = vadd.f32 %v2823_v48, %v6220_v40  ;;  %v3357_v34 = vadd.f32 %v3356_v51, %v3268_v35  ;;  %v3181_v15 = vpop.f32.mrf.mxu2 }
 0x2fb   : > { %v2857_v49 = vadd.f32 %v2824_v18, %v2319_v8  ;;  %v5929_v62 = vadd.f32 %v3357_v34, %v2855_v7  ;;  %v3361_v7 = vpop.f32.mrf.mxu0 }
 0x2fd   : > { %v4420_v45 = vpack.c.bf16 %v5929_v62, %v5923_v61  ;;  %v3488_v37 = vadd.f32 %v3487_v25, %v5929_v62 }
 0x2fe   : > { %v3270_v46 = vpop.f32.mrf.mxu3 }
 0x2ff   : > { %4481 = vst [vmem:[%s5657_s10 + $0x70] sm:$0xff] %v4420_v45   ;;  %v3271_v11 = vadd.f32 %v3270_v46, %v3181_v15 }
 0x301   : > { %v3360_v54 = vadd.f32 %v3359_v6, %v3271_v11  ;;  %v3183_v22 = vpop.f32.mrf.mxu2 }
 0x303   : > { %v5935_v55 = vadd.f32 %v3360_v54, %v2856_v29 }
 0x305   : > { %v3489_v60 = vadd.f32 %v3488_v37, %v5935_v55 }
 0x306   : > { %v3272_v19 = vpop.f32.mrf.mxu3 }
 0x307   : > { %v3273_v16 = vadd.f32 %v3272_v19, %v3183_v22 }
 0x309   : > { %v3362_v17 = vadd.f32 %v3361_v7, %v3273_v16 }
 0x30b   : > { %v5938_v43 = vadd.f32 %v3362_v17, %v2857_v49 }
 0x30d   : > { %v4425_v39 = vpack.c.bf16 %v5938_v43, %v5935_v55  ;;  %v3490_v47 = vadd.f32 %v3489_v60, %v5938_v43 }
 0x30f   : > { %4482 = vst [vmem:[%s5657_s10 + $0x78] sm:$0xff] %v4425_v39   ;;  %v3491_v24 = vrot.slane %v3490_v47, 4 }
 0x311   : > { %v3492_v13 = vadd.f32 %v3491_v24, %v3490_v47 }
 0x313   : > { %v3493_v4 = vrot.slane %v3492_v13, 2 }
 0x315   : > { %v3494_v21 = vadd.f32 %v3493_v4, %v3492_v13 }
 0x317   : > { %v3495_v42 = vrot.slane %v3494_v21, 1 }
 0x319   : > { %v5944_v5 = vadd.f32 %v3495_v42, %v3494_v21 }
 0x31b   : > { %v5947_v29 = vmul.f32 0.00390625, %v5944_v5 }
 0x31d   : > { %v3498_v51 = vsub.f32 %v5647_v58, %v5947_v29  ;;  %v3499_v25 = vsub.f32 %v5649_v56, %v5947_v29  ;;  %v3500_v33 = vsub.f32 %v5671_v36, %v5947_v29  ;;  %v3501_v8 = vsub.f32 %v5673_v0, %v5947_v29 }
 0x31e   : > { %v3502_v40 = vsub.f32 %v5690_v41, %v5947_v29  ;;  %v3503_v15 = vsub.f32 %v5692_v59, %v5947_v29  ;;  %v3504_v56 = vsub.f32 %v5716_v31, %v5947_v29  ;;  %v3505_v37 = vsub.f32 %v5718_v23, %v5947_v29 }
 0x31f   : > { %v3530_v35 = vmul.f32 %v3498_v51, %v3498_v51  ;;  %v3531_v48 = vmul.f32 %v3499_v25, %v3499_v25  ;;  %v3532_v18 = vmul.f32 %v3500_v33, %v3500_v33  ;;  %v3533_v58 = vmul.f32 %v3501_v8, %v3501_v8 }
 0x320   : > { %v3534_v45 = vmul.f32 %v3502_v40, %v3502_v40  ;;  %v3535_v6 = vmul.f32 %v3503_v15, %v3503_v15  ;;  %v3506_v41 = vsub.f32 %v5745_v50, %v5947_v29  ;;  %v3536_v46 = vmul.f32 %v3504_v56, %v3504_v56 }
 0x321   : > { %v3562_v34 = vadd.f32 %v3531_v48, %v3530_v35  ;;  %v3507_v59 = vsub.f32 %v5747_v28, %v5947_v29  ;;  %v3537_v54 = vmul.f32 %v3505_v37, %v3505_v37  ;;  %v3508_v31 = vsub.f32 %v5775_v53, %v5947_v29 }
 0x322   : > { %v3538_v60 = vmul.f32 %v3506_v41, %v3506_v41  ;;  %v3509_v23 = vsub.f32 %v5777_v27, %v5947_v29  ;;  %v3510_v50 = vsub.f32 %v5794_v30, %v5947_v29  ;;  %v3511_v28 = vsub.f32 %v5796_v1, %v5947_v29 }
 0x323   : > { %v3563_v49 = vadd.f32 %v3562_v34, %v3532_v18  ;;  %v3539_v16 = vmul.f32 %v3507_v59, %v3507_v59  ;;  %v3540_v17 = vmul.f32 %v3508_v31, %v3508_v31  ;;  %v3512_v53 = vsub.f32 %v5807_v57, %v5947_v29 }
 0x324   : > { %v3541_v47 = vmul.f32 %v3509_v23, %v3509_v23  ;;  %v3542_v13 = vmul.f32 %v3510_v50, %v3510_v50  ;;  %v3513_v27 = vsub.f32 %v5809_v32, %v5947_v29  ;;  %v3543_v21 = vmul.f32 %v3511_v28, %v3511_v28 }
 0x325   : > { %v3564_v36 = vadd.f32 %v3563_v49, %v3533_v58  ;;  %v3514_v30 = vsub.f32 %v5820_v3, %v5947_v29  ;;  %v3544_v51 = vmul.f32 %v3512_v53, %v3512_v53  ;;  %v3515_v1 = vsub.f32 %v5822_v52, %v5947_v29 }
 0x326   : > { %v3545_v33 = vmul.f32 %v3513_v27, %v3513_v27  ;;  %v3516_v57 = vsub.f32 %v5833_v14, %v5947_v29  ;;  %v3517_v32 = vsub.f32 %v5835_v2, %v5947_v29  ;;  %v3518_v3 = vsub.f32 %v5849_v63, %v5947_v29 }
 0x327   : > { %v3565_v0 = vadd.f32 %v3564_v36, %v3534_v45  ;;  %v3546_v48 = vmul.f32 %v3514_v30, %v3514_v30  ;;  %v3547_v40 = vmul.f32 %v3515_v1, %v3515_v1  ;;  %v3519_v52 = vsub.f32 %v5851_v9, %v5947_v29 }
 0x328   : > { %v3548_v34 = vmul.f32 %v3516_v57, %v3516_v57  ;;  %v3549_v58 = vmul.f32 %v3517_v32, %v3517_v32  ;;  %v3520_v14 = vsub.f32 %v5870_v20, %v5947_v29  ;;  %v3550_v56 = vmul.f32 %v3518_v3, %v3518_v3 }
 0x329   : > { %v3566_v11 = vadd.f32 %v3565_v0, %v3535_v6  ;;  %v3521_v2 = vsub.f32 %v5872_v38, %v5947_v29  ;;  %v3551_v36 = vmul.f32 %v3519_v52, %v3519_v52  ;;  %v3522_v63 = vsub.f32 %v5891_v12, %v5947_v29 }
 0x32a   : > { %v3552_v6 = vmul.f32 %v3520_v14, %v3520_v14  ;;  %v3523_v9 = vsub.f32 %v5893_v26, %v5947_v29  ;;  %v3524_v20 = vsub.f32 %v5907_v44, %v5947_v29  ;;  %v3525_v38 = vsub.f32 %v5914_v10, %v5947_v29 }
 0x32b   : > { %v3567_v22 = vadd.f32 %v3566_v11, %v3536_v46  ;;  %v3553_v41 = vmul.f32 %v3521_v2, %v3521_v2  ;;  %v3554_v11 = vmul.f32 %v3522_v63, %v3522_v63  ;;  %v3526_v12 = vsub.f32 %v5923_v61, %v5947_v29 }
 0x32c   : > { %v3556_v31 = vmul.f32 %v3524_v20, %v3524_v20  ;;  %v3527_v26 = vsub.f32 %v5929_v62, %v5947_v29  ;;  %v3528_v44 = vsub.f32 %v5935_v55, %v5947_v29  ;;  %v3529_v10 = vsub.f32 %v5938_v43, %v5947_v29 }
 0x32d   : > { %v3568_v19 = vadd.f32 %v3567_v22, %v3537_v54  ;;  %v3555_v54 = vmul.f32 %v3523_v9, %v3523_v9 }
 0x32e   : > { %v3559_v50 = vmul.f32 %v3527_v26, %v3527_v26  ;;  %v3561_v28 = vmul.f32 %v3529_v10, %v3529_v10 }
 0x32f   : > { %v3569_v7 = vadd.f32 %v3568_v19, %v3538_v60  ;;  %v3557_v19 = vmul.f32 %v3525_v38, %v3525_v38 }
 0x331   : > { %v3570_v39 = vadd.f32 %v3569_v7, %v3539_v16  ;;  %v3558_v16 = vmul.f32 %v3526_v12, %v3526_v12 }
 0x333   : > { %v3571_v24 = vadd.f32 %v3570_v39, %v3540_v17  ;;  %v3560_v39 = vmul.f32 %v3528_v44, %v3528_v44 }
 0x335   : > { %v3572_v4 = vadd.f32 %v3571_v24, %v3541_v47 }
 0x337   : > { %v3573_v42 = vadd.f32 %v3572_v4, %v3542_v13 }
 0x339   : > { %v3574_v25 = vadd.f32 %v3573_v42, %v3543_v21 }
 0x33b   : > { %v3575_v35 = vadd.f32 %v3574_v25, %v3544_v51 }
 0x33d   : > { %v3576_v8 = vadd.f32 %v3575_v35, %v3545_v33 }
 0x33f   : > { %v3577_v18 = vadd.f32 %v3576_v8, %v3546_v48 }
 0x341   : > { %v3578_v15 = vadd.f32 %v3577_v18, %v3547_v40 }
 0x343   : > { %v3579_v49 = vadd.f32 %v3578_v15, %v3548_v34 }
 0x345   : > { %v3580_v45 = vadd.f32 %v3579_v49, %v3549_v58 }
 0x347   : > { %v3581_v37 = vadd.f32 %v3580_v45, %v3550_v56 }
 0x349   : > { %v3582_v0 = vadd.f32 %v3581_v37, %v3551_v36 }
 0x34b   : > { %v3583_v46 = vadd.f32 %v3582_v0, %v3552_v6 }
 0x34d   : > { %v3584_v59 = vadd.f32 %v3583_v46, %v3553_v41 }
 0x34f   : > { %v3585_v22 = vadd.f32 %v3584_v59, %v3554_v11 }
 0x351   : > { %v3586_v60 = vadd.f32 %v3585_v22, %v3555_v54 }
 0x353   : > { %v3587_v23 = vadd.f32 %v3586_v60, %v3556_v31 }
 0x355   : > { %v3588_v7 = vadd.f32 %v3587_v23, %v3557_v19 }
 0x357   : > { %v3589_v17 = vadd.f32 %v3588_v7, %v3558_v16 }
 0x359   : > { %v3590_v61 = vadd.f32 %v3589_v17, %v3559_v50 }
 0x35b   : > { %v3591_v47 = vadd.f32 %v3590_v61, %v3560_v39 }
 0x35d   : > { %v3592_v24 = vadd.f32 %v3591_v47, %v3561_v28 }
 0x35f   : > { %v3593_v53 = vrot.slane %v3592_v24, 4 }
 0x361   : > { %v3594_v62 = vadd.f32 %v3593_v53, %v3592_v24 }
 0x363   : > { %v3595_v13 = vrot.slane %v3594_v62, 2 }
 0x365   : > { %v3596_v4 = vadd.f32 %v3595_v13, %v3594_v62 }
 0x367   : > { %v3597_v27 = vrot.slane %v3596_v4, 1 }
 0x369   : > { %v3598_v55 = vadd.f32 %v3597_v27, %v3596_v4 }
 0x36b   : > { %v3600_v43 = vsel %vm425_vm4, %v5944_v5, %v3598_v55 }
 0x36c   : > { %3601 = vst [vmem:[%s252_s12] sm:$0x3] %v3600_v43 }
 0x36d PF: > { %s16_s18 = sadd.s32 1, %s4575_s18  }
 0x36e   : > { %p13_p4 = scmp.ge.s32.totalorder %s16_s18, 4  }
 0x370   :  { %15 = sbr.rel (!%p13_p4) target bundleno = 1 (0x1), region = 85 }

</bundles_post_ra>
